<compile_context>
chip_gen: v5e
topology: v5e:2x2
jax: 0.10.0
libtpu: 0.0.40
codegen_flags: <defaults>
</compile_context>

<pallas_src>
import jax
import jax.numpy as jnp
from jax.experimental import pallas as pl
from jax.experimental.pallas import tpu as pltpu

FEAT_REAL = 1000   # PyTorch encoder output dim
FEAT = 1024        # padded to a lane multiple (128)
HID = 512
PROJ = 128
TK_MAX = 1024      # K (in_dim) tile for streaming w_enc


def _round_up(x, m):
    return (x + m - 1) // m * m


def simclr_kernel(x_ref, wenc_ref, benc_ref, w1_ref, b1_ref, w2_ref, b2_ref,
                  h_ref, z_ref, acc_ref):
    k = pl.program_id(1)

    @pl.when(k == 0)
    def _():
        acc_ref[...] = jnp.zeros_like(acc_ref)

    # encoder partial product: (TM, TK) @ (TK, FEAT) on the MXU, bf16 -> f32 acc
    acc_ref[...] += jnp.dot(x_ref[...], wenc_ref[...],
                            preferred_element_type=jnp.float32)

    @pl.when(k == pl.num_programs(1) - 1)
    def _():
        h = acc_ref[...] + benc_ref[...]                     # f32 bias add (VPU)
        h_ref[...] = h.astype(h_ref.dtype)                   # lane-dense (1024) store
        # projection head: Linear(1024->512) -> ReLU -> Linear(512->128)
        a = jnp.dot(h.astype(w1_ref.dtype), w1_ref[...],
                    preferred_element_type=jnp.float32) + b1_ref[...]
        a = jnp.maximum(a, 0.0)
        z = jnp.dot(a.astype(w2_ref.dtype), w2_ref[...],
                    preferred_element_type=jnp.float32) + b2_ref[...]
        z_ref[...] = z.astype(z_ref.dtype)


def simclr_forward(x_nchw, params):
    """x_nchw: (B, C, H, W) float32. Returns (h, z) = ((B, 1000), (B, 128))."""
    B = x_nchw.shape[0]
    x_flat = x_nchw.reshape(B, -1)       # row-major flatten like torch
    in_dim = x_flat.shape[1]

    # ---- tiling / padding (all zero-padding -> numerically exact) ----
    TM = 128 if B >= 128 else _round_up(B, 8)
    B_pad = _round_up(B, TM)
    TK = min(TK_MAX, _round_up(in_dim, 128))
    in_pad = _round_up(in_dim, TK)

    x_p = (jnp.zeros((B_pad, in_pad), jnp.float32)
           .at[:B, :in_dim].set(x_flat)).astype(jnp.bfloat16)

    w_enc = (jnp.zeros((in_pad, FEAT), jnp.float32)
             .at[:in_dim, :FEAT_REAL].set(params["w_enc"])).astype(jnp.bfloat16)
    b_enc = jnp.zeros((1, FEAT), jnp.float32).at[:, :FEAT_REAL].set(params["b_enc"])
    w1 = (jnp.zeros((FEAT, HID), jnp.float32)
          .at[:FEAT_REAL, :].set(params["w1"])).astype(jnp.bfloat16)
    b1 = params["b1"].astype(jnp.float32)
    w2 = params["w2"].astype(jnp.bfloat16)
    b2 = params["b2"].astype(jnp.float32)

    grid = (B_pad // TM, in_pad // TK)

    flops = 2 * B_pad * (in_pad * FEAT + FEAT * HID + HID * PROJ)
    bytes_accessed = (x_p.size * 2 + w_enc.size * 2 + w1.size * 2 + w2.size * 2
                      + (b_enc.size + b1.size + b2.size) * 4
                      + (B_pad * FEAT + B_pad * PROJ) * 4)

    h_p, z_p = pl.pallas_call(
        simclr_kernel,
        out_shape=(
            jax.ShapeDtypeStruct((B_pad, FEAT), jnp.float32),
            jax.ShapeDtypeStruct((B_pad, PROJ), jnp.float32),
        ),
        grid_spec=pltpu.PrefetchScalarGridSpec(
            num_scalar_prefetch=0,
            grid=grid,                                          # K reduction last
            in_specs=[
                pl.BlockSpec((TM, TK), lambda i, k: (i, k)),    # x, streamed
                pl.BlockSpec((TK, FEAT), lambda i, k: (k, 0)),  # w_enc, streamed over K
                pl.BlockSpec((1, FEAT), lambda i, k: (0, 0)),   # b_enc, resident
                pl.BlockSpec((FEAT, HID), lambda i, k: (0, 0)), # w1, resident
                pl.BlockSpec((1, HID), lambda i, k: (0, 0)),    # b1, resident
                pl.BlockSpec((HID, PROJ), lambda i, k: (0, 0)), # w2, resident
                pl.BlockSpec((1, PROJ), lambda i, k: (0, 0)),   # b2, resident
            ],
            out_specs=(
                pl.BlockSpec((TM, FEAT), lambda i, k: (i, 0)),  # h (written once per i)
                pl.BlockSpec((TM, PROJ), lambda i, k: (i, 0)),  # z (written once per i)
            ),
            scratch_shapes=[pltpu.VMEM((TM, FEAT), jnp.float32)],
        ),
        compiler_params=pltpu.CompilerParams(
            dimension_semantics=("parallel", "arbitrary"),
            vmem_limit_bytes=48 << 20,                          # < 64 MiB (v7x-safe)
        ),
        cost_estimate=pl.CostEstimate(flops=flops, transcendentals=0,
                                      bytes_accessed=bytes_accessed),
    )(x_p, w_enc, b_enc, w1, b1, w2, b2)

    return h_p[:B, :FEAT_REAL], z_p[:B, :]


def init_params(key, in_dim, feat_dim=FEAT_REAL, hid_dim=HID, proj_dim=PROJ):
    """Deterministic PyTorch-style Linear init: U(-1/sqrt(fan_in), 1/sqrt(fan_in))."""
    ks = jax.random.split(key, 6)

    def lin(kw, kb, fan_in, fan_out):
        bound = 1.0 / jnp.sqrt(fan_in)
        w = jax.random.uniform(kw, (fan_in, fan_out), jnp.float32, -bound, bound)
        b = jax.random.uniform(kb, (1, fan_out), jnp.float32, -bound, bound)
        return w, b

    w_enc, b_enc = lin(ks[0], ks[1], in_dim, feat_dim)
    w1, b1 = lin(ks[2], ks[3], feat_dim, hid_dim)
    w2, b2 = lin(ks[4], ks[5], hid_dim, proj_dim)
    return {"w_enc": w_enc, "b_enc": b_enc,
            "w1": w1, "b1": b1, "w2": w2, "b2": b2}


if __name__ == "__main__":
    key = jax.random.PRNGKey(0)
    k_x, k_p = jax.random.split(key)

    # small NCHW input: batch=2, channels=3, spatial=16x16
    B, C, H, W = 2, 3, 16, 16
    x = jax.random.normal(k_x, (B, C, H, W), jnp.float32)
    params = init_params(k_p, in_dim=C * H * W)

    h, z = jax.jit(simclr_forward)(x, params)
    jax.block_until_ready((h, z))

    # reference in plain JAX with the same bf16 weight/activation quantization
    # and f32 accumulation as the kernel.
    xb = x.reshape(B, -1).astype(jnp.bfloat16)
    h_ref = jnp.dot(xb, params["w_enc"].astype(jnp.bfloat16),
                    preferred_element_type=jnp.float32) + params["b_enc"]
    a_ref = jnp.maximum(
        jnp.dot(h_ref.astype(jnp.bfloat16), params["w1"].astype(jnp.bfloat16),
                preferred_element_type=jnp.float32) + params["b1"], 0.0)
    z_ref = jnp.dot(a_ref.astype(jnp.bfloat16), params["w2"].astype(jnp.bfloat16),
                    preferred_element_type=jnp.float32) + params["b2"]

    assert h.shape == (B, FEAT_REAL) and z.shape == (B, PROJ)
    assert jnp.allclose(h, h_ref, atol=5e-3, rtol=5e-3)
    assert jnp.allclose(z, z_ref, atol=5e-3, rtol=5e-3)

    print("KERNEL_OK")
</pallas_src>

<mosaic_0001>
module attributes {stable_mosaic.version = 11 : i64} {
  func.func @simclr_kernel(%arg0: i32, %arg1: i32, %arg2: memref<8x768xbf16, #tpu.memory_space<vmem>>, %arg3: memref<768x1024xbf16, #tpu.memory_space<vmem>>, %arg4: memref<1x1024xf32, #tpu.memory_space<vmem>>, %arg5: memref<1024x512xbf16, #tpu.memory_space<vmem>>, %arg6: memref<1x512xf32, #tpu.memory_space<vmem>>, %arg7: memref<512x128xbf16, #tpu.memory_space<vmem>>, %arg8: memref<1x128xf32, #tpu.memory_space<vmem>>, %arg9: memref<8x1024xf32, #tpu.memory_space<vmem>>, %arg10: memref<8x128xf32, #tpu.memory_space<vmem>>, %arg11: memref<8x1024xf32, #tpu.memory_space<vmem>>) attributes {dimension_semantics = [#tpu.dimension_semantics<parallel>, #tpu.dimension_semantics<arbitrary>], iteration_bounds = array<i64: 1, 1>, scalar_prefetch = 0 : i64, scratch_operands = 1 : i64, tpu.core_type = #tpu.core_type<tc>, window_params = [{transform_indices = @transform_0, window_bounds = array<i64: 8, 768>}, {transform_indices = @transform_1, window_bounds = array<i64: 768, 1024>}, {pipeline_mode = #tpu.pipeline_mode<synchronous>, transform_indices = @transform_2, window_bounds = array<i64: 1, 1024>}, {pipeline_mode = #tpu.pipeline_mode<synchronous>, transform_indices = @transform_3, window_bounds = array<i64: 1024, 512>}, {pipeline_mode = #tpu.pipeline_mode<synchronous>, transform_indices = @transform_4, window_bounds = array<i64: 1, 512>}, {pipeline_mode = #tpu.pipeline_mode<synchronous>, transform_indices = @transform_5, window_bounds = array<i64: 512, 128>}, {pipeline_mode = #tpu.pipeline_mode<synchronous>, transform_indices = @transform_6, window_bounds = array<i64: 1, 128>}, {transform_indices = @transform_7, window_bounds = array<i64: 8, 1024>}, {transform_indices = @transform_8, window_bounds = array<i64: 8, 128>}]} {
    %c0_i32 = arith.constant 0 : i32
    %0 = arith.cmpi eq, %arg1, %c0_i32 : i32
    %1 = arith.extui %0 : i1 to i32
    %c0_i32_0 = arith.constant 0 : i32
    %2 = arith.cmpi ne, %1, %c0_i32_0 : i32
    scf.if %2 {
      %cst_10 = arith.constant 0.000000e+00 : f32
      %12 = vector.broadcast %cst_10 : f32 to vector<8x1024xf32>
      %c0_11 = arith.constant 0 : index
      %c0_12 = arith.constant 0 : index
      %13 = vector.load %arg11[%c0_11, %c0_12] : memref<8x1024xf32, #tpu.memory_space<vmem>>, vector<8x1024xf32>
      tpu.vector_store %arg11[%c0_11, %c0_12], %12 {strides = array<i32>} : memref<8x1024xf32, #tpu.memory_space<vmem>>, vector<8x1024xf32>,
    } else {
    }
    %c0 = arith.constant 0 : index
    %c0_1 = arith.constant 0 : index
    %3 = vector.load %arg11[%c0, %c0_1] : memref<8x1024xf32, #tpu.memory_space<vmem>>, vector<8x1024xf32>
    %c0_2 = arith.constant 0 : index
    %c0_3 = arith.constant 0 : index
    %4 = vector.load %arg2[%c0_2, %c0_3] : memref<8x768xbf16, #tpu.memory_space<vmem>>, vector<8x768xbf16>
    %c0_4 = arith.constant 0 : index
    %c0_5 = arith.constant 0 : index
    %5 = vector.load %arg3[%c0_4, %c0_5] : memref<768x1024xbf16, #tpu.memory_space<vmem>>, vector<768x1024xbf16>
    %cst = arith.constant dense<0.000000e+00> : vector<8x1024xf32>
    %6 = tpu.matmul %4, %5, %cst {dimension_numbers = #tpu.dot_dimension_numbers<[1], [0], [0], [1], [0, 0, 1, 1], [], []>} : vector<8x768xbf16>, vector<768x1024xbf16>, vector<8x1024xf32> -> vector<8x1024xf32>
    %7 = arith.addf %3, %6 : vector<8x1024xf32>
    %c0_6 = arith.constant 0 : index
    %c0_7 = arith.constant 0 : index
    %8 = vector.load %arg11[%c0_6, %c0_7] : memref<8x1024xf32, #tpu.memory_space<vmem>>, vector<8x1024xf32>
    tpu.vector_store %arg11[%c0_6, %c0_7], %7 {strides = array<i32>} : memref<8x1024xf32, #tpu.memory_space<vmem>>, vector<8x1024xf32>,
    %c0_i32_8 = arith.constant 0 : i32
    %9 = arith.cmpi eq, %arg1, %c0_i32_8 : i32
    %10 = arith.extui %9 : i1 to i32
    %c0_i32_9 = arith.constant 0 : i32
    %11 = arith.cmpi ne, %10, %c0_i32_9 : i32
    scf.if %11 {
      %c0_10 = arith.constant 0 : index
      %c0_11 = arith.constant 0 : index
      %12 = vector.load %arg11[%c0_10, %c0_11] : memref<8x1024xf32, #tpu.memory_space<vmem>>, vector<8x1024xf32>
      %c0_12 = arith.constant 0 : index
      %c0_13 = arith.constant 0 : index
      %13 = vector.load %arg4[%c0_12, %c0_13] : memref<1x1024xf32, #tpu.memory_space<vmem>>, vector<1x1024xf32>
      %14 = vector.broadcast %13 : vector<1x1024xf32> to vector<8x1024xf32>
      %15 = arith.addf %12, %14 : vector<8x1024xf32>
      %c0_14 = arith.constant 0 : index
      %c0_15 = arith.constant 0 : index
      %16 = vector.load %arg9[%c0_14, %c0_15] : memref<8x1024xf32, #tpu.memory_space<vmem>>, vector<8x1024xf32>
      tpu.vector_store %arg9[%c0_14, %c0_15], %15 {strides = array<i32>} : memref<8x1024xf32, #tpu.memory_space<vmem>>, vector<8x1024xf32>,
      %17 = arith.truncf %15 : vector<8x1024xf32> to vector<8x1024xbf16>
      %c0_16 = arith.constant 0 : index
      %c0_17 = arith.constant 0 : index
      %18 = vector.load %arg5[%c0_16, %c0_17] : memref<1024x512xbf16, #tpu.memory_space<vmem>>, vector<1024x512xbf16>
      %cst_18 = arith.constant dense<0.000000e+00> : vector<8x512xf32>
      %19 = tpu.matmul %17, %18, %cst_18 {dimension_numbers = #tpu.dot_dimension_numbers<[1], [0], [0], [1], [0, 0, 1, 1], [], []>} : vector<8x1024xbf16>, vector<1024x512xbf16>, vector<8x512xf32> -> vector<8x512xf32>
      %c0_19 = arith.constant 0 : index
      %c0_20 = arith.constant 0 : index
      %20 = vector.load %arg6[%c0_19, %c0_20] : memref<1x512xf32, #tpu.memory_space<vmem>>, vector<1x512xf32>
      %21 = vector.broadcast %20 : vector<1x512xf32> to vector<8x512xf32>
      %22 = arith.addf %19, %21 : vector<8x512xf32>
      %cst_21 = arith.constant 0.000000e+00 : f32
      %23 = vector.broadcast %cst_21 : f32 to vector<8x512xf32>
      %24 = arith.maximumf %22, %23 : vector<8x512xf32>
      %25 = arith.truncf %24 : vector<8x512xf32> to vector<8x512xbf16>
      %c0_22 = arith.constant 0 : index
      %c0_23 = arith.constant 0 : index
      %26 = vector.load %arg7[%c0_22, %c0_23] : memref<512x128xbf16, #tpu.memory_space<vmem>>, vector<512x128xbf16>
      %cst_24 = arith.constant dense<0.000000e+00> : vector<8x128xf32>
      %27 = tpu.matmul %25, %26, %cst_24 {dimension_numbers = #tpu.dot_dimension_numbers<[1], [0], [0], [1], [0, 0, 1, 1], [], []>} : vector<8x512xbf16>, vector<512x128xbf16>, vector<8x128xf32> -> vector<8x128xf32>
      %c0_25 = arith.constant 0 : index
      %c0_26 = arith.constant 0 : index
      %28 = vector.load %arg8[%c0_25, %c0_26] : memref<1x128xf32, #tpu.memory_space<vmem>>, vector<1x128xf32>
      %29 = vector.broadcast %28 : vector<1x128xf32> to vector<8x128xf32>
      %30 = arith.addf %27, %29 : vector<8x128xf32>
      %c0_27 = arith.constant 0 : index
      %c0_28 = arith.constant 0 : index
      %31 = vector.load %arg10[%c0_27, %c0_28] : memref<8x128xf32, #tpu.memory_space<vmem>>, vector<8x128xf32>
      tpu.vector_store %arg10[%c0_27, %c0_28], %30 {strides = array<i32>} : memref<8x128xf32, #tpu.memory_space<vmem>>, vector<8x128xf32>,
    } else {
    }
    return
  }
  func.func @transform_0(%arg0: i32, %arg1: i32) -> (i32, i32) {
    %c0_i32 = arith.constant 0 : i32
    return %arg0, %arg1 : i32, i32
  }
  func.func @transform_1(%arg0: i32, %arg1: i32) -> (i32, i32) {
    %c0_i32 = arith.constant 0 : i32
    %c0_i32_0 = arith.constant 0 : i32
    return %arg1, %c0_i32 : i32, i32
  }
  func.func @transform_2(%arg0: i32, %arg1: i32) -> (i32, i32) {
    %c0_i32 = arith.constant 0 : i32
    %c0_i32_0 = arith.constant 0 : i32
    %c0_i32_1 = arith.constant 0 : i32
    return %c0_i32, %c0_i32_0 : i32, i32
  }
  func.func @transform_3(%arg0: i32, %arg1: i32) -> (i32, i32) {
    %c0_i32 = arith.constant 0 : i32
    %c0_i32_0 = arith.constant 0 : i32
    %c0_i32_1 = arith.constant 0 : i32
    return %c0_i32, %c0_i32_0 : i32, i32
  }
  func.func @transform_4(%arg0: i32, %arg1: i32) -> (i32, i32) {
    %c0_i32 = arith.constant 0 : i32
    %c0_i32_0 = arith.constant 0 : i32
    %c0_i32_1 = arith.constant 0 : i32
    return %c0_i32, %c0_i32_0 : i32, i32
  }
  func.func @transform_5(%arg0: i32, %arg1: i32) -> (i32, i32) {
    %c0_i32 = arith.constant 0 : i32
    %c0_i32_0 = arith.constant 0 : i32
    %c0_i32_1 = arith.constant 0 : i32
    return %c0_i32, %c0_i32_0 : i32, i32
  }
  func.func @transform_6(%arg0: i32, %arg1: i32) -> (i32, i32) {
    %c0_i32 = arith.constant 0 : i32
    %c0_i32_0 = arith.constant 0 : i32
    %c0_i32_1 = arith.constant 0 : i32
    return %c0_i32, %c0_i32_0 : i32, i32
  }
  func.func @transform_7(%arg0: i32, %arg1: i32) -> (i32, i32) {
    %c0_i32 = arith.constant 0 : i32
    %c0_i32_0 = arith.constant 0 : i32
    return %arg0, %c0_i32 : i32, i32
  }
  func.func @transform_8(%arg0: i32, %arg1: i32) -> (i32, i32) {
    %c0_i32 = arith.constant 0 : i32
    %c0_i32_0 = arith.constant 0 : i32
    return %arg0, %c0_i32 : i32, i32
  }
}

</mosaic_0001>

<bundles_post_ra>
// kernel: simclr_forward.1
= control target key start
LH: loop header
LB: loop body
LE: loop exit
PB: predicated region body
PF: predicated region fallthrough
CT: control target
= control target key end

     0   :  { %s12993_s1 = inlined_call_operand.vmem [shape: bf16[768,1024], index: 1, kind: input, shape index: {}]   ;;  %s12994_s0 = inlined_call_operand.vmem [shape: bf16[8,768], index: 0, kind: input, shape index: {}]   ;;  %s12995_s2 = inlined_call_operand.vmem [shape: f32[1,1024], index: 2, kind: input, shape index: {}]   ;;  %s12996_s7 = inlined_call_operand.vmem [shape: f32[8,1024], index: 7, kind: output, shape index: {0}]   ;;  %s12997_s3 = inlined_call_operand.vmem [shape: bf16[1024,512], index: 3, kind: input, shape index: {}]   ;;  %s12998_s4 = inlined_call_operand.vmem [shape: f32[1,512], index: 4, kind: input, shape index: {}]   ;;  %s12999_s5 = inlined_call_operand.vmem [shape: bf16[512,128], index: 5, kind: input, shape index: {}]   ;;  %s13000_s6 = inlined_call_operand.vmem [shape: f32[1,128], index: 6, kind: input, shape index: {}]   ;;  %s13001_s8 = inlined_call_operand.vmem [shape: f32[8,128], index: 8, kind: output, shape index: {1}]  }
   0x1   :  { %v5586_v0 = vld [vmem:[%s12993_s1 + $0x1c0] sm:$0xf] }
   0x2   :  { %v8108_v1 = vld [vmem:[%s12993_s1 + $0x1dc] sm:$0xf0] }
   0x3   :  { %v5842_v2 = vld [vmem:[%s12993_s1 + $0x3c0] sm:$0xf]  ;;  %v5587_v3 = vor.u32 %v8108_v1, %v5586_v0 }
   0x4   :  { %v8172_v4 = vld [vmem:[%s12993_s1 + $0x3dc] sm:$0xf0] }
   0x5   :  { %v6098_v5 = vld [vmem:[%s12993_s1 + $0x5c0] sm:$0xf]  ;;  %v5843_v7 = vor.u32 %v8172_v4, %v5842_v2  ;;  %2376 = vmatpush.bf16.msra.mxu0 %v5587_v3 }
   0x6   :  { %v8236_v6 = vld [vmem:[%s12993_s1 + $0x5dc] sm:$0xf0] }
   0x7   :  { %v6099_v8 = vor.u32 %v8236_v6, %v6098_v5  ;;  %v6354_v9 = vld [vmem:[%s12993_s1 + $0x7c0] sm:$0xf]  ;;  %2389 = vmatpush.bf16.msra.mxu1 %v5843_v7 }
   0x8   :  { %v8300_v10 = vld [vmem:[%s12993_s1 + $0x7dc] sm:$0xf0] }
   0x9   :  { %v5554_v11 = vld [vmem:[%s12993_s1 + $0x180] sm:$0xf]  ;;  %v6355_v12 = vor.u32 %v8300_v10, %v6354_v9  ;;  %2402 = vmatpush.bf16.msra.mxu2 %v6099_v8 }
   0xa   :  { %v8100_v13 = vld [vmem:[%s12993_s1 + $0x19c] sm:$0xf0] }
   0xb   :  { %v5810_v14 = vld [vmem:[%s12993_s1 + $0x380] sm:$0xf]  ;;  %v5555_v16 = vor.u32 %v8100_v13, %v5554_v11  ;;  %2415 = vmatpush.bf16.msra.mxu3 %v6355_v12 }
   0xc   :  { %v8164_v15 = vld [vmem:[%s12993_s1 + $0x39c] sm:$0xf0] }
   0xd   :  { %v5811_v17 = vor.u32 %v8164_v15, %v5810_v14  ;;  %v6066_v18 = vld [vmem:[%s12993_s1 + $0x580] sm:$0xf]  ;;  %2377 = vmatpush.bf16.msra.mxu0 %v5555_v16 }
   0xe   :  { %v8228_v19 = vld [vmem:[%s12993_s1 + $0x59c] sm:$0xf0] }
   0xf   :  { %v6322_v20 = vld [vmem:[%s12993_s1 + $0x780] sm:$0xf]  ;;  %v6067_v21 = vor.u32 %v8228_v19, %v6066_v18  ;;  %2390 = vmatpush.bf16.msra.mxu1 %v5811_v17 }
  0x10   :  { %v8292_v22 = vld [vmem:[%s12993_s1 + $0x79c] sm:$0xf0] }
  0x11   :  { %v5522_v23 = vld [vmem:[%s12993_s1 + $0x140] sm:$0xf]  ;;  %v6323_v25 = vor.u32 %v8292_v22, %v6322_v20  ;;  %2403 = vmatpush.bf16.msra.mxu2 %v6067_v21 }
  0x12   :  { %v8092_v24 = vld [vmem:[%s12993_s1 + $0x15c] sm:$0xf0] }
  0x13   :  { %v5778_v26 = vld [vmem:[%s12993_s1 + $0x340] sm:$0xf]  ;;  %v5523_v29 = vor.u32 %v8092_v24, %v5522_v23  ;;  %2416 = vmatpush.bf16.msra.mxu3 %v6323_v25 }
  0x14   :  { %v8156_v27 = vld [vmem:[%s12993_s1 + $0x35c] sm:$0xf0] }
  0x15   :  { %v6034_v28 = vld [vmem:[%s12993_s1 + $0x540] sm:$0xf]  ;;  %v5779_v33 = vor.u32 %v8156_v27, %v5778_v26  ;;  %2378 = vmatpush.bf16.msra.mxu0 %v5523_v29 }
  0x16   :  { %v8220_v30 = vld [vmem:[%s12993_s1 + $0x55c] sm:$0xf0] }
  0x17   :  { %v6290_v31 = vld [vmem:[%s12993_s1 + $0x740] sm:$0xf]  ;;  %v6035_v34 = vor.u32 %v8220_v30, %v6034_v28  ;;  %2391 = vmatpush.bf16.msra.mxu1 %v5779_v33  ;;  %v8104_v33 = vld [vmem:[%s12993_s1 + $0x1c4] sm:$0xf] }
  0x18   :  { %v8284_v32 = vld [vmem:[%s12993_s1 + $0x75c] sm:$0xf0] }
  0x19   :  { %v5490_v35 = vld [vmem:[%s12993_s1 + $0x100] sm:$0xf]  ;;  %v6291_v38 = vor.u32 %v8284_v32, %v6290_v31  ;;  %2404 = vmatpush.bf16.msra.mxu2 %v6035_v34  ;;  %v5588_v34 = vld [vmem:[%s12993_s1 + $0x1e0] sm:$0xf0] }
  0x1a   :  { %v8084_v36 = vld [vmem:[%s12993_s1 + $0x11c] sm:$0xf0] }
  0x1b   :  { %v5746_v37 = vld [vmem:[%s12993_s1 + $0x300] sm:$0xf]  ;;  %v5491_v44 = vor.u32 %v8084_v36, %v5490_v35  ;;  %2417 = vmatpush.bf16.msra.mxu3 %v6291_v38  ;;  %v5844_v38 = vld [vmem:[%s12993_s1 + $0x3e0] sm:$0xf0] }
  0x1c   :  { %v8148_v39 = vld [vmem:[%s12993_s1 + $0x31c] sm:$0xf0] }
  0x1d   :  { %v6002_v40 = vld [vmem:[%s12993_s1 + $0x500] sm:$0xf]  ;;  %v5747_v45 = vor.u32 %v8148_v39, %v5746_v37  ;;  %2379 = vmatpush.bf16.msra.mxu0 %v5491_v44  ;;  %v8168_v37 = vld [vmem:[%s12993_s1 + $0x3c4] sm:$0xf] }
  0x1e   :  { %v8212_v41 = vld [vmem:[%s12993_s1 + $0x51c] sm:$0xf0] }
  0x1f   :  { %v6258_v42 = vld [vmem:[%s12993_s1 + $0x700] sm:$0xf]  ;;  %v6003_v46 = vor.u32 %v8212_v41, %v6002_v40  ;;  %2392 = vmatpush.bf16.msra.mxu1 %v5747_v45 }
  0x20   :  { %v8276_v43 = vld [vmem:[%s12993_s1 + $0x71c] sm:$0xf0] }
  0x21   :  { %v5458_v47 = vld [vmem:[%s12993_s1 + $0xc0] sm:$0xf]  ;;  %v6259_v50 = vor.u32 %v8276_v43, %v6258_v42  ;;  %2405 = vmatpush.bf16.msra.mxu2 %v6003_v46  ;;  %v5591_v42 = vor.u32 %v8104_v33, %v5588_v34  ;;  %v5847_v46 = vor.u32 %v8168_v37, %v5844_v38  ;;  %v5716_v33 = vld [vmem:[%s12993_s1 + $0x2e0] sm:$0xf0] }
  0x22   :  { %v8076_v48 = vld [vmem:[%s12993_s1 + $0xdc] sm:$0xf0] }
  0x23   :  { %v5714_v49 = vld [vmem:[%s12993_s1 + $0x2c0] sm:$0xf]  ;;  %v5459_v56 = vor.u32 %v8076_v48, %v5458_v47  ;;  %2418 = vmatpush.bf16.msra.mxu3 %v6259_v50  ;;  %v8096_v48 = vld [vmem:[%s12993_s1 + $0x184] sm:$0xf] }
  0x24   :  { %v8140_v51 = vld [vmem:[%s12993_s1 + $0x2dc] sm:$0xf0]  ;;  %v8160_v50 = vld [vmem:[%s12993_s1 + $0x384] sm:$0xf] }
  0x25   :  { %v5970_v52 = vld [vmem:[%s12993_s1 + $0x4c0] sm:$0xf]  ;;  %v5715_v57 = vor.u32 %v8140_v51, %v5714_v49  ;;  %2380 = vmatpush.bf16.msra.mxu0 %v5459_v56  ;;  %v5556_v49 = vld [vmem:[%s12993_s1 + $0x1a0] sm:$0xf0] }
  0x26   :  { %v8204_v53 = vld [vmem:[%s12993_s1 + $0x4dc] sm:$0xf0]  ;;  %v5812_v51 = vld [vmem:[%s12993_s1 + $0x3a0] sm:$0xf0] }
  0x27   :  { %v6226_v54 = vld [vmem:[%s12993_s1 + $0x6c0] sm:$0xf]  ;;  %v5971_v58 = vor.u32 %v8204_v53, %v5970_v52  ;;  %2393 = vmatpush.bf16.msra.mxu1 %v5715_v57 }
  0x28   :  { %v8268_v55 = vld [vmem:[%s12993_s1 + $0x6dc] sm:$0xf0] }
  0x29   :  { %v5426_v59 = vld [vmem:[%s12993_s1 + $0x80] sm:$0xf]  ;;  %v6227_v62 = vor.u32 %v8268_v55, %v6226_v54  ;;  %2406 = vmatpush.bf16.msra.mxu2 %v5971_v58  ;;  %v5559_v55 = vor.u32 %v8096_v48, %v5556_v49 }
  0x2a   :  { %v8068_v60 = vld [vmem:[%s12993_s1 + $0x9c] sm:$0xf0] }
  0x2b   :  { %v5682_v61 = vld [vmem:[%s12993_s1 + $0x280] sm:$0xf]  ;;  %v5427_v4 = vor.u32 %v8068_v60, %v5426_v59  ;;  %2419 = vmatpush.bf16.msra.mxu3 %v6227_v62  ;;  %v5815_v59 = vor.u32 %v8160_v50, %v5812_v51  ;;  %v8088_v60 = vld [vmem:[%s12993_s1 + $0x144] sm:$0xf] }
  0x2c   :  { %v8132_v63 = vld [vmem:[%s12993_s1 + $0x29c] sm:$0xf0]  ;;  %v8152_v62 = vld [vmem:[%s12993_s1 + $0x344] sm:$0xf] }
  0x2d   :  { %v5938_v0 = vld [vmem:[%s12993_s1 + $0x480] sm:$0xf]  ;;  %v5683_v5 = vor.u32 %v8132_v63, %v5682_v61  ;;  %2381 = vmatpush.bf16.msra.mxu0 %v5427_v4  ;;  %v5524_v61 = vld [vmem:[%s12993_s1 + $0x160] sm:$0xf0] }
  0x2e   :  { %v8196_v1 = vld [vmem:[%s12993_s1 + $0x49c] sm:$0xf0]  ;;  %v5780_v63 = vld [vmem:[%s12993_s1 + $0x360] sm:$0xf0]  ;;  %v5527_v4 = vor.u32 %v8088_v60, %v5524_v61 }
  0x2f   :  { %v6194_v2 = vld [vmem:[%s12993_s1 + $0x680] sm:$0xf]  ;;  %v5939_v6 = vor.u32 %v8196_v1, %v5938_v0  ;;  %2394 = vmatpush.bf16.msra.mxu1 %v5683_v5 }
  0x30   :  { %v8260_v3 = vld [vmem:[%s12993_s1 + $0x69c] sm:$0xf0] }
  0x31   :  { %v5394_v7 = vld [vmem:[%s12993_s1 + $0x40] sm:$0xf]  ;;  %v6195_v10 = vor.u32 %v8260_v3, %v6194_v2  ;;  %2407 = vmatpush.bf16.msra.mxu2 %v5939_v6  ;;  %v49_v3 = vld [vmem:[%s12994_s0 + $0x8] sm:$0xff] }
  0x32   :  { %v8060_v8 = vld [vmem:[%s12993_s1 + $0x5c] sm:$0xf0] }
  0x33   :  { %v5650_v9 = vld [vmem:[%s12993_s1 + $0x240] sm:$0xf]  ;;  %v5395_v16 = vor.u32 %v8060_v8, %v5394_v7  ;;  %2420 = vmatpush.bf16.msra.mxu3 %v6195_v10 }
  0x34   :  { %v8124_v11 = vld [vmem:[%s12993_s1 + $0x25c] sm:$0xf0] }
  0x35   :  { %v5906_v12 = vld [vmem:[%s12993_s1 + $0x440] sm:$0xf]  ;;  %v5651_v19 = vor.u32 %v8124_v11, %v5650_v9  ;;  %2382 = vmatpush.bf16.msra.mxu0 %v5395_v16  ;;  %v440_v9 = vunpack.c.l.b16 %v49_v3  ;;  %v5783_v11 = vor.u32 %v8152_v62, %v5780_v63  ;;  %v8144_v16 = vld [vmem:[%s12993_s1 + $0x304] sm:$0xf] }
  0x36   :  { %v8188_v13 = vld [vmem:[%s12993_s1 + $0x45c] sm:$0xf0] }
  0x37   :  { %v6162_v14 = vld [vmem:[%s12993_s1 + $0x640] sm:$0xf]  ;;  %v5907_v20 = vor.u32 %v8188_v13, %v5906_v12  ;;  %2395 = vmatpush.bf16.msra.mxu1 %v5651_v19  ;;  %v8080_v13 = vld [vmem:[%s12993_s1 + $0x104] sm:$0xf]  ;;  %v9067_v19 = vpack.c.b16 %v440_v9, %v440_v9 }
  0x38   :  { %v8252_v15 = vld [vmem:[%s12993_s1 + $0x65c] sm:$0xf0]  ;;  %v8296_v9 = vld [vmem:[%s12993_s1 + $0x7c4] sm:$0xf] }
  0x39   :  { %v5362_v17 = vld [vmem:[%s12993_s1] sm:$0xf]  ;;  %v6163_v24 = vor.u32 %v8252_v15, %v6162_v14  ;;  %2408 = vmatpush.bf16.msra.mxu2 %v5907_v20  ;;  %v5492_v14 = vld [vmem:[%s12993_s1 + $0x120] sm:$0xf0]  ;;  %v441_v15 = vunpack.c.h.b16 %v49_v3 }
  0x3a   :  { %v8052_v18 = vld [vmem:[%s12993_s1 + $0x1c] sm:$0xf0] }
  0x3b   :  { %v5618_v21 = vld [vmem:[%s12993_s1 + $0x200] sm:$0xf]  ;;  %v5363_v31 = vor.u32 %v8052_v18, %v5362_v17  ;;  %2421 = vmatpush.bf16.msra.mxu3 %v6163_v24  ;;  %v5748_v17 = vld [vmem:[%s12993_s1 + $0x320] sm:$0xf0]  ;;  %v5495_v24 = vor.u32 %v8080_v13, %v5492_v14 }
  0x3c   :  { %v8116_v22 = vld [vmem:[%s12993_s1 + $0x21c] sm:$0xf0]  ;;  %v6612_v13 = vld [vmem:[%s12993_s1 + $0x9e0] sm:$0xf0] }
  0x3d   :  { %v5874_v23 = vld [vmem:[%s12993_s1 + $0x400] sm:$0xf]  ;;  %v5619_v35 = vor.u32 %v8116_v22, %v5618_v21  ;;  %2383 = vmatpush.bf16.msra.mxu0 %v5363_v31  ;;  %v9071_v22 = vpack.c.b16 %v441_v15, %v441_v15  ;;  %v5460_v31 = vld [vmem:[%s12993_s1 + $0xe0] sm:$0xf0] }
  0x3e   :  { %v8180_v25 = vld [vmem:[%s12993_s1 + $0x41c] sm:$0xf0] }
  0x3f   :  { %v6130_v26 = vld [vmem:[%s12993_s1 + $0x600] sm:$0xf]  ;;  %v5875_v36 = vor.u32 %v8180_v25, %v5874_v23  ;;  %2396 = vmatpush.bf16.msra.mxu1 %v5619_v35 }
  0x40   :  { %v8244_v27 = vld [vmem:[%s12993_s1 + $0x61c] sm:$0xf0] }
  0x41   :  { %v6610_v28 = vld [vmem:[%s12993_s1 + $0x9c0] sm:$0xf]  ;;  %v6131_v39 = vor.u32 %v8244_v27, %v6130_v26  ;;  %2409 = vmatpush.bf16.msra.mxu2 %v5875_v36 }
  0x42   :  { %v8364_v29 = vld [vmem:[%s12993_s1 + $0x9dc] sm:$0xf0] }
  0x43   :  { %v6866_v30 = vld [vmem:[%s12993_s1 + $0xbc0] sm:$0xf]  ;;  %v6611_v40 = vor.u32 %v8364_v29, %v6610_v28  ;;  %2422 = vmatpush.bf16.msra.mxu3 %v6131_v39  ;;  %v5751_v28 = vor.u32 %v8144_v16, %v5748_v17  ;;  %v8424_v17 = vld [vmem:[%s12993_s1 + $0xbc4] sm:$0xf] }
  0x44   :  { %v8428_v32 = vld [vmem:[%s12993_s1 + $0xbdc] sm:$0xf0]  ;;  %2410 = vmatmul.bf16.vlgmr.msra.gmra.mxu2 %v9067_v19 }
  0x45   :  { %v6867_v41 = vor.u32 %v8428_v32, %v6866_v30  ;;  %v6578_v43 = vld [vmem:[%s12993_s1 + $0x980] sm:$0xf]  ;;  %2428 = vmatpush.bf16.msrb.mxu0 %v6611_v40  ;;  %2454 = vmatpush.bf16.msrb.mxu2 %v5591_v42  ;;  %v8072_v30 = vld [vmem:[%s12993_s1 + $0xc4] sm:$0xf] }
  0x46   :  { %v8356_v44 = vld [vmem:[%s12993_s1 + $0x99c] sm:$0xf0]  ;;  %v8136_v32 = vld [vmem:[%s12993_s1 + $0x2c4] sm:$0xf]  ;;  %2423 = vmatmul.bf16.vlgmr.msra.gmra.mxu3 %v9071_v22  ;;  %v5463_v36 = vor.u32 %v8072_v30, %v5460_v31 }
  0x47   :  { %v6834_v45 = vld [vmem:[%s12993_s1 + $0xb80] sm:$0xf]  ;;  %v6579_v52 = vor.u32 %v8356_v44, %v6578_v43  ;;  %2441 = vmatpush.bf16.msrb.mxu1 %v6867_v41  ;;  %2467 = vmatpush.bf16.msrb.mxu3 %v5847_v46  ;;  %v5719_v40 = vor.u32 %v8136_v32, %v5716_v33  ;;  %v8064_v42 = vld [vmem:[%s12993_s1 + $0x84] sm:$0xf] }
  0x48   :  { %v8420_v47 = vld [vmem:[%s12993_s1 + $0xb9c] sm:$0xf0]  ;;  %v5428_v43 = vld [vmem:[%s12993_s1 + $0xa0] sm:$0xf0] }
  0x49   :  { %v6546_v53 = vld [vmem:[%s12993_s1 + $0x940] sm:$0xf]  ;;  %v6835_v54 = vor.u32 %v8420_v47, %v6834_v45  ;;  %2429 = vmatpush.bf16.msrb.mxu0 %v6579_v52  ;;  %2455 = vmatpush.bf16.msrb.mxu2 %v5559_v55  ;;  %v8128_v44 = vld [vmem:[%s12993_s1 + $0x284] sm:$0xf]  ;;  %v5431_v48 = vor.u32 %v8064_v42, %v5428_v43 }
  0x4a   :  { %v8348_v56 = vld [vmem:[%s12993_s1 + $0x95c] sm:$0xf0]  ;;  %v5684_v45 = vld [vmem:[%s12993_s1 + $0x2a0] sm:$0xf0] }
  0x4b   :  { %v6802_v57 = vld [vmem:[%s12993_s1 + $0xb40] sm:$0xf]  ;;  %v6547_v0 = vor.u32 %v8348_v56, %v6546_v53  ;;  %2442 = vmatpush.bf16.msrb.mxu1 %v6835_v54  ;;  %2468 = vmatpush.bf16.msrb.mxu3 %v5815_v59  ;;  %v5687_v52 = vor.u32 %v8128_v44, %v5684_v45  ;;  %v8056_v54 = vld [vmem:[%s12993_s1 + $0x44] sm:$0xf] }
  0x4c   :  { %v8412_v58 = vld [vmem:[%s12993_s1 + $0xb5c] sm:$0xf0]  ;;  %v5396_v55 = vld [vmem:[%s12993_s1 + $0x60] sm:$0xf0] }
  0x4d   :  { %v6803_v1 = vor.u32 %v8412_v58, %v6802_v57  ;;  %v48_v2 = vld [vmem:[%s12994_s0] sm:$0xff]  ;;  %2430 = vmatpush.bf16.msrb.mxu0 %v6547_v0  ;;  %2456 = vmatpush.bf16.msrb.mxu2 %v5527_v4  ;;  %v5399_v63 = vor.u32 %v8056_v54, %v5396_v55 }
  0x4e   :  { %v6514_v5 = vld [vmem:[%s12993_s1 + $0x900] sm:$0xf]  ;;  %v438_v8 = vunpack.c.l.b16 %v48_v2  ;;  %v439_v10 = vunpack.c.h.b16 %v48_v2  ;;  %v8120_v56 = vld [vmem:[%s12993_s1 + $0x244] sm:$0xf]  ;;  %v50_v2 = vld [vmem:[%s12994_s0 + $0x10] sm:$0xff] }
  0x4f   :  { %v8340_v6 = vld [vmem:[%s12993_s1 + $0x91c] sm:$0xf0]  ;;  %2443 = vmatpush.bf16.msrb.mxu1 %v6803_v1  ;;  %2469 = vmatpush.bf16.msrb.mxu3 %v5783_v11  ;;  %v5652_v57 = vld [vmem:[%s12993_s1 + $0x260] sm:$0xf0]  ;;  %v442_v14 = vunpack.c.l.b16 %v50_v2 }
  0x50   :  { %v6770_v7 = vld [vmem:[%s12993_s1 + $0xb00] sm:$0xf]  ;;  %v9065_v18 = vpack.c.b16 %v438_v8, %v438_v8  ;;  %v9069_v20 = vpack.c.b16 %v439_v10, %v439_v10  ;;  %v6515_v21 = vor.u32 %v8340_v6, %v6514_v5  ;;  %v8048_v1 = vld [vmem:[%s12993_s1 + $0x4] sm:$0xf]  ;;  %v5655_v3 = vor.u32 %v8120_v56, %v5652_v57 }
  0x51   :  { %v8404_v12 = vld [vmem:[%s12993_s1 + $0xb1c] sm:$0xf0]  ;;  %2457 = vmatpush.bf16.msrb.mxu2 %v5495_v24  ;;  %v5364_v4 = vld [vmem:[%s12993_s1 + $0x20] sm:$0xf0] }
  0x52   :  { %v6771_v23 = vor.u32 %v8404_v12, %v6770_v7  ;;  %v6482_v25 = vld [vmem:[%s12993_s1 + $0x8c0] sm:$0xf]  ;;  %2384 = vmatmul.bf16.vlgmr.msra.gmra.mxu0 %v9065_v18  ;;  %2397 = vmatmul.bf16.vlgmr.msra.gmra.mxu1 %v9069_v20  ;;  %v8112_v5 = vld [vmem:[%s12993_s1 + $0x204] sm:$0xf]  ;;  %v5367_v16 = vor.u32 %v8048_v1, %v5364_v4 }
  0x53   :  { %v8332_v26 = vld [vmem:[%s12993_s1 + $0x8dc] sm:$0xf0]  ;;  %2431 = vmatpush.bf16.msrb.mxu0 %v6515_v21  ;;  %2470 = vmatpush.bf16.msrb.mxu3 %v5751_v28  ;;  %v5620_v6 = vld [vmem:[%s12993_s1 + $0x220] sm:$0xf0] }
  0x54   :  { %v6738_v27 = vld [vmem:[%s12993_s1 + $0xac0] sm:$0xf]  ;;  %v6483_v34 = vor.u32 %v8332_v26, %v6482_v25  ;;  %2444 = vmatpush.bf16.msrb.mxu1 %v6771_v23  ;;  %v8232_v7 = vld [vmem:[%s12993_s1 + $0x5c4] sm:$0xf]  ;;  %v443_v23 = vunpack.c.h.b16 %v50_v2  ;;  %v5623_v24 = vor.u32 %v8112_v5, %v5620_v6 }
  0x55   :  { %v8396_v29 = vld [vmem:[%s12993_s1 + $0xadc] sm:$0xf0]  ;;  %2458 = vmatpush.bf16.msrb.mxu2 %v5463_v36  ;;  %v6100_v8 = vld [vmem:[%s12993_s1 + $0x5e0] sm:$0xf0] }
  0x56   :  { %v6739_v35 = vor.u32 %v8396_v29, %v6738_v27  ;;  %v6450_v37 = vld [vmem:[%s12993_s1 + $0x880] sm:$0xf]  ;;  %v6356_v11 = vld [vmem:[%s12993_s1 + $0x7e0] sm:$0xf0]  ;;  %v6103_v25 = vor.u32 %v8232_v7, %v6100_v8 }
  0x57   :  { %v8324_v38 = vld [vmem:[%s12993_s1 + $0x89c] sm:$0xf0]  ;;  %2432 = vmatpush.bf16.msrb.mxu0 %v6483_v34  ;;  %2471 = vmatpush.bf16.msrb.mxu3 %v5719_v40  ;;  %v8360_v12 = vld [vmem:[%s12993_s1 + $0x9c4] sm:$0xf]  ;;  %v6359_v26 = vor.u32 %v8296_v9, %v6356_v11 }
  0x58   :  { %v6706_v39 = vld [vmem:[%s12993_s1 + $0xa80] sm:$0xf]  ;;  %v6451_v46 = vor.u32 %v8324_v38, %v6450_v37  ;;  %2445 = vmatpush.bf16.msrb.mxu1 %v6739_v35  ;;  %v6868_v21 = vld [vmem:[%s12993_s1 + $0xbe0] sm:$0xf0]  ;;  %v6615_v27 = vor.u32 %v8360_v12, %v6612_v13  ;;  %v9218_v35 = vpack.c.b16 %v442_v14, %v442_v14  ;;  %v9226_v38 = vpack.c.b16 %v443_v23, %v443_v23 }
  0x59   :  { %v8388_v41 = vld [vmem:[%s12993_s1 + $0xa9c] sm:$0xf0]  ;;  %2459 = vmatpush.bf16.msrb.mxu2 %v5431_v48  ;;  %v8224_v28 = vld [vmem:[%s12993_s1 + $0x584] sm:$0xf]  ;;  %v6871_v31 = vor.u32 %v8424_v17, %v6868_v21 }
  0x5a   :  { %v6707_v47 = vor.u32 %v8388_v41, %v6706_v39  ;;  %v6418_v49 = vld [vmem:[%s12993_s1 + $0x840] sm:$0xf]  ;;  %v6068_v29 = vld [vmem:[%s12993_s1 + $0x5a0] sm:$0xf0] }
  0x5b   :  { %v8316_v50 = vld [vmem:[%s12993_s1 + $0x85c] sm:$0xf0]  ;;  %2433 = vmatpush.bf16.msrb.mxu0 %v6451_v46  ;;  %2472 = vmatpush.bf16.msrb.mxu3 %v5687_v52  ;;  %v8288_v30 = vld [vmem:[%s12993_s1 + $0x784] sm:$0xf]  ;;  %v6071_v39 = vor.u32 %v8224_v28, %v6068_v29 }
  0x5c   :  { %v6674_v51 = vld [vmem:[%s12993_s1 + $0xa40] sm:$0xf]  ;;  %v6419_v58 = vor.u32 %v8316_v50, %v6418_v49  ;;  %2446 = vmatpush.bf16.msrb.mxu1 %v6707_v47  ;;  %v6324_v32 = vld [vmem:[%s12993_s1 + $0x7a0] sm:$0xf0] }
  0x5d   :  { %v8380_v53 = vld [vmem:[%s12993_s1 + $0xa5c] sm:$0xf0]  ;;  %2460 = vmatpush.bf16.msrb.mxu2 %v5399_v63  ;;  %v8352_v33 = vld [vmem:[%s12993_s1 + $0x984] sm:$0xf]  ;;  %v6327_v40 = vor.u32 %v8288_v30, %v6324_v32 }
  0x5e   :  { %v6386_v59 = vld [vmem:[%s12993_s1 + $0x800] sm:$0xf]  ;;  %v6675_v62 = vor.u32 %v8380_v53, %v6674_v51  ;;  %v6580_v34 = vld [vmem:[%s12993_s1 + $0x9a0] sm:$0xf0] }
  0x5f   :  { %v8308_v60 = vld [vmem:[%s12993_s1 + $0x81c] sm:$0xf0]  ;;  %2434 = vmatpush.bf16.msrb.mxu0 %v6419_v58  ;;  %2473 = vmatpush.bf16.msrb.mxu3 %v5655_v3  ;;  %v8416_v36 = vld [vmem:[%s12993_s1 + $0xb84] sm:$0xf]  ;;  %v6583_v41 = vor.u32 %v8352_v33, %v6580_v34 }
  0x60   :  { %v6642_v61 = vld [vmem:[%s12993_s1 + $0xa00] sm:$0xf]  ;;  %v6387_v10 = vor.u32 %v8308_v60, %v6386_v59  ;;  %2447 = vmatpush.bf16.msrb.mxu1 %v6675_v62  ;;  %v6836_v37 = vld [vmem:[%s12993_s1 + $0xba0] sm:$0xf0] }
  0x61   :  { %v8372_v0 = vld [vmem:[%s12993_s1 + $0xa1c] sm:$0xf0]  ;;  %2461 = vmatpush.bf16.msrb.mxu2 %v5367_v16  ;;  %v8216_v42 = vld [vmem:[%s12993_s1 + $0x544] sm:$0xf]  ;;  %v6839_v45 = vor.u32 %v8416_v36, %v6836_v37 }
  0x62   :  { %v6643_v15 = vor.u32 %v8372_v0, %v6642_v61  ;;  %v6036_v43 = vld [vmem:[%s12993_s1 + $0x560] sm:$0xf0] }
  0x63   :  { %2435 = vmatpush.bf16.msrb.mxu0 %v6387_v10  ;;  %2474 = vmatpush.bf16.msrb.mxu3 %v5623_v24  ;;  %v8280_v44 = vld [vmem:[%s12993_s1 + $0x744] sm:$0xf]  ;;  %v6039_v51 = vor.u32 %v8216_v42, %v6036_v43 }
  0x64   :  { %2448 = vmatpush.bf16.msrb.mxu1 %v6643_v15  ;;  %v6292_v46 = vld [vmem:[%s12993_s1 + $0x760] sm:$0xf0]  ;;  %2462 = vmatmul.bf16.vlgmr.msrb.gmra.mxu2 %v9065_v18 }
  0x65   :  { %2506 = vmatpush.bf16.msra.mxu2 %v6615_v27  ;;  %v8344_v47 = vld [vmem:[%s12993_s1 + $0x944] sm:$0xf]  ;;  %v6295_v52 = vor.u32 %v8280_v44, %v6292_v46 }
  0x66   :  { %2436 = vmatmul.bf16.vlgmr.msrb.gmra.mxu0 %v9218_v35  ;;  %v6548_v48 = vld [vmem:[%s12993_s1 + $0x960] sm:$0xf0]  ;;  %2475 = vmatmul.bf16.vlgmr.msrb.gmra.mxu3 %v9069_v20 }
  0x67   :  { %2480 = vmatpush.bf16.msra.mxu0 %v6103_v25  ;;  %2519 = vmatpush.bf16.msra.mxu3 %v6871_v31  ;;  %v8408_v49 = vld [vmem:[%s12993_s1 + $0xb44] sm:$0xf]  ;;  %v6551_v53 = vor.u32 %v8344_v47, %v6548_v48 }
  0x68   :  { %2493 = vmatpush.bf16.msra.mxu1 %v6359_v26  ;;  %v6804_v50 = vld [vmem:[%s12993_s1 + $0xb60] sm:$0xf0] }
  0x69   :  { %2449 = vmatmul.bf16.vlgmr.msrb.gmra.mxu1 %v9226_v38  ;;  %2507 = vmatpush.bf16.msra.mxu2 %v6583_v41  ;;  %v8208_v54 = vld [vmem:[%s12993_s1 + $0x504] sm:$0xf]  ;;  %v6807_v57 = vor.u32 %v8408_v49, %v6804_v50 }
  0x6a   :  { %v6004_v55 = vld [vmem:[%s12993_s1 + $0x520] sm:$0xf0] }
  0x6b   :  { %2481 = vmatpush.bf16.msra.mxu0 %v6071_v39  ;;  %v8272_v56 = vld [vmem:[%s12993_s1 + $0x704] sm:$0xf]  ;;  %2520 = vmatpush.bf16.msra.mxu3 %v6839_v45  ;;  %v6007_v63 = vor.u32 %v8208_v54, %v6004_v55  ;;  %v8109_v54 = vld [vmem:[%s12993_s1 + $0x1e4] sm:$0xf0] }
  0x6c   :  { %2494 = vmatpush.bf16.msra.mxu1 %v6327_v40  ;;  %v6260_v58 = vld [vmem:[%s12993_s1 + $0x720] sm:$0xf0]  ;;  %v5850_v55 = vld [vmem:[%s12993_s1 + $0x3c8] sm:$0xf] }
  0x6d   :  { %v8336_v59 = vld [vmem:[%s12993_s1 + $0x904] sm:$0xf]  ;;  %2508 = vmatpush.bf16.msra.mxu2 %v6551_v53  ;;  %v6263_v0 = vor.u32 %v8272_v56, %v6260_v58  ;;  %v5594_v53 = vld [vmem:[%s12993_s1 + $0x1c8] sm:$0xf] }
  0x6e   :  { %v6516_v60 = vld [vmem:[%s12993_s1 + $0x920] sm:$0xf0]  ;;  %v6106_v58 = vld [vmem:[%s12993_s1 + $0x5c8] sm:$0xf] }
  0x6f   :  { %v8400_v61 = vld [vmem:[%s12993_s1 + $0xb04] sm:$0xf]  ;;  %2482 = vmatpush.bf16.msra.mxu0 %v6039_v51  ;;  %v6519_v1 = vor.u32 %v8336_v59, %v6516_v60  ;;  %2521 = vmatpush.bf16.msra.mxu3 %v6807_v57  ;;  %v8173_v57 = vld [vmem:[%s12993_s1 + $0x3e4] sm:$0xf0] }
  0x70   :  { %v6772_v62 = vld [vmem:[%s12993_s1 + $0xb20] sm:$0xf0]  ;;  %2495 = vmatpush.bf16.msra.mxu1 %v6295_v52  ;;  %v8237_v59 = vld [vmem:[%s12993_s1 + $0x5e4] sm:$0xf0] }
  0x71   :  { %v8200_v2 = vld [vmem:[%s12993_s1 + $0x4c4] sm:$0xf]  ;;  %v6775_v5 = vor.u32 %v8400_v61, %v6772_v62  ;;  %2509 = vmatpush.bf16.msra.mxu2 %v6519_v1  ;;  %v6362_v62 = vld [vmem:[%s12993_s1 + $0x7c8] sm:$0xf]  ;;  %v5595_v1 = vor.u32 %v8109_v54, %v5594_v53 }
  0x72   :  { %v5972_v3 = vld [vmem:[%s12993_s1 + $0x4e0] sm:$0xf0]  ;;  %v6234_v53 = vld [vmem:[%s12993_s1 + $0x6c8] sm:$0xf] }
  0x73   :  { %v8264_v4 = vld [vmem:[%s12993_s1 + $0x6c4] sm:$0xf]  ;;  %2483 = vmatpush.bf16.msra.mxu0 %v6007_v63  ;;  %v5975_v11 = vor.u32 %v8200_v2, %v5972_v3  ;;  %2522 = vmatpush.bf16.msra.mxu3 %v6775_v5  ;;  %v8301_v63 = vld [vmem:[%s12993_s1 + $0x7e4] sm:$0xf0]  ;;  %v5851_v2 = vor.u32 %v8173_v57, %v5850_v55  ;;  %v6107_v3 = vor.u32 %v8237_v59, %v6106_v58 }
  0x74   :  { %v6228_v6 = vld [vmem:[%s12993_s1 + $0x6e0] sm:$0xf0]  ;;  %2496 = vmatpush.bf16.msra.mxu1 %v6263_v0  ;;  %v8101_v5 = vld [vmem:[%s12993_s1 + $0x1a4] sm:$0xf0] }
  0x75   :  { %v8328_v7 = vld [vmem:[%s12993_s1 + $0x8c4] sm:$0xf]  ;;  %v6231_v12 = vor.u32 %v8264_v4, %v6228_v6  ;;  %v5562_v4 = vld [vmem:[%s12993_s1 + $0x188] sm:$0xf] }
  0x76   :  { %v6484_v8 = vld [vmem:[%s12993_s1 + $0x8e0] sm:$0xf0]  ;;  %v5818_v6 = vld [vmem:[%s12993_s1 + $0x388] sm:$0xf] }
  0x77   :  { %v8392_v9 = vld [vmem:[%s12993_s1 + $0xac4] sm:$0xf]  ;;  %v6487_v13 = vor.u32 %v8328_v7, %v6484_v8  ;;  %2484 = vmatpush.bf16.msra.mxu0 %v5975_v11  ;;  %v6363_v7 = vor.u32 %v8301_v63, %v6362_v62  ;;  %v8165_v8 = vld [vmem:[%s12993_s1 + $0x3a4] sm:$0xf0] }
  0x78   :  { %v6740_v10 = vld [vmem:[%s12993_s1 + $0xae0] sm:$0xf0]  ;;  %2497 = vmatpush.bf16.msra.mxu1 %v6231_v12  ;;  %v6330_v11 = vld [vmem:[%s12993_s1 + $0x788] sm:$0xf] }
  0x79   :  { %v8192_v14 = vld [vmem:[%s12993_s1 + $0x484] sm:$0xf]  ;;  %v6743_v17 = vor.u32 %v8392_v9, %v6740_v10  ;;  %2510 = vmatpush.bf16.msra.mxu2 %v6487_v13  ;;  %v6074_v9 = vld [vmem:[%s12993_s1 + $0x588] sm:$0xf]  ;;  %v5563_v13 = vor.u32 %v8101_v5, %v5562_v4 }
  0x7a   :  { %v5940_v15 = vld [vmem:[%s12993_s1 + $0x4a0] sm:$0xf0]  ;;  %v8229_v10 = vld [vmem:[%s12993_s1 + $0x5a4] sm:$0xf0] }
  0x7b   :  { %v8256_v16 = vld [vmem:[%s12993_s1 + $0x684] sm:$0xf]  ;;  %v5943_v27 = vor.u32 %v8192_v14, %v5940_v15  ;;  %2523 = vmatpush.bf16.msra.mxu3 %v6743_v17  ;;  %v8293_v12 = vld [vmem:[%s12993_s1 + $0x7a4] sm:$0xf0]  ;;  %v5819_v14 = vor.u32 %v8165_v8, %v5818_v6  ;;  %v6075_v15 = vor.u32 %v8229_v10, %v6074_v9 }
  0x7c   :  { %v6196_v21 = vld [vmem:[%s12993_s1 + $0x6a0] sm:$0xf0]  ;;  %v8093_v17 = vld [vmem:[%s12993_s1 + $0x164] sm:$0xf0] }
  0x7d   :  { %v8320_v23 = vld [vmem:[%s12993_s1 + $0x884] sm:$0xf]  ;;  %v6199_v28 = vor.u32 %v8256_v16, %v6196_v21  ;;  %2485 = vmatpush.bf16.msra.mxu0 %v5943_v27  ;;  %v5530_v16 = vld [vmem:[%s12993_s1 + $0x148] sm:$0xf] }
  0x7e   :  { %v6452_v24 = vld [vmem:[%s12993_s1 + $0x8a0] sm:$0xf0]  ;;  %v5786_v21 = vld [vmem:[%s12993_s1 + $0x348] sm:$0xf] }
  0x7f   :  { %v8384_v25 = vld [vmem:[%s12993_s1 + $0xa84] sm:$0xf]  ;;  %v6455_v29 = vor.u32 %v8320_v23, %v6452_v24  ;;  %2498 = vmatpush.bf16.msra.mxu1 %v6199_v28  ;;  %v6331_v23 = vor.u32 %v8293_v12, %v6330_v11  ;;  %v8157_v24 = vld [vmem:[%s12993_s1 + $0x364] sm:$0xf0] }
  0x80   :  { %v6708_v26 = vld [vmem:[%s12993_s1 + $0xaa0] sm:$0xf0]  ;;  %v6298_v27 = vld [vmem:[%s12993_s1 + $0x748] sm:$0xf] }
  0x81   :  { %v8184_v30 = vld [vmem:[%s12993_s1 + $0x444] sm:$0xf]  ;;  %v6711_v33 = vor.u32 %v8384_v25, %v6708_v26  ;;  %2511 = vmatpush.bf16.msra.mxu2 %v6455_v29  ;;  %v6042_v25 = vld [vmem:[%s12993_s1 + $0x548] sm:$0xf]  ;;  %v5531_v29 = vor.u32 %v8093_v17, %v5530_v16 }
  0x82   :  { %v5908_v31 = vld [vmem:[%s12993_s1 + $0x460] sm:$0xf0]  ;;  %v8221_v26 = vld [vmem:[%s12993_s1 + $0x564] sm:$0xf0] }
  0x83   :  { %v8248_v32 = vld [vmem:[%s12993_s1 + $0x644] sm:$0xf]  ;;  %v5911_v41 = vor.u32 %v8184_v30, %v5908_v31  ;;  %2524 = vmatpush.bf16.msra.mxu3 %v6711_v33  ;;  %v8285_v28 = vld [vmem:[%s12993_s1 + $0x764] sm:$0xf0]  ;;  %v5787_v30 = vor.u32 %v8157_v24, %v5786_v21  ;;  %v6043_v31 = vor.u32 %v8221_v26, %v6042_v25 }
  0x84   :  { %v6164_v34 = vld [vmem:[%s12993_s1 + $0x660] sm:$0xf0]  ;;  %v8085_v33 = vld [vmem:[%s12993_s1 + $0x124] sm:$0xf0] }
  0x85   :  { %v8312_v36 = vld [vmem:[%s12993_s1 + $0x844] sm:$0xf]  ;;  %v6167_v44 = vor.u32 %v8248_v32, %v6164_v34  ;;  %2486 = vmatpush.bf16.msra.mxu0 %v5911_v41  ;;  %v5498_v32 = vld [vmem:[%s12993_s1 + $0x108] sm:$0xf] }
  0x86   :  { %v6420_v37 = vld [vmem:[%s12993_s1 + $0x860] sm:$0xf0]  ;;  %v5754_v34 = vld [vmem:[%s12993_s1 + $0x308] sm:$0xf] }
  0x87   :  { %v8376_v39 = vld [vmem:[%s12993_s1 + $0xa44] sm:$0xf]  ;;  %v6423_v45 = vor.u32 %v8312_v36, %v6420_v37  ;;  %2499 = vmatpush.bf16.msra.mxu1 %v6167_v44  ;;  %v6299_v36 = vor.u32 %v8285_v28, %v6298_v27  ;;  %v8149_v37 = vld [vmem:[%s12993_s1 + $0x324] sm:$0xf0] }
  0x88   :  { %v6676_v40 = vld [vmem:[%s12993_s1 + $0xa60] sm:$0xf0]  ;;  %v6266_v41 = vld [vmem:[%s12993_s1 + $0x708] sm:$0xf]  ;;  %v5755_v44 = vor.u32 %v8149_v37, %v5754_v34  ;;  %v8105_v37 = vld [vmem:[%s12993_s1 + $0x1cc] sm:$0xf] }
  0x89   :  { %v8176_v42 = vld [vmem:[%s12993_s1 + $0x404] sm:$0xf]  ;;  %v6679_v49 = vor.u32 %v8376_v39, %v6676_v40  ;;  %2512 = vmatpush.bf16.msra.mxu2 %v6423_v45  ;;  %v6010_v39 = vld [vmem:[%s12993_s1 + $0x508] sm:$0xf] }
  0x8a   :  { %v5876_v43 = vld [vmem:[%s12993_s1 + $0x420] sm:$0xf0]  ;;  %v8213_v40 = vld [vmem:[%s12993_s1 + $0x524] sm:$0xf0] }
  0x8b   :  { %v8240_v46 = vld [vmem:[%s12993_s1 + $0x604] sm:$0xf]  ;;  %v5879_v56 = vor.u32 %v8176_v42, %v5876_v43  ;;  %2525 = vmatpush.bf16.msra.mxu3 %v6679_v49  ;;  %v8277_v42 = vld [vmem:[%s12993_s1 + $0x724] sm:$0xf0]  ;;  %v5499_v43 = vor.u32 %v8085_v33, %v5498_v32  ;;  %v6011_v45 = vor.u32 %v8213_v40, %v6010_v39  ;;  %v5596_v39 = vld [vmem:[%s12993_s1 + $0x1e8] sm:$0xf0] }
  0x8c   :  { %v6132_v47 = vld [vmem:[%s12993_s1 + $0x620] sm:$0xf0]  ;;  %v6267_v49 = vor.u32 %v8277_v42, %v6266_v41  ;;  %v8269_v54 = vld [vmem:[%s12993_s1 + $0x6e4] sm:$0xf0]  ;;  %v8169_v42 = vld [vmem:[%s12993_s1 + $0x3cc] sm:$0xf] }
  0x8d   :  { %v8304_v48 = vld [vmem:[%s12993_s1 + $0x804] sm:$0xf]  ;;  %v6135_v60 = vor.u32 %v8240_v46, %v6132_v47  ;;  %2487 = vmatpush.bf16.msra.mxu0 %v5879_v56  ;;  %v5466_v46 = vld [vmem:[%s12993_s1 + $0xc8] sm:$0xf] }
  0x8e   :  { %v6388_v50 = vld [vmem:[%s12993_s1 + $0x820] sm:$0xf0]  ;;  %v8077_v47 = vld [vmem:[%s12993_s1 + $0xe4] sm:$0xf0] }
  0x8f   :  { %v8368_v51 = vld [vmem:[%s12993_s1 + $0xa04] sm:$0xf]  ;;  %v6391_v61 = vor.u32 %v8304_v48, %v6388_v50  ;;  %2500 = vmatpush.bf16.msra.mxu1 %v6135_v60  ;;  %v5722_v48 = vld [vmem:[%s12993_s1 + $0x2c8] sm:$0xf]  ;;  %v5467_v55 = vor.u32 %v8077_v47, %v5466_v46  ;;  %v5599_v47 = vor.u32 %v8105_v37, %v5596_v39 }
  0x90   :  { %v6644_v52 = vld [vmem:[%s12993_s1 + $0xa20] sm:$0xf0]  ;;  %2488 = vmatmul.bf16.vlgmr.msra.gmra.mxu0 %v9067_v19  ;;  %v8141_v50 = vld [vmem:[%s12993_s1 + $0x2e4] sm:$0xf0] }
  0x91   :  { %v6647_v0 = vor.u32 %v8368_v51, %v6644_v52  ;;  %2513 = vmatpush.bf16.msra.mxu2 %v6391_v61  ;;  %2532 = vmatpush.bf16.msrb.mxu0 %v5595_v1  ;;  %v5978_v51 = vld [vmem:[%s12993_s1 + $0x4c8] sm:$0xf]  ;;  %v5723_v56 = vor.u32 %v8141_v50, %v5722_v48  ;;  %v6235_v61 = vor.u32 %v8269_v54, %v6234_v53  ;;  %v8097_v53 = vld [vmem:[%s12993_s1 + $0x18c] sm:$0xf] }
  0x92   :  { %2501 = vmatmul.bf16.vlgmr.msra.gmra.mxu1 %v9071_v22  ;;  %v8205_v52 = vld [vmem:[%s12993_s1 + $0x4e4] sm:$0xf0]  ;;  %v5564_v54 = vld [vmem:[%s12993_s1 + $0x1a8] sm:$0xf0] }
  0x93   :  { %2526 = vmatpush.bf16.msra.mxu3 %v6647_v0  ;;  %2545 = vmatpush.bf16.msrb.mxu1 %v5851_v2  ;;  %v5979_v57 = vor.u32 %v8205_v52, %v5978_v51  ;;  %v5434_v58 = vld [vmem:[%s12993_s1 + $0x88] sm:$0xf] }
  0x94   :  { %2514 = vmatmul.bf16.vlgmr.msra.gmra.mxu2 %v9218_v35  ;;  %v8069_v59 = vld [vmem:[%s12993_s1 + $0xa4] sm:$0xf0] }
  0x95   :  { %2558 = vmatpush.bf16.msrb.mxu2 %v6107_v3  ;;  %2533 = vmatpush.bf16.msrb.mxu0 %v5563_v13  ;;  %v5690_v60 = vld [vmem:[%s12993_s1 + $0x288] sm:$0xf]  ;;  %v5435_v3 = vor.u32 %v8069_v59, %v5434_v58  ;;  %v5567_v59 = vor.u32 %v8097_v53, %v5564_v54 }
  0x96   :  { %2527 = vmatmul.bf16.vlgmr.msra.gmra.mxu3 %v9226_v38  ;;  %v8133_v62 = vld [vmem:[%s12993_s1 + $0x2a4] sm:$0xf0] }
  0x97   :  { %2571 = vmatpush.bf16.msrb.mxu3 %v6363_v7  ;;  %2546 = vmatpush.bf16.msrb.mxu1 %v5819_v14  ;;  %v5946_v63 = vld [vmem:[%s12993_s1 + $0x488] sm:$0xf]  ;;  %v5691_v4 = vor.u32 %v8133_v62, %v5690_v60 }
  0x98   :  { %v8197_v0 = vld [vmem:[%s12993_s1 + $0x4a4] sm:$0xf0] }
  0x99   :  { %2559 = vmatpush.bf16.msrb.mxu2 %v6075_v15  ;;  %2534 = vmatpush.bf16.msrb.mxu0 %v5531_v29  ;;  %v6202_v1 = vld [vmem:[%s12993_s1 + $0x688] sm:$0xf]  ;;  %v5947_v5 = vor.u32 %v8197_v0, %v5946_v63 }
  0x9a   :  { %v8261_v2 = vld [vmem:[%s12993_s1 + $0x6a4] sm:$0xf0] }
  0x9b   :  { %2572 = vmatpush.bf16.msrb.mxu3 %v6331_v23  ;;  %2547 = vmatpush.bf16.msrb.mxu1 %v5787_v30  ;;  %v5402_v6 = vld [vmem:[%s12993_s1 + $0x48] sm:$0xf]  ;;  %v6203_v9 = vor.u32 %v8261_v2, %v6202_v1  ;;  %v8089_v1 = vld [vmem:[%s12993_s1 + $0x14c] sm:$0xf] }
  0x9c   :  { %v8061_v7 = vld [vmem:[%s12993_s1 + $0x64] sm:$0xf0]  ;;  %v5532_v2 = vld [vmem:[%s12993_s1 + $0x168] sm:$0xf0] }
  0x9d   :  { %2560 = vmatpush.bf16.msrb.mxu2 %v6043_v31  ;;  %2535 = vmatpush.bf16.msrb.mxu0 %v5499_v43  ;;  %v5658_v8 = vld [vmem:[%s12993_s1 + $0x248] sm:$0xf]  ;;  %v5403_v15 = vor.u32 %v8061_v7, %v5402_v6  ;;  %v5852_v43 = vld [vmem:[%s12993_s1 + $0x3e8] sm:$0xf0]  ;;  %v5535_v7 = vor.u32 %v8089_v1, %v5532_v2 }
  0x9e   :  { %v8125_v10 = vld [vmem:[%s12993_s1 + $0x264] sm:$0xf0]  ;;  %v5855_v51 = vor.u32 %v8169_v42, %v5852_v43  ;;  %v8065_v43 = vld [vmem:[%s12993_s1 + $0x8c] sm:$0xf] }
  0x9f   :  { %2573 = vmatpush.bf16.msrb.mxu3 %v6299_v36  ;;  %2548 = vmatpush.bf16.msrb.mxu1 %v5755_v44  ;;  %v5914_v11 = vld [vmem:[%s12993_s1 + $0x448] sm:$0xf]  ;;  %v5659_v21 = vor.u32 %v8125_v10, %v5658_v8  ;;  %v8049_v2 = vld [vmem:[%s12993_s1 + $0xc] sm:$0xf] }
  0xa0   :  { %v8189_v12 = vld [vmem:[%s12993_s1 + $0x464] sm:$0xf0] }
  0xa1   :  { %2561 = vmatpush.bf16.msrb.mxu2 %v6011_v45  ;;  %2536 = vmatpush.bf16.msrb.mxu0 %v5467_v55  ;;  %v6170_v13 = vld [vmem:[%s12993_s1 + $0x648] sm:$0xf]  ;;  %v5915_v23 = vor.u32 %v8189_v12, %v5914_v11  ;;  %v8161_v55 = vld [vmem:[%s12993_s1 + $0x38c] sm:$0xf] }
  0xa2   :  { %v8253_v14 = vld [vmem:[%s12993_s1 + $0x664] sm:$0xf0] }
  0xa3   :  { %2574 = vmatpush.bf16.msrb.mxu3 %v6267_v49  ;;  %2549 = vmatpush.bf16.msrb.mxu1 %v5723_v56  ;;  %v5370_v16 = vld [vmem:[%s12993_s1 + $0x8] sm:$0xf]  ;;  %v6171_v27 = vor.u32 %v8253_v14, %v6170_v13  ;;  %v5820_v56 = vld [vmem:[%s12993_s1 + $0x3a8] sm:$0xf0] }
  0xa4   :  { %v8053_v17 = vld [vmem:[%s12993_s1 + $0x24] sm:$0xf0]  ;;  %v5823_v63 = vor.u32 %v8161_v55, %v5820_v56  ;;  %v8081_v13 = vld [vmem:[%s12993_s1 + $0x10c] sm:$0xf] }
  0xa5   :  { %2562 = vmatpush.bf16.msrb.mxu2 %v5979_v57  ;;  %2537 = vmatpush.bf16.msrb.mxu0 %v5435_v3  ;;  %v5626_v24 = vld [vmem:[%s12993_s1 + $0x208] sm:$0xf]  ;;  %v5371_v34 = vor.u32 %v8053_v17, %v5370_v16  ;;  %v8153_v3 = vld [vmem:[%s12993_s1 + $0x34c] sm:$0xf] }
  0xa6   :  { %v8117_v25 = vld [vmem:[%s12993_s1 + $0x224] sm:$0xf0]  ;;  %v5500_v14 = vld [vmem:[%s12993_s1 + $0x128] sm:$0xf0] }
  0xa7   :  { %2575 = vmatpush.bf16.msrb.mxu3 %v6235_v61  ;;  %2550 = vmatpush.bf16.msrb.mxu1 %v5691_v4  ;;  %v5882_v26 = vld [vmem:[%s12993_s1 + $0x408] sm:$0xf]  ;;  %v5627_v40 = vor.u32 %v8117_v25, %v5626_v24  ;;  %v5788_v4 = vld [vmem:[%s12993_s1 + $0x368] sm:$0xf0] }
  0xa8   :  { %v8181_v28 = vld [vmem:[%s12993_s1 + $0x424] sm:$0xf0]  ;;  %v5791_v11 = vor.u32 %v8153_v3, %v5788_v4  ;;  %v5756_v16 = vld [vmem:[%s12993_s1 + $0x328] sm:$0xf0] }
  0xa9   :  { %2563 = vmatpush.bf16.msrb.mxu2 %v5947_v5  ;;  %v6138_v29 = vld [vmem:[%s12993_s1 + $0x608] sm:$0xf]  ;;  %2538 = vmatpush.bf16.msrb.mxu0 %v5403_v15  ;;  %v5883_v41 = vor.u32 %v8181_v28, %v5882_v26  ;;  %v8145_v15 = vld [vmem:[%s12993_s1 + $0x30c] sm:$0xf] }
  0xaa   :  { %v8245_v30 = vld [vmem:[%s12993_s1 + $0x624] sm:$0xf0]  ;;  %v8057_v55 = vld [vmem:[%s12993_s1 + $0x4c] sm:$0xf] }
  0xab   :  { %2576 = vmatpush.bf16.msrb.mxu3 %v6203_v9  ;;  %v6618_v31 = vld [vmem:[%s12993_s1 + $0x9c8] sm:$0xf]  ;;  %2551 = vmatpush.bf16.msrb.mxu1 %v5659_v21  ;;  %v6139_v44 = vor.u32 %v8245_v30, %v6138_v29  ;;  %v8073_v29 = vld [vmem:[%s12993_s1 + $0xcc] sm:$0xf] }
  0xac   :  { %v8365_v32 = vld [vmem:[%s12993_s1 + $0x9e4] sm:$0xf0]  ;;  %v5468_v30 = vld [vmem:[%s12993_s1 + $0xe8] sm:$0xf0] }
  0xad   :  { %v6874_v33 = vld [vmem:[%s12993_s1 + $0xbc8] sm:$0xf]  ;;  %2564 = vmatpush.bf16.msrb.mxu2 %v5915_v23  ;;  %v6619_v45 = vor.u32 %v8365_v32, %v6618_v31  ;;  %2539 = vmatpush.bf16.msrb.mxu0 %v5371_v34  ;;  %v5503_v23 = vor.u32 %v8081_v13, %v5500_v14  ;;  %v8137_v31 = vld [vmem:[%s12993_s1 + $0x2cc] sm:$0xf] }
  0xae   :  { %v8429_v36 = vld [vmem:[%s12993_s1 + $0xbe4] sm:$0xf0]  ;;  %v5724_v32 = vld [vmem:[%s12993_s1 + $0x2e8] sm:$0xf0] }
  0xaf   :  { %2577 = vmatpush.bf16.msrb.mxu3 %v6171_v27  ;;  %v6875_v46 = vor.u32 %v8429_v36, %v6874_v33  ;;  %v6586_v48 = vld [vmem:[%s12993_s1 + $0x988] sm:$0xf]  ;;  %2552 = vmatpush.bf16.msrb.mxu1 %v5627_v40  ;;  %v5759_v27 = vor.u32 %v8145_v15, %v5756_v16  ;;  %v5471_v36 = vor.u32 %v8073_v29, %v5468_v30  ;;  %v5404_v56 = vld [vmem:[%s12993_s1 + $0x68] sm:$0xf0] }
  0xb0   :  { %v8357_v49 = vld [vmem:[%s12993_s1 + $0x9a4] sm:$0xf0]  ;;  %2540 = vmatmul.bf16.vlgmr.msrb.gmra.mxu0 %v9065_v18  ;;  %v5372_v4 = vld [vmem:[%s12993_s1 + $0x28] sm:$0xf0] }
  0xb1   :  { %v6842_v50 = vld [vmem:[%s12993_s1 + $0xb88] sm:$0xf]  ;;  %2565 = vmatpush.bf16.msrb.mxu2 %v5883_v41  ;;  %2584 = vmatpush.bf16.msra.mxu0 %v6619_v45  ;;  %v6587_v57 = vor.u32 %v8357_v49, %v6586_v48  ;;  %v5727_v41 = vor.u32 %v8137_v31, %v5724_v32  ;;  %v8129_v45 = vld [vmem:[%s12993_s1 + $0x28c] sm:$0xf]  ;;  %v5375_v15 = vor.u32 %v8049_v2, %v5372_v4 }
  0xb2   :  { %v8421_v52 = vld [vmem:[%s12993_s1 + $0xba4] sm:$0xf0]  ;;  %2553 = vmatmul.bf16.vlgmr.msrb.gmra.mxu1 %v9069_v20  ;;  %v6620_v13 = vld [vmem:[%s12993_s1 + $0x9e8] sm:$0xf0] }
  0xb3   :  { %2578 = vmatpush.bf16.msrb.mxu3 %v6139_v44  ;;  %2597 = vmatpush.bf16.msra.mxu1 %v6875_v46  ;;  %v6843_v58 = vor.u32 %v8421_v52, %v6842_v50  ;;  %v6554_v60 = vld [vmem:[%s12993_s1 + $0x948] sm:$0xf]  ;;  %v5436_v44 = vld [vmem:[%s12993_s1 + $0xa8] sm:$0xf0] }
  0xb4   :  { %v8349_v61 = vld [vmem:[%s12993_s1 + $0x964] sm:$0xf0]  ;;  %2566 = vmatmul.bf16.vlgmr.msrb.gmra.mxu2 %v9067_v19  ;;  %v5692_v46 = vld [vmem:[%s12993_s1 + $0x2a8] sm:$0xf0]  ;;  %v5439_v49 = vor.u32 %v8065_v43, %v5436_v44 }
  0xb5   :  { %2610 = vmatpush.bf16.msra.mxu2 %v5599_v47  ;;  %v6810_v62 = vld [vmem:[%s12993_s1 + $0xb48] sm:$0xf]  ;;  %2585 = vmatpush.bf16.msra.mxu0 %v6587_v57  ;;  %v6555_v5 = vor.u32 %v8349_v61, %v6554_v60  ;;  %v5695_v53 = vor.u32 %v8129_v45, %v5692_v46  ;;  %v8121_v57 = vld [vmem:[%s12993_s1 + $0x24c] sm:$0xf] }
  0xb6   :  { %v8413_v0 = vld [vmem:[%s12993_s1 + $0xb64] sm:$0xf0]  ;;  %2579 = vmatmul.bf16.vlgmr.msrb.gmra.mxu3 %v9071_v22  ;;  %v8425_v16 = vld [vmem:[%s12993_s1 + $0xbcc] sm:$0xf] }
  0xb7   :  { %2623 = vmatpush.bf16.msra.mxu3 %v5855_v51  ;;  %2598 = vmatpush.bf16.msra.mxu1 %v6843_v58  ;;  %v6811_v6 = vor.u32 %v8413_v0, %v6810_v62  ;;  %v6522_v8 = vld [vmem:[%s12993_s1 + $0x908] sm:$0xf]  ;;  %v5660_v58 = vld [vmem:[%s12993_s1 + $0x268] sm:$0xf0] }
  0xb8   :  { %v8341_v9 = vld [vmem:[%s12993_s1 + $0x924] sm:$0xf0]  ;;  %v5663_v3 = vor.u32 %v8121_v57, %v5660_v58  ;;  %v6332_v30 = vld [vmem:[%s12993_s1 + $0x7a8] sm:$0xf0] }
  0xb9   :  { %2611 = vmatpush.bf16.msra.mxu2 %v5567_v59  ;;  %v6778_v10 = vld [vmem:[%s12993_s1 + $0xb08] sm:$0xf]  ;;  %2586 = vmatpush.bf16.msra.mxu0 %v6555_v5  ;;  %v6523_v17 = vor.u32 %v8341_v9, %v6522_v8  ;;  %v8113_v5 = vld [vmem:[%s12993_s1 + $0x20c] sm:$0xf] }
  0xba   :  { %v8405_v12 = vld [vmem:[%s12993_s1 + $0xb24] sm:$0xf0]  ;;  %v6108_v8 = vld [vmem:[%s12993_s1 + $0x5e8] sm:$0xf0] }
  0xbb   :  { %2624 = vmatpush.bf16.msra.mxu3 %v5823_v63  ;;  %2599 = vmatpush.bf16.msra.mxu1 %v6811_v6  ;;  %v6779_v21 = vor.u32 %v8405_v12, %v6778_v10  ;;  %v6490_v24 = vld [vmem:[%s12993_s1 + $0x8c8] sm:$0xf]  ;;  %v5407_v63 = vor.u32 %v8057_v55, %v5404_v56  ;;  %v5628_v6 = vld [vmem:[%s12993_s1 + $0x228] sm:$0xf0] }
  0xbc   :  { %v8333_v25 = vld [vmem:[%s12993_s1 + $0x8e4] sm:$0xf0]  ;;  %v8297_v9 = vld [vmem:[%s12993_s1 + $0x7cc] sm:$0xf] }
  0xbd   :  { %2612 = vmatpush.bf16.msra.mxu2 %v5535_v7  ;;  %v6746_v26 = vld [vmem:[%s12993_s1 + $0xac8] sm:$0xf]  ;;  %2587 = vmatpush.bf16.msra.mxu0 %v6523_v17  ;;  %v6491_v33 = vor.u32 %v8333_v25, %v6490_v24  ;;  %v8233_v7 = vld [vmem:[%s12993_s1 + $0x5cc] sm:$0xf] }
  0xbe   :  { %v8397_v28 = vld [vmem:[%s12993_s1 + $0xae4] sm:$0xf0]  ;;  %v8361_v12 = vld [vmem:[%s12993_s1 + $0x9cc] sm:$0xf] }
  0xbf   :  { %2625 = vmatpush.bf16.msra.mxu3 %v5791_v11  ;;  %2600 = vmatpush.bf16.msra.mxu1 %v6779_v21  ;;  %v6747_v34 = vor.u32 %v8397_v28, %v6746_v26  ;;  %v6458_v37 = vld [vmem:[%s12993_s1 + $0x888] sm:$0xf]  ;;  %v6364_v11 = vld [vmem:[%s12993_s1 + $0x7e8] sm:$0xf0]  ;;  %v5631_v21 = vor.u32 %v8113_v5, %v5628_v6  ;;  %v6623_v25 = vor.u32 %v8361_v12, %v6620_v13 }
  0xc0   :  { %v8325_v39 = vld [vmem:[%s12993_s1 + $0x8a4] sm:$0xf0]  ;;  %v6876_v17 = vld [vmem:[%s12993_s1 + $0xbe8] sm:$0xf0]  ;;  %v6367_v24 = vor.u32 %v8297_v9, %v6364_v11 }
  0xc1   :  { %2613 = vmatpush.bf16.msra.mxu2 %v5503_v23  ;;  %v6714_v40 = vld [vmem:[%s12993_s1 + $0xa88] sm:$0xf]  ;;  %2588 = vmatpush.bf16.msra.mxu0 %v6491_v33  ;;  %v6459_v47 = vor.u32 %v8325_v39, %v6458_v37  ;;  %v6111_v23 = vor.u32 %v8233_v7, %v6108_v8  ;;  %v8225_v26 = vld [vmem:[%s12993_s1 + $0x58c] sm:$0xf]  ;;  %v6879_v29 = vor.u32 %v8425_v16, %v6876_v17 }
  0xc2   :  { %v8389_v42 = vld [vmem:[%s12993_s1 + $0xaa4] sm:$0xf0]  ;;  %v8289_v28 = vld [vmem:[%s12993_s1 + $0x78c] sm:$0xf] }
  0xc3   :  { %2626 = vmatpush.bf16.msra.mxu3 %v5759_v27  ;;  %2601 = vmatpush.bf16.msra.mxu1 %v6747_v34  ;;  %v6715_v48 = vor.u32 %v8389_v42, %v6714_v40  ;;  %v6426_v50 = vld [vmem:[%s12993_s1 + $0x848] sm:$0xf]  ;;  %v6076_v27 = vld [vmem:[%s12993_s1 + $0x5a8] sm:$0xf0]  ;;  %v6335_v37 = vor.u32 %v8289_v28, %v6332_v30 }
  0xc4   :  { %v8317_v51 = vld [vmem:[%s12993_s1 + $0x864] sm:$0xf0]  ;;  %v8353_v31 = vld [vmem:[%s12993_s1 + $0x98c] sm:$0xf] }
  0xc5   :  { %2614 = vmatpush.bf16.msra.mxu2 %v5471_v36  ;;  %v6682_v52 = vld [vmem:[%s12993_s1 + $0xa48] sm:$0xf]  ;;  %2589 = vmatpush.bf16.msra.mxu0 %v6459_v47  ;;  %v6427_v59 = vor.u32 %v8317_v51, %v6426_v50  ;;  %v6588_v32 = vld [vmem:[%s12993_s1 + $0x9a8] sm:$0xf0]  ;;  %v6079_v36 = vor.u32 %v8225_v26, %v6076_v27 }
  0xc6   :  { %v8381_v54 = vld [vmem:[%s12993_s1 + $0xa64] sm:$0xf0]  ;;  %v8417_v33 = vld [vmem:[%s12993_s1 + $0xb8c] sm:$0xf]  ;;  %v6591_v39 = vor.u32 %v8353_v31, %v6588_v32 }
  0xc7   :  { %2627 = vmatpush.bf16.msra.mxu3 %v5727_v41  ;;  %v6394_v60 = vld [vmem:[%s12993_s1 + $0x808] sm:$0xf]  ;;  %2602 = vmatpush.bf16.msra.mxu1 %v6715_v48  ;;  %v6683_v62 = vor.u32 %v8381_v54, %v6682_v52  ;;  %v6844_v34 = vld [vmem:[%s12993_s1 + $0xba8] sm:$0xf0] }
  0xc8   :  { %v8309_v61 = vld [vmem:[%s12993_s1 + $0x824] sm:$0xf0]  ;;  %v8217_v40 = vld [vmem:[%s12993_s1 + $0x54c] sm:$0xf]  ;;  %v6847_v43 = vor.u32 %v8417_v33, %v6844_v34 }
  0xc9   :  { %2615 = vmatpush.bf16.msra.mxu2 %v5439_v49  ;;  %v6650_v0 = vld [vmem:[%s12993_s1 + $0xa08] sm:$0xf]  ;;  %2590 = vmatpush.bf16.msra.mxu0 %v6427_v59  ;;  %v6395_v10 = vor.u32 %v8309_v61, %v6394_v60  ;;  %v6044_v41 = vld [vmem:[%s12993_s1 + $0x568] sm:$0xf0] }
  0xca   :  { %v8373_v1 = vld [vmem:[%s12993_s1 + $0xa24] sm:$0xf0]  ;;  %v8281_v42 = vld [vmem:[%s12993_s1 + $0x74c] sm:$0xf]  ;;  %v6047_v49 = vor.u32 %v8217_v40, %v6044_v41 }
  0xcb   :  { %2628 = vmatpush.bf16.msra.mxu3 %v5695_v53  ;;  %2603 = vmatpush.bf16.msra.mxu1 %v6683_v62  ;;  %v6651_v14 = vor.u32 %v8373_v1, %v6650_v0  ;;  %v6300_v44 = vld [vmem:[%s12993_s1 + $0x768] sm:$0xf0] }
  0xcc   :  { %v8345_v45 = vld [vmem:[%s12993_s1 + $0x94c] sm:$0xf]  ;;  %v6303_v50 = vor.u32 %v8281_v42, %v6300_v44 }
  0xcd   :  { %2616 = vmatpush.bf16.msra.mxu2 %v5407_v63  ;;  %2591 = vmatpush.bf16.msra.mxu0 %v6395_v10  ;;  %v6556_v46 = vld [vmem:[%s12993_s1 + $0x968] sm:$0xf0] }
  0xce   :  { %v8409_v47 = vld [vmem:[%s12993_s1 + $0xb4c] sm:$0xf]  ;;  %v6559_v51 = vor.u32 %v8345_v45, %v6556_v46 }
  0xcf   :  { %2629 = vmatpush.bf16.msra.mxu3 %v5663_v3  ;;  %2604 = vmatpush.bf16.msra.mxu1 %v6651_v14  ;;  %v6812_v48 = vld [vmem:[%s12993_s1 + $0xb68] sm:$0xf0]  ;;  %v2398_v27 = vpop.f32.mrf.mxu1 }
  0xd0   :  { %2592 = vmatmul.bf16.vlgmr.msra.gmra.mxu0 %v9218_v35  ;;  %v8209_v52 = vld [vmem:[%s12993_s1 + $0x50c] sm:$0xf]  ;;  %v6815_v55 = vor.u32 %v8409_v47, %v6812_v48 }
  0xd1   :  { %2617 = vmatpush.bf16.msra.mxu2 %v5375_v15  ;;  %2636 = vmatpush.bf16.msrb.mxu0 %v6111_v23  ;;  %v6012_v53 = vld [vmem:[%s12993_s1 + $0x528] sm:$0xf0] }
  0xd2   :  { %2605 = vmatmul.bf16.vlgmr.msra.gmra.mxu1 %v9226_v38  ;;  %v8273_v54 = vld [vmem:[%s12993_s1 + $0x70c] sm:$0xf]  ;;  %v6015_v61 = vor.u32 %v8209_v52, %v6012_v53  ;;  %v2411_v53 = vpop.f32.mrf.mxu2 }
  0xd3   :  { %2630 = vmatpush.bf16.msra.mxu3 %v5631_v21  ;;  %2649 = vmatpush.bf16.msrb.mxu1 %v6367_v24  ;;  %v6268_v56 = vld [vmem:[%s12993_s1 + $0x728] sm:$0xf0] }
  0xd4   :  { %2618 = vmatmul.bf16.vlgmr.msra.gmra.mxu2 %v9065_v18  ;;  %v8337_v57 = vld [vmem:[%s12993_s1 + $0x90c] sm:$0xf]  ;;  %v6271_v62 = vor.u32 %v8273_v54, %v6268_v56  ;;  %v5602_v54 = vld [vmem:[%s12993_s1 + $0x1d0] sm:$0xf] }
  0xd5   :  { %2662 = vmatpush.bf16.msrb.mxu2 %v6623_v25  ;;  %2637 = vmatpush.bf16.msrb.mxu0 %v6079_v36  ;;  %v6524_v58 = vld [vmem:[%s12993_s1 + $0x928] sm:$0xf0]  ;;  %v2385_v25 = vpop.f32.mrf.mxu0  ;;  %v5858_v56 = vld [vmem:[%s12993_s1 + $0x3d0] sm:$0xf] }
  0xd6   :  { %2631 = vmatmul.bf16.vlgmr.msra.gmra.mxu3 %v9069_v20  ;;  %v8401_v59 = vld [vmem:[%s12993_s1 + $0xb0c] sm:$0xf]  ;;  %v6527_v63 = vor.u32 %v8337_v57, %v6524_v58  ;;  %v2424_v58 = vpop.f32.mrf.mxu3 }
  0xd7   :  { %2675 = vmatpush.bf16.msrb.mxu3 %v6879_v29  ;;  %2650 = vmatpush.bf16.msrb.mxu1 %v6335_v37  ;;  %v6780_v60 = vld [vmem:[%s12993_s1 + $0xb28] sm:$0xf0] }
  0xd8   :  { %v8201_v0 = vld [vmem:[%s12993_s1 + $0x4cc] sm:$0xf]  ;;  %v6783_v3 = vor.u32 %v8401_v59, %v6780_v60  ;;  %v8174_v60 = vld [vmem:[%s12993_s1 + $0x3ec] sm:$0xf0] }
  0xd9   :  { %2663 = vmatpush.bf16.msrb.mxu2 %v6591_v39  ;;  %2638 = vmatpush.bf16.msrb.mxu0 %v6047_v49  ;;  %v5980_v1 = vld [vmem:[%s12993_s1 + $0x4e8] sm:$0xf0] }
  0xda   :  { %v8265_v2 = vld [vmem:[%s12993_s1 + $0x6cc] sm:$0xf]  ;;  %v5983_v9 = vor.u32 %v8201_v0, %v5980_v1 }
  0xdb   :  { %2676 = vmatpush.bf16.msrb.mxu3 %v6847_v43  ;;  %2651 = vmatpush.bf16.msrb.mxu1 %v6303_v50  ;;  %v6236_v4 = vld [vmem:[%s12993_s1 + $0x6e8] sm:$0xf0] }
  0xdc   :  { %v8329_v5 = vld [vmem:[%s12993_s1 + $0x8cc] sm:$0xf]  ;;  %v6239_v10 = vor.u32 %v8265_v2, %v6236_v4  ;;  %v6370_v2 = vld [vmem:[%s12993_s1 + $0x7d0] sm:$0xf] }
  0xdd   :  { %2664 = vmatpush.bf16.msrb.mxu2 %v6559_v51  ;;  %v6492_v6 = vld [vmem:[%s12993_s1 + $0x8e8] sm:$0xf0]  ;;  %2639 = vmatpush.bf16.msrb.mxu0 %v6015_v61  ;;  %v2387_v57 = vpop.f32.mrf.mxu0  ;;  %v6114_v61 = vld [vmem:[%s12993_s1 + $0x5d0] sm:$0xf] }
  0xde   :  { %v8393_v7 = vld [vmem:[%s12993_s1 + $0xacc] sm:$0xf]  ;;  %v6495_v11 = vor.u32 %v8329_v5, %v6492_v6  ;;  %v2399_v6 = vadd.f32 %v2398_v27, %v2385_v25  ;;  %v5538_v27 = vld [vmem:[%s12993_s1 + $0x150] sm:$0xf] }
  0xdf   :  { %2677 = vmatpush.bf16.msrb.mxu3 %v6815_v55  ;;  %v6748_v8 = vld [vmem:[%s12993_s1 + $0xae8] sm:$0xf0]  ;;  %2652 = vmatpush.bf16.msrb.mxu1 %v6271_v62  ;;  %v8110_v55 = vld [vmem:[%s12993_s1 + $0x1ec] sm:$0xf0] }
  0xe0   :  { %v8193_v12 = vld [vmem:[%s12993_s1 + $0x48c] sm:$0xf]  ;;  %v6751_v15 = vor.u32 %v8393_v7, %v6748_v8  ;;  %v8238_v62 = vld [vmem:[%s12993_s1 + $0x5ec] sm:$0xf0]  ;;  %v5603_v5 = vor.u32 %v8110_v55, %v5602_v54  ;;  %v5859_v7 = vor.u32 %v8174_v60, %v5858_v56 }
  0xe1   :  { %2665 = vmatpush.bf16.msrb.mxu2 %v6527_v63  ;;  %v5948_v13 = vld [vmem:[%s12993_s1 + $0x4a8] sm:$0xf0]  ;;  %2640 = vmatpush.bf16.msrb.mxu0 %v5983_v9  ;;  %v2400_v63 = vpop.f32.mrf.mxu1  ;;  %v6115_v8 = vor.u32 %v8238_v62, %v6114_v61  ;;  %v5570_v9 = vld [vmem:[%s12993_s1 + $0x190] sm:$0xf] }
  0xe2   :  { %v8257_v14 = vld [vmem:[%s12993_s1 + $0x68c] sm:$0xf]  ;;  %v5951_v26 = vor.u32 %v8193_v12, %v5948_v13  ;;  %v8166_v13 = vld [vmem:[%s12993_s1 + $0x3ac] sm:$0xf0] }
  0xe3   :  { %2678 = vmatpush.bf16.msrb.mxu3 %v6783_v3  ;;  %v6204_v16 = vld [vmem:[%s12993_s1 + $0x6a8] sm:$0xf0]  ;;  %2653 = vmatpush.bf16.msrb.mxu1 %v6239_v10  ;;  %v8302_v3 = vld [vmem:[%s12993_s1 + $0x7ec] sm:$0xf0] }
  0xe4   :  { %v8321_v17 = vld [vmem:[%s12993_s1 + $0x88c] sm:$0xf]  ;;  %v6207_v28 = vor.u32 %v8257_v14, %v6204_v16  ;;  %v8102_v10 = vld [vmem:[%s12993_s1 + $0x1ac] sm:$0xf0]  ;;  %v6371_v12 = vor.u32 %v8302_v3, %v6370_v2 }
  0xe5   :  { %v6460_v21 = vld [vmem:[%s12993_s1 + $0x8a8] sm:$0xf0]  ;;  %2666 = vmatpush.bf16.msrb.mxu2 %v6495_v11  ;;  %2641 = vmatpush.bf16.msrb.mxu0 %v5951_v26  ;;  %v5826_v11 = vld [vmem:[%s12993_s1 + $0x390] sm:$0xf] }
  0xe6   :  { %v8385_v23 = vld [vmem:[%s12993_s1 + $0xa8c] sm:$0xf]  ;;  %v6463_v29 = vor.u32 %v8321_v17, %v6460_v21  ;;  %v6082_v14 = vld [vmem:[%s12993_s1 + $0x590] sm:$0xf]  ;;  %v5571_v21 = vor.u32 %v8102_v10, %v5570_v9  ;;  %v5827_v25 = vor.u32 %v8166_v13, %v5826_v11 }
  0xe7   :  { %v6716_v24 = vld [vmem:[%s12993_s1 + $0xaa8] sm:$0xf0]  ;;  %2679 = vmatpush.bf16.msrb.mxu3 %v6751_v15  ;;  %2654 = vmatpush.bf16.msrb.mxu1 %v6207_v28  ;;  %v8230_v15 = vld [vmem:[%s12993_s1 + $0x5ac] sm:$0xf0] }
  0xe8   :  { %v8185_v30 = vld [vmem:[%s12993_s1 + $0x44c] sm:$0xf]  ;;  %v6719_v33 = vor.u32 %v8385_v23, %v6716_v24  ;;  %v6338_v16 = vld [vmem:[%s12993_s1 + $0x790] sm:$0xf]  ;;  %v2412_v23 = vadd.f32 %v2411_v53, %v2399_v6  ;;  %v2413_v24 = vpop.f32.mrf.mxu2  ;;  %v6083_v26 = vor.u32 %v8230_v15, %v6082_v14  ;;  %v2437_v53 = vpop.f32.mrf.mxu0 }
  0xe9   :  { %v5916_v31 = vld [vmem:[%s12993_s1 + $0x468] sm:$0xf0]  ;;  %2667 = vmatpush.bf16.msrb.mxu2 %v6463_v29  ;;  %v8294_v17 = vld [vmem:[%s12993_s1 + $0x7ac] sm:$0xf0]  ;;  %v2450_v56 = vpop.f32.mrf.mxu1 }
  0xea   :  { %v8249_v32 = vld [vmem:[%s12993_s1 + $0x64c] sm:$0xf]  ;;  %v5919_v41 = vor.u32 %v8185_v30, %v5916_v31  ;;  %v8094_v28 = vld [vmem:[%s12993_s1 + $0x16c] sm:$0xf0]  ;;  %v2426_v30 = vpop.f32.mrf.mxu3  ;;  %v6339_v31 = vor.u32 %v8294_v17, %v6338_v16 }
  0xeb   :  { %v6172_v34 = vld [vmem:[%s12993_s1 + $0x668] sm:$0xf0]  ;;  %2680 = vmatpush.bf16.msrb.mxu3 %v6719_v33  ;;  %v5794_v29 = vld [vmem:[%s12993_s1 + $0x350] sm:$0xf] }
  0xec   :  { %v8313_v36 = vld [vmem:[%s12993_s1 + $0x84c] sm:$0xf]  ;;  %v6175_v44 = vor.u32 %v8249_v32, %v6172_v34  ;;  %2642 = vmatpush.bf16.msrb.mxu0 %v5919_v41  ;;  %v8158_v32 = vld [vmem:[%s12993_s1 + $0x36c] sm:$0xf0] }
  0xed   :  { %v6428_v37 = vld [vmem:[%s12993_s1 + $0x868] sm:$0xf0]  ;;  %v6050_v33 = vld [vmem:[%s12993_s1 + $0x550] sm:$0xf] }
  0xee   :  { %v8377_v39 = vld [vmem:[%s12993_s1 + $0xa4c] sm:$0xf]  ;;  %v6431_v45 = vor.u32 %v8313_v36, %v6428_v37  ;;  %2655 = vmatpush.bf16.msrb.mxu1 %v6175_v44  ;;  %v8222_v34 = vld [vmem:[%s12993_s1 + $0x56c] sm:$0xf0] }
  0xef   :  { %v6684_v40 = vld [vmem:[%s12993_s1 + $0xa68] sm:$0xf0]  ;;  %v6306_v36 = vld [vmem:[%s12993_s1 + $0x750] sm:$0xf] }
  0xf0   :  { %v8177_v42 = vld [vmem:[%s12993_s1 + $0x40c] sm:$0xf]  ;;  %v6687_v49 = vor.u32 %v8377_v39, %v6684_v40  ;;  %2668 = vmatpush.bf16.msrb.mxu2 %v6431_v45  ;;  %v8286_v37 = vld [vmem:[%s12993_s1 + $0x76c] sm:$0xf0]  ;;  %v5539_v39 = vor.u32 %v8094_v28, %v5538_v27  ;;  %v2425_v40 = vadd.f32 %v2424_v58, %v2412_v23  ;;  %v10115_v17 = vpop.f32.mrf.mxu2 }
  0xf1   :  { %v5884_v43 = vld [vmem:[%s12993_s1 + $0x428] sm:$0xf0]  ;;  %v5506_v41 = vld [vmem:[%s12993_s1 + $0x110] sm:$0xf]  ;;  %v2452_v27 = vpop.f32.mrf.mxu1 }
  0xf2   :  { %v8241_v46 = vld [vmem:[%s12993_s1 + $0x60c] sm:$0xf]  ;;  %v5887_v59 = vor.u32 %v8177_v42, %v5884_v43  ;;  %2681 = vmatpush.bf16.msrb.mxu3 %v6687_v49  ;;  %v5795_v42 = vor.u32 %v8158_v32, %v5794_v29  ;;  %v6051_v43 = vor.u32 %v8222_v34, %v6050_v33  ;;  %v8086_v44 = vld [vmem:[%s12993_s1 + $0x12c] sm:$0xf0]  ;;  %v2438_v55 = vadd.f32 %v2437_v53, %v2425_v40  ;;  %v10123_v24 = vpop.f32.mrf.mxu3 }
  0xf3   :  { %v6140_v47 = vld [vmem:[%s12993_s1 + $0x628] sm:$0xf0]  ;;  %v5762_v45 = vld [vmem:[%s12993_s1 + $0x310] sm:$0xf]  ;;  %v5507_v54 = vor.u32 %v8086_v44, %v5506_v41 }
  0xf4   :  { %v8305_v48 = vld [vmem:[%s12993_s1 + $0x80c] sm:$0xf]  ;;  %v6143_v0 = vor.u32 %v8241_v46, %v6140_v47  ;;  %2643 = vmatpush.bf16.msrb.mxu0 %v5887_v59  ;;  %v10052_v46 = vld [vmem:[%s12995_s2] sm:$0xff]  ;;  %v6307_v47 = vor.u32 %v8286_v37, %v6306_v36  ;;  %v6018_v49 = vld [vmem:[%s12993_s1 + $0x510] sm:$0xf]  ;;  %v2451_v3 = vadd.f32 %v2450_v56, %v2438_v55 }
  0xf5   :  { %v6396_v50 = vld [vmem:[%s12993_s1 + $0x828] sm:$0xf0]  ;;  %v3029_v57 = vperm.slane %v10052_v46, 0  ;;  %v5474_v60 = vld [vmem:[%s12993_s1 + $0xd0] sm:$0xf] }
  0xf6   :  { %v8369_v51 = vld [vmem:[%s12993_s1 + $0xa0c] sm:$0xf]  ;;  %v6399_v1 = vor.u32 %v8305_v48, %v6396_v50  ;;  %2656 = vmatpush.bf16.msrb.mxu1 %v6143_v0  ;;  %v8150_v48 = vld [vmem:[%s12993_s1 + $0x32c] sm:$0xf0] }
  0xf7   :  { %v6652_v52 = vld [vmem:[%s12993_s1 + $0xa28] sm:$0xf0]  ;;  %2644 = vmatmul.bf16.vlgmr.msrb.gmra.mxu0 %v9067_v19  ;;  %v8214_v50 = vld [vmem:[%s12993_s1 + $0x52c] sm:$0xf0]  ;;  %v5763_v58 = vor.u32 %v8150_v48, %v5762_v45 }
  0xf8   :  { %v6655_v4 = vor.u32 %v8369_v51, %v6652_v52  ;;  %2669 = vmatpush.bf16.msrb.mxu2 %v6399_v1  ;;  %2688 = vmatpush.bf16.msra.mxu0 %v5603_v5  ;;  %v6274_v51 = vld [vmem:[%s12993_s1 + $0x710] sm:$0xf]  ;;  %v6019_v59 = vor.u32 %v8214_v50, %v6018_v49 }
  0xf9   :  { %2657 = vmatmul.bf16.vlgmr.msrb.gmra.mxu1 %v9071_v22  ;;  %v8278_v52 = vld [vmem:[%s12993_s1 + $0x72c] sm:$0xf0] }
  0xfa   :  { %2682 = vmatpush.bf16.msrb.mxu3 %v6655_v4  ;;  %2701 = vmatpush.bf16.msra.mxu1 %v5859_v7  ;;  %v8078_v61 = vld [vmem:[%s12993_s1 + $0xec] sm:$0xf0]  ;;  %v6275_v63 = vor.u32 %v8278_v52, %v6274_v51  ;;  %v3045_v7 = vadd.f32 %v3029_v57, %v2451_v3 }
  0xfb   :  { %2670 = vmatmul.bf16.vlgmr.msrb.gmra.mxu2 %v9218_v35  ;;  %v5730_v62 = vld [vmem:[%s12993_s1 + $0x2d0] sm:$0xf]  ;;  %v5475_v6 = vor.u32 %v8078_v61, %v5474_v60  ;;  %v8106_v61 = vld [vmem:[%s12993_s1 + $0x1d4] sm:$0xf] }
  0xfc   :  { %2714 = vmatpush.bf16.msra.mxu2 %v6115_v8  ;;  %2689 = vmatpush.bf16.msra.mxu0 %v5571_v21  ;;  %v8142_v0 = vld [vmem:[%s12993_s1 + $0x2ec] sm:$0xf0]  ;;  %3053 = vst [vmem:[%s12996_s7] sm:$0xff] %v3045_v7 }
  0xfd   :  { %2683 = vmatmul.bf16.vlgmr.msrb.gmra.mxu3 %v9226_v38  ;;  %v5986_v1 = vld [vmem:[%s12993_s1 + $0x4d0] sm:$0xf]  ;;  %v5731_v8 = vor.u32 %v8142_v0, %v5730_v62  ;;  %v5604_v62 = vld [vmem:[%s12993_s1 + $0x1f0] sm:$0xf0] }
  0xfe   :  { %2727 = vmatpush.bf16.msra.mxu3 %v6371_v12  ;;  %2702 = vmatpush.bf16.msra.mxu1 %v5827_v25  ;;  %v8206_v2 = vld [vmem:[%s12993_s1 + $0x4ec] sm:$0xf0]  ;;  %v2439_v25 = vpop.f32.mrf.mxu0 }
  0xff   :  { %v6242_v4 = vld [vmem:[%s12993_s1 + $0x6d0] sm:$0xf]  ;;  %v5987_v9 = vor.u32 %v8206_v2, %v5986_v1  ;;  %v8170_v1 = vld [vmem:[%s12993_s1 + $0x3d4] sm:$0xf] }
 0x100   :  { %2715 = vmatpush.bf16.msra.mxu2 %v6083_v26  ;;  %2690 = vmatpush.bf16.msra.mxu0 %v5539_v39  ;;  %v8270_v5 = vld [vmem:[%s12993_s1 + $0x6ec] sm:$0xf0]  ;;  %v5860_v2 = vld [vmem:[%s12993_s1 + $0x3f0] sm:$0xf0] }
 0x101   :  { %v5442_v10 = vld [vmem:[%s12993_s1 + $0x90] sm:$0xf]  ;;  %v6243_v13 = vor.u32 %v8270_v5, %v6242_v4 }
 0x102   :  { %2728 = vmatpush.bf16.msra.mxu3 %v6339_v31  ;;  %2703 = vmatpush.bf16.msra.mxu1 %v5795_v42  ;;  %v8070_v11 = vld [vmem:[%s12993_s1 + $0xac] sm:$0xf0] }
 0x103   :  { %v5698_v12 = vld [vmem:[%s12993_s1 + $0x290] sm:$0xf]  ;;  %v5443_v26 = vor.u32 %v8070_v11, %v5442_v10  ;;  %v5863_v10 = vor.u32 %v8170_v1, %v5860_v2 }
 0x104   :  { %2716 = vmatpush.bf16.msra.mxu2 %v6051_v43  ;;  %2691 = vmatpush.bf16.msra.mxu0 %v5507_v54  ;;  %v8134_v14 = vld [vmem:[%s12993_s1 + $0x2ac] sm:$0xf0]  ;;  %v2465_v54 = vpop.f32.mrf.mxu2 }
 0x105   :  { %v5954_v15 = vld [vmem:[%s12993_s1 + $0x490] sm:$0xf]  ;;  %v5699_v28 = vor.u32 %v8134_v14, %v5698_v12  ;;  %v8098_v12 = vld [vmem:[%s12993_s1 + $0x194] sm:$0xf] }
 0x106   :  { %2729 = vmatpush.bf16.msra.mxu3 %v6307_v47  ;;  %2704 = vmatpush.bf16.msra.mxu1 %v5763_v58  ;;  %v8198_v16 = vld [vmem:[%s12993_s1 + $0x4ac] sm:$0xf0]  ;;  %v2478_v58 = vpop.f32.mrf.mxu3  ;;  %v8162_v14 = vld [vmem:[%s12993_s1 + $0x394] sm:$0xf] }
 0x107   :  { %v6210_v21 = vld [vmem:[%s12993_s1 + $0x690] sm:$0xf]  ;;  %v5955_v29 = vor.u32 %v8198_v16, %v5954_v15  ;;  %v5828_v15 = vld [vmem:[%s12993_s1 + $0x3b0] sm:$0xf0] }
 0x108   :  { %2717 = vmatpush.bf16.msra.mxu2 %v6019_v59  ;;  %v8262_v23 = vld [vmem:[%s12993_s1 + $0x6ac] sm:$0xf0]  ;;  %2692 = vmatpush.bf16.msra.mxu0 %v5475_v6  ;;  %v5607_v6 = vor.u32 %v8106_v61, %v5604_v62  ;;  %v8138_v61 = vld [vmem:[%s12993_s1 + $0x2d4] sm:$0xf] }
 0x109   :  { %v5410_v30 = vld [vmem:[%s12993_s1 + $0x50] sm:$0xf]  ;;  %v6211_v33 = vor.u32 %v8262_v23, %v6210_v21  ;;  %v5732_v62 = vld [vmem:[%s12993_s1 + $0x2f0] sm:$0xf0] }
 0x10a   :  { %2730 = vmatpush.bf16.msra.mxu3 %v6275_v63  ;;  %2705 = vmatpush.bf16.msra.mxu1 %v5731_v8  ;;  %v8062_v31 = vld [vmem:[%s12993_s1 + $0x6c] sm:$0xf0] }
 0x10b   :  { %v5666_v32 = vld [vmem:[%s12993_s1 + $0x250] sm:$0xf]  ;;  %v5411_v41 = vor.u32 %v8062_v31, %v5410_v30  ;;  %v8090_v30 = vld [vmem:[%s12993_s1 + $0x154] sm:$0xf] }
 0x10c   :  { %2718 = vmatpush.bf16.msra.mxu2 %v5987_v9  ;;  %v8126_v34 = vld [vmem:[%s12993_s1 + $0x26c] sm:$0xf0]  ;;  %2693 = vmatpush.bf16.msra.mxu0 %v5443_v26  ;;  %v5540_v31 = vld [vmem:[%s12993_s1 + $0x170] sm:$0xf0] }
 0x10d   :  { %v5922_v36 = vld [vmem:[%s12993_s1 + $0x450] sm:$0xf]  ;;  %v5667_v44 = vor.u32 %v8126_v34, %v5666_v32  ;;  %v8154_v32 = vld [vmem:[%s12993_s1 + $0x354] sm:$0xf] }
 0x10e   :  { %2731 = vmatpush.bf16.msra.mxu3 %v6243_v13  ;;  %v8190_v37 = vld [vmem:[%s12993_s1 + $0x46c] sm:$0xf0]  ;;  %2706 = vmatpush.bf16.msra.mxu1 %v5699_v28  ;;  %v5572_v13 = vld [vmem:[%s12993_s1 + $0x1b0] sm:$0xf0]  ;;  %v5831_v28 = vor.u32 %v8162_v14, %v5828_v15 }
 0x10f   :  { %v6178_v39 = vld [vmem:[%s12993_s1 + $0x650] sm:$0xf]  ;;  %v5923_v45 = vor.u32 %v8190_v37, %v5922_v36  ;;  %v5575_v23 = vor.u32 %v8098_v12, %v5572_v13  ;;  %v2477_v36 = vadd.f32 %v10123_v24, %v10115_v17  ;;  %v8082_v24 = vld [vmem:[%s12993_s1 + $0x114] sm:$0xf]  ;;  %v3030_v13 = vperm.slane %v10052_v46, 1 }
 0x110   :  { %v8254_v40 = vld [vmem:[%s12993_s1 + $0x66c] sm:$0xf0]  ;;  %2719 = vmatpush.bf16.msra.mxu2 %v5955_v29  ;;  %2694 = vmatpush.bf16.msra.mxu0 %v5411_v41  ;;  %v8130_v14 = vld [vmem:[%s12993_s1 + $0x294] sm:$0xf] }
 0x111   :  { %v5378_v42 = vld [vmem:[%s12993_s1 + $0x10] sm:$0xf]  ;;  %v6179_v50 = vor.u32 %v8254_v40, %v6178_v39  ;;  %v5543_v39 = vor.u32 %v8090_v30, %v5540_v31  ;;  %v5700_v15 = vld [vmem:[%s12993_s1 + $0x2b0] sm:$0xf0] }
 0x112   :  { %v8054_v43 = vld [vmem:[%s12993_s1 + $0x2c] sm:$0xf0]  ;;  %2732 = vmatpush.bf16.msra.mxu3 %v6211_v33  ;;  %2707 = vmatpush.bf16.msra.mxu1 %v5667_v44  ;;  %v5796_v33 = vld [vmem:[%s12993_s1 + $0x370] sm:$0xf0]  ;;  %v5703_v31 = vor.u32 %v8130_v14, %v5700_v15 }
 0x113   :  { %v5634_v47 = vld [vmem:[%s12993_s1 + $0x210] sm:$0xf]  ;;  %v5379_v59 = vor.u32 %v8054_v43, %v5378_v42  ;;  %v5799_v43 = vor.u32 %v8154_v32, %v5796_v33  ;;  %v5508_v44 = vld [vmem:[%s12993_s1 + $0x130] sm:$0xf0] }
 0x114   :  { %v8118_v48 = vld [vmem:[%s12993_s1 + $0x22c] sm:$0xf0]  ;;  %2720 = vmatpush.bf16.msra.mxu2 %v5923_v45  ;;  %v8146_v45 = vld [vmem:[%s12993_s1 + $0x314] sm:$0xf] }
 0x115   :  { %v5890_v49 = vld [vmem:[%s12993_s1 + $0x410] sm:$0xf]  ;;  %v5635_v63 = vor.u32 %v8118_v48, %v5634_v47  ;;  %2695 = vmatpush.bf16.msra.mxu0 %v5379_v59  ;;  %v5764_v47 = vld [vmem:[%s12993_s1 + $0x330] sm:$0xf0] }
 0x116   :  { %v8182_v51 = vld [vmem:[%s12993_s1 + $0x42c] sm:$0xf0]  ;;  %2733 = vmatpush.bf16.msra.mxu3 %v6179_v50  ;;  %v8074_v59 = vld [vmem:[%s12993_s1 + $0xd4] sm:$0xf] }
 0x117   :  { %v6146_v52 = vld [vmem:[%s12993_s1 + $0x610] sm:$0xf]  ;;  %v5891_v0 = vor.u32 %v8182_v51, %v5890_v49  ;;  %2708 = vmatpush.bf16.msra.mxu1 %v5635_v63  ;;  %v2489_v49 = vpop.f32.mrf.mxu0  ;;  %v5511_v51 = vor.u32 %v8082_v24, %v5508_v44 }
 0x118   :  { %v8246_v53 = vld [vmem:[%s12993_s1 + $0x62c] sm:$0xf0]  ;;  %2696 = vmatmul.bf16.vlgmr.msra.gmra.mxu0 %v9065_v18 }
 0x119   :  { %v6626_v55 = vld [vmem:[%s12993_s1 + $0x9d0] sm:$0xf]  ;;  %v6147_v3 = vor.u32 %v8246_v53, %v6146_v52  ;;  %2721 = vmatpush.bf16.msra.mxu2 %v5891_v0  ;;  %v2528_v12 = vpop.f32.mrf.mxu3 }
 0x11a   :  { %v8366_v56 = vld [vmem:[%s12993_s1 + $0x9ec] sm:$0xf0]  ;;  %2709 = vmatmul.bf16.vlgmr.msra.gmra.mxu1 %v9069_v20 }
 0x11b   :  { %v6882_v57 = vld [vmem:[%s12993_s1 + $0xbd0] sm:$0xf]  ;;  %v6627_v4 = vor.u32 %v8366_v56, %v6626_v55  ;;  %2734 = vmatpush.bf16.msra.mxu3 %v6147_v3  ;;  %v2490_v55 = vadd.f32 %v2489_v49, %v2477_v36  ;;  %v2502_v56 = vpop.f32.mrf.mxu1  ;;  %v5412_v36 = vld [vmem:[%s12993_s1 + $0x70] sm:$0xf0] }
 0x11c   :  { %v8430_v60 = vld [vmem:[%s12993_s1 + $0xbec] sm:$0xf0]  ;;  %2722 = vmatmul.bf16.vlgmr.msra.gmra.mxu2 %v9067_v19  ;;  %v5380_v49 = vld [vmem:[%s12993_s1 + $0x30] sm:$0xf0] }
 0x11d   :  { %v6883_v5 = vor.u32 %v8430_v60, %v6882_v57  ;;  %v6594_v7 = vld [vmem:[%s12993_s1 + $0x990] sm:$0xf]  ;;  %2740 = vmatpush.bf16.msrb.mxu0 %v6627_v4  ;;  %2766 = vmatpush.bf16.msrb.mxu2 %v5607_v6  ;;  %v5767_v57 = vor.u32 %v8146_v45, %v5764_v47  ;;  %v5476_v60 = vld [vmem:[%s12993_s1 + $0xf0] sm:$0xf0]  ;;  %v2503_v63 = vadd.f32 %v2502_v56, %v2490_v55 }
 0x11e   :  { %v8358_v8 = vld [vmem:[%s12993_s1 + $0x9ac] sm:$0xf0]  ;;  %2735 = vmatmul.bf16.vlgmr.msra.gmra.mxu3 %v9071_v22  ;;  %v5479_v3 = vor.u32 %v8074_v59, %v5476_v60  ;;  %v8050_v45 = vld [vmem:[%s12993_s1 + $0x14] sm:$0xf] }
 0x11f   :  { %v6850_v9 = vld [vmem:[%s12993_s1 + $0xb90] sm:$0xf]  ;;  %v6595_v16 = vor.u32 %v8358_v8, %v6594_v7  ;;  %2753 = vmatpush.bf16.msrb.mxu1 %v6883_v5  ;;  %2779 = vmatpush.bf16.msrb.mxu3 %v5863_v10  ;;  %v2515_v7 = vpop.f32.mrf.mxu2  ;;  %v5735_v8 = vor.u32 %v8138_v61, %v5732_v62  ;;  %v5444_v10 = vld [vmem:[%s12993_s1 + $0xb0] sm:$0xf0]  ;;  %v5383_v61 = vor.u32 %v8050_v45, %v5380_v49 }
 0x120   :  { %v8422_v11 = vld [vmem:[%s12993_s1 + $0xbac] sm:$0xf0]  ;;  %v8298_v55 = vld [vmem:[%s12993_s1 + $0x7d4] sm:$0xf] }
 0x121   :  { %v6851_v21 = vor.u32 %v8422_v11, %v6850_v9  ;;  %v6562_v25 = vld [vmem:[%s12993_s1 + $0x950] sm:$0xf]  ;;  %2741 = vmatpush.bf16.msrb.mxu0 %v6595_v16  ;;  %2767 = vmatpush.bf16.msrb.mxu2 %v5575_v23  ;;  %v8066_v9 = vld [vmem:[%s12993_s1 + $0x94] sm:$0xf]  ;;  %v2516_v11 = vadd.f32 %v2515_v7, %v2503_v63  ;;  %v2491_v23 = vpop.f32.mrf.mxu0 }
 0x122   :  { %v8350_v26 = vld [vmem:[%s12993_s1 + $0x96c] sm:$0xf0]  ;;  %v6628_v59 = vld [vmem:[%s12993_s1 + $0x9f0] sm:$0xf0] }
 0x123   :  { %v6818_v27 = vld [vmem:[%s12993_s1 + $0xb50] sm:$0xf]  ;;  %v6563_v34 = vor.u32 %v8350_v26, %v6562_v25  ;;  %2754 = vmatpush.bf16.msrb.mxu1 %v6851_v21  ;;  %2780 = vmatpush.bf16.msrb.mxu3 %v5831_v28  ;;  %v2529_v21 = vadd.f32 %v2528_v12, %v2516_v11  ;;  %v5447_v26 = vor.u32 %v8066_v9, %v5444_v10  ;;  %v2504_v30 = vpop.f32.mrf.mxu1  ;;  %v8426_v62 = vld [vmem:[%s12993_s1 + $0xbd4] sm:$0xf] }
 0x124   :  { %v8414_v29 = vld [vmem:[%s12993_s1 + $0xb6c] sm:$0xf0]  ;;  %v6884_v63 = vld [vmem:[%s12993_s1 + $0xbf0] sm:$0xf0] }
 0x125   :  { %v6819_v37 = vor.u32 %v8414_v29, %v6818_v27  ;;  %v6530_v40 = vld [vmem:[%s12993_s1 + $0x910] sm:$0xf]  ;;  %2742 = vmatpush.bf16.msrb.mxu0 %v6563_v34  ;;  %2768 = vmatpush.bf16.msrb.mxu2 %v5543_v39  ;;  %v3046_v32 = vadd.f32 %v3030_v13, %v2529_v21  ;;  %v8058_v34 = vld [vmem:[%s12993_s1 + $0x54] sm:$0xf]  ;;  %v6887_v7 = vor.u32 %v8426_v62, %v6884_v63 }
 0x126   :  { %v8342_v41 = vld [vmem:[%s12993_s1 + $0x92c] sm:$0xf0]  ;;  %v5668_v39 = vld [vmem:[%s12993_s1 + $0x270] sm:$0xf0] }
 0x127   :  { %v6786_v42 = vld [vmem:[%s12993_s1 + $0xb10] sm:$0xf]  ;;  %v6531_v48 = vor.u32 %v8342_v41, %v6530_v40  ;;  %2755 = vmatpush.bf16.msrb.mxu1 %v6819_v37  ;;  %2781 = vmatpush.bf16.msrb.mxu3 %v5799_v43  ;;  %v8122_v37 = vld [vmem:[%s12993_s1 + $0x254] sm:$0xf]  ;;  %3054 = vst [vmem:[%s12996_s7 + $0x8] sm:$0xff] %v3046_v32  ;;  %v2517_v47 = vpop.f32.mrf.mxu2 }
 0x128   :  { %v8406_v17 = vld [vmem:[%s12993_s1 + $0xb2c] sm:$0xf0]  ;;  %v8354_v9 = vld [vmem:[%s12993_s1 + $0x994] sm:$0xf] }
 0x129   :  { %v6787_v50 = vor.u32 %v8406_v17, %v6786_v42  ;;  %v6498_v52 = vld [vmem:[%s12993_s1 + $0x8d0] sm:$0xf]  ;;  %2743 = vmatpush.bf16.msrb.mxu0 %v6531_v48  ;;  %2769 = vmatpush.bf16.msrb.mxu2 %v5511_v51  ;;  %v5415_v17 = vor.u32 %v8058_v34, %v5412_v36  ;;  %v5671_v48 = vor.u32 %v8122_v37, %v5668_v39  ;;  %v5636_v51 = vld [vmem:[%s12993_s1 + $0x230] sm:$0xf0] }
 0x12a   :  { %v8334_v53 = vld [vmem:[%s12993_s1 + $0x8ec] sm:$0xf0]  ;;  %v6596_v10 = vld [vmem:[%s12993_s1 + $0x9b0] sm:$0xf0] }
 0x12b   :  { %v6754_v54 = vld [vmem:[%s12993_s1 + $0xad0] sm:$0xf]  ;;  %v6499_v0 = vor.u32 %v8334_v53, %v6498_v52  ;;  %2756 = vmatpush.bf16.msrb.mxu1 %v6787_v50  ;;  %2782 = vmatpush.bf16.msrb.mxu3 %v5767_v57  ;;  %v8114_v50 = vld [vmem:[%s12993_s1 + $0x214] sm:$0xf]  ;;  %v2530_v52 = vpop.f32.mrf.mxu3  ;;  %v6599_v15 = vor.u32 %v8354_v9, %v6596_v10 }
 0x12c   :  { %v8398_v58 = vld [vmem:[%s12993_s1 + $0xaec] sm:$0xf0]  ;;  %v8234_v53 = vld [vmem:[%s12993_s1 + $0x5d4] sm:$0xf] }
 0x12d   :  { %v6466_v1 = vld [vmem:[%s12993_s1 + $0x890] sm:$0xf]  ;;  %v6755_v2 = vor.u32 %v8398_v58, %v6754_v54  ;;  %2744 = vmatpush.bf16.msrb.mxu0 %v6499_v0  ;;  %2770 = vmatpush.bf16.msrb.mxu2 %v5479_v3  ;;  %v6116_v54 = vld [vmem:[%s12993_s1 + $0x5f0] sm:$0xf0]  ;;  %v5639_v0 = vor.u32 %v8114_v50, %v5636_v51 }
 0x12e   :  { %v8326_v4 = vld [vmem:[%s12993_s1 + $0x8ac] sm:$0xf0]  ;;  %v6372_v57 = vld [vmem:[%s12993_s1 + $0x7f0] sm:$0xf0] }
 0x12f   :  { %v6722_v5 = vld [vmem:[%s12993_s1 + $0xa90] sm:$0xf]  ;;  %v6467_v16 = vor.u32 %v8326_v4, %v6466_v1  ;;  %2757 = vmatpush.bf16.msrb.mxu1 %v6755_v2  ;;  %2783 = vmatpush.bf16.msrb.mxu3 %v5735_v8  ;;  %v8362_v58 = vld [vmem:[%s12993_s1 + $0x9d4] sm:$0xf]  ;;  %v6119_v1 = vor.u32 %v8234_v53, %v6116_v54  ;;  %v6375_v2 = vor.u32 %v8298_v55, %v6372_v57  ;;  %v10477_v45 = vpop.f32.mrf.mxu1 }
 0x130   :  { %v8390_v6 = vld [vmem:[%s12993_s1 + $0xaac] sm:$0xf0]  ;;  %v6631_v3 = vor.u32 %v8362_v58, %v6628_v59  ;;  %v8226_v4 = vld [vmem:[%s12993_s1 + $0x594] sm:$0xf] }
 0x131   :  { %v6723_v25 = vor.u32 %v8390_v6, %v6722_v5  ;;  %v6434_v27 = vld [vmem:[%s12993_s1 + $0x850] sm:$0xf]  ;;  %2745 = vmatpush.bf16.msrb.mxu0 %v6467_v16  ;;  %2771 = vmatpush.bf16.msrb.mxu2 %v5447_v26  ;;  %v6084_v5 = vld [vmem:[%s12993_s1 + $0x5b0] sm:$0xf0] }
 0x132   :  { %v8318_v28 = vld [vmem:[%s12993_s1 + $0x86c] sm:$0xf0]  ;;  %v8290_v6 = vld [vmem:[%s12993_s1 + $0x794] sm:$0xf]  ;;  %v6087_v13 = vor.u32 %v8226_v4, %v6084_v5 }
 0x133   :  { %v6690_v29 = vld [vmem:[%s12993_s1 + $0xa50] sm:$0xf]  ;;  %v6435_v40 = vor.u32 %v8318_v28, %v6434_v27  ;;  %2758 = vmatpush.bf16.msrb.mxu1 %v6723_v25  ;;  %2784 = vmatpush.bf16.msrb.mxu3 %v5703_v31  ;;  %v6340_v8 = vld [vmem:[%s12993_s1 + $0x7b0] sm:$0xf0] }
 0x134   :  { %v8382_v33 = vld [vmem:[%s12993_s1 + $0xa6c] sm:$0xf0]  ;;  %v8418_v11 = vld [vmem:[%s12993_s1 + $0xb94] sm:$0xf]  ;;  %v6343_v14 = vor.u32 %v8290_v6, %v6340_v8 }
 0x135   :  { %v6402_v41 = vld [vmem:[%s12993_s1 + $0x810] sm:$0xf]  ;;  %v6691_v43 = vor.u32 %v8382_v33, %v6690_v29  ;;  %2746 = vmatpush.bf16.msrb.mxu0 %v6435_v40  ;;  %2772 = vmatpush.bf16.msrb.mxu2 %v5415_v17  ;;  %v6852_v12 = vld [vmem:[%s12993_s1 + $0xbb0] sm:$0xf0] }
 0x136   :  { %v8310_v42 = vld [vmem:[%s12993_s1 + $0x82c] sm:$0xf0]  ;;  %v8218_v16 = vld [vmem:[%s12993_s1 + $0x554] sm:$0xf]  ;;  %v6855_v25 = vor.u32 %v8418_v11, %v6852_v12 }
 0x137   :  { %v6658_v24 = vld [vmem:[%s12993_s1 + $0xa10] sm:$0xf]  ;;  %v6403_v56 = vor.u32 %v8310_v42, %v6402_v41  ;;  %2759 = vmatpush.bf16.msrb.mxu1 %v6691_v43  ;;  %2785 = vmatpush.bf16.msrb.mxu3 %v5671_v48  ;;  %v6052_v21 = vld [vmem:[%s12993_s1 + $0x570] sm:$0xf0]  ;;  %v10521_v4 = vpop.f32.mrf.mxu2  ;;  %v2556_v10 = vpop.f32.mrf.mxu1 }
 0x138   :  { %v8374_v44 = vld [vmem:[%s12993_s1 + $0xa2c] sm:$0xf0]  ;;  %v8282_v23 = vld [vmem:[%s12993_s1 + $0x754] sm:$0xf]  ;;  %v6055_v31 = vor.u32 %v8218_v16, %v6052_v21  ;;  %v5546_v10 = vld [vmem:[%s12993_s1 + $0x158] sm:$0xf] }
 0x139   :  { %v6659_v60 = vor.u32 %v8374_v44, %v6658_v24  ;;  %2747 = vmatpush.bf16.msrb.mxu0 %v6403_v56  ;;  %2773 = vmatpush.bf16.msrb.mxu2 %v5383_v61  ;;  %v6308_v26 = vld [vmem:[%s12993_s1 + $0x770] sm:$0xf0]  ;;  %v10475_v24 = vpop.f32.mrf.mxu0  ;;  %v10529_v8 = vpop.f32.mrf.mxu3 }
 0x13a   :  { %v8346_v27 = vld [vmem:[%s12993_s1 + $0x954] sm:$0xf]  ;;  %v6311_v32 = vor.u32 %v8282_v23, %v6308_v26 }
 0x13b   :  { %2760 = vmatpush.bf16.msrb.mxu1 %v6659_v60  ;;  %2786 = vmatpush.bf16.msrb.mxu3 %v5639_v0  ;;  %v6564_v28 = vld [vmem:[%s12993_s1 + $0x970] sm:$0xf0] }
 0x13c   :  { %2748 = vmatmul.bf16.vlgmr.msrb.gmra.mxu0 %v9218_v35  ;;  %v8410_v29 = vld [vmem:[%s12993_s1 + $0xb54] sm:$0xf]  ;;  %2774 = vmatmul.bf16.vlgmr.msrb.gmra.mxu2 %v9065_v18  ;;  %v6567_v33 = vor.u32 %v8346_v27, %v6564_v28 }
 0x13d   :  { %2792 = vmatpush.bf16.msra.mxu0 %v6119_v1  ;;  %2818 = vmatpush.bf16.msra.mxu2 %v6631_v3  ;;  %v6820_v30 = vld [vmem:[%s12993_s1 + $0xb70] sm:$0xf0] }
 0x13e   :  { %2761 = vmatmul.bf16.vlgmr.msrb.gmra.mxu1 %v9226_v38  ;;  %2787 = vmatmul.bf16.vlgmr.msrb.gmra.mxu3 %v9069_v20  ;;  %v8210_v34 = vld [vmem:[%s12993_s1 + $0x514] sm:$0xf]  ;;  %v6823_v39 = vor.u32 %v8410_v29, %v6820_v30 }
 0x13f   :  { %2805 = vmatpush.bf16.msra.mxu1 %v6375_v2  ;;  %2831 = vmatpush.bf16.msra.mxu3 %v6887_v7  ;;  %v6020_v36 = vld [vmem:[%s12993_s1 + $0x530] sm:$0xf0] }
 0x140   :  { %v8274_v37 = vld [vmem:[%s12993_s1 + $0x714] sm:$0xf]  ;;  %v6023_v44 = vor.u32 %v8210_v34, %v6020_v36 }
 0x141   :  { %2793 = vmatpush.bf16.msra.mxu0 %v6087_v13  ;;  %2819 = vmatpush.bf16.msra.mxu2 %v6599_v15  ;;  %v6276_v40 = vld [vmem:[%s12993_s1 + $0x730] sm:$0xf0]  ;;  %v2543_v7 = vpop.f32.mrf.mxu0 }
 0x142   :  { %v8338_v41 = vld [vmem:[%s12993_s1 + $0x914] sm:$0xf]  ;;  %v6279_v47 = vor.u32 %v8274_v37, %v6276_v40 }
 0x143   :  { %2806 = vmatpush.bf16.msra.mxu1 %v6343_v14  ;;  %2832 = vmatpush.bf16.msra.mxu3 %v6855_v25  ;;  %v6532_v42 = vld [vmem:[%s12993_s1 + $0x930] sm:$0xf0] }
 0x144   :  { %v8402_v43 = vld [vmem:[%s12993_s1 + $0xb14] sm:$0xf]  ;;  %v6535_v48 = vor.u32 %v8338_v41, %v6532_v42  ;;  %v2569_v42 = vpop.f32.mrf.mxu2 }
 0x145   :  { %v6788_v17 = vld [vmem:[%s12993_s1 + $0xb30] sm:$0xf0]  ;;  %2794 = vmatpush.bf16.msra.mxu0 %v6055_v31  ;;  %2820 = vmatpush.bf16.msra.mxu2 %v6567_v33  ;;  %v3031_v42 = vperm.slane %v10052_v46, 2  ;;  %v8143_v46 = vld [vmem:[%s12993_s1 + $0x2f4] sm:$0xf0] }
 0x146   :  { %v8202_v49 = vld [vmem:[%s12993_s1 + $0x4d4] sm:$0xf]  ;;  %v6791_v52 = vor.u32 %v8402_v43, %v6788_v17  ;;  %v5610_v43 = vld [vmem:[%s12993_s1 + $0x1d8] sm:$0xf] }
 0x147   :  { %2807 = vmatpush.bf16.msra.mxu1 %v6311_v32  ;;  %v5988_v50 = vld [vmem:[%s12993_s1 + $0x4f0] sm:$0xf0]  ;;  %2833 = vmatpush.bf16.msra.mxu3 %v6823_v39  ;;  %v8111_v17 = vld [vmem:[%s12993_s1 + $0x1f4] sm:$0xf0] }
 0x148   :  { %v8266_v51 = vld [vmem:[%s12993_s1 + $0x6d4] sm:$0xf]  ;;  %v5991_v58 = vor.u32 %v8202_v49, %v5988_v50  ;;  %v8175_v49 = vld [vmem:[%s12993_s1 + $0x3f4] sm:$0xf0] }
 0x149   :  { %v6244_v53 = vld [vmem:[%s12993_s1 + $0x6f0] sm:$0xf0]  ;;  %2795 = vmatpush.bf16.msra.mxu0 %v6023_v44  ;;  %2821 = vmatpush.bf16.msra.mxu2 %v6535_v48  ;;  %v5866_v44 = vld [vmem:[%s12993_s1 + $0x3d8] sm:$0xf] }
 0x14a   :  { %v8330_v54 = vld [vmem:[%s12993_s1 + $0x8d4] sm:$0xf]  ;;  %v6247_v59 = vor.u32 %v8266_v51, %v6244_v53  ;;  %v6122_v50 = vld [vmem:[%s12993_s1 + $0x5d8] sm:$0xf] }
 0x14b   :  { %v6500_v55 = vld [vmem:[%s12993_s1 + $0x8f0] sm:$0xf0]  ;;  %2808 = vmatpush.bf16.msra.mxu1 %v6279_v47  ;;  %2834 = vmatpush.bf16.msra.mxu3 %v6791_v52  ;;  %v2582_v47 = vpop.f32.mrf.mxu3  ;;  %v8239_v51 = vld [vmem:[%s12993_s1 + $0x5f4] sm:$0xf0] }
 0x14c   :  { %v8394_v56 = vld [vmem:[%s12993_s1 + $0xad4] sm:$0xf]  ;;  %v6503_v60 = vor.u32 %v8330_v54, %v6500_v55  ;;  %v6378_v54 = vld [vmem:[%s12993_s1 + $0x7d8] sm:$0xf] }
 0x14d   :  { %v6756_v57 = vld [vmem:[%s12993_s1 + $0xaf0] sm:$0xf0]  ;;  %2796 = vmatpush.bf16.msra.mxu0 %v5991_v58  ;;  %v8303_v55 = vld [vmem:[%s12993_s1 + $0x7f4] sm:$0xf0]  ;;  %v2555_v58 = vadd.f32 %v10477_v45, %v10475_v24 }
 0x14e   :  { %v8194_v61 = vld [vmem:[%s12993_s1 + $0x494] sm:$0xf]  ;;  %v6759_v0 = vor.u32 %v8394_v56, %v6756_v57  ;;  %2822 = vmatpush.bf16.msra.mxu2 %v6503_v60  ;;  %v5611_v57 = vor.u32 %v8111_v17, %v5610_v43  ;;  %v6123_v60 = vor.u32 %v8239_v51, %v6122_v50  ;;  %v8167_v24 = vld [vmem:[%s12993_s1 + $0x3b4] sm:$0xf0] }
 0x14f   :  { %v5956_v62 = vld [vmem:[%s12993_s1 + $0x4b0] sm:$0xf0]  ;;  %2809 = vmatpush.bf16.msra.mxu1 %v6247_v59  ;;  %v5867_v59 = vor.u32 %v8175_v49, %v5866_v44  ;;  %v6090_v45 = vld [vmem:[%s12993_s1 + $0x598] sm:$0xf] }
 0x150   :  { %v8258_v63 = vld [vmem:[%s12993_s1 + $0x694] sm:$0xf]  ;;  %v5959_v9 = vor.u32 %v8194_v61, %v5956_v62  ;;  %2835 = vmatpush.bf16.msra.mxu3 %v6759_v0  ;;  %v5578_v61 = vld [vmem:[%s12993_s1 + $0x198] sm:$0xf]  ;;  %v6379_v0 = vor.u32 %v8303_v55, %v6378_v54 }
 0x151   :  { %v6212_v1 = vld [vmem:[%s12993_s1 + $0x6b0] sm:$0xf0]  ;;  %v8103_v62 = vld [vmem:[%s12993_s1 + $0x1b4] sm:$0xf0] }
 0x152   :  { %v8322_v2 = vld [vmem:[%s12993_s1 + $0x894] sm:$0xf]  ;;  %v6215_v11 = vor.u32 %v8258_v63, %v6212_v1  ;;  %2797 = vmatpush.bf16.msra.mxu0 %v5959_v9  ;;  %v5834_v63 = vld [vmem:[%s12993_s1 + $0x398] sm:$0xf] }
 0x153   :  { %v6468_v3 = vld [vmem:[%s12993_s1 + $0x8b0] sm:$0xf0]  ;;  %v8231_v1 = vld [vmem:[%s12993_s1 + $0x5b4] sm:$0xf0]  ;;  %v5835_v7 = vor.u32 %v8167_v24, %v5834_v63 }
 0x154   :  { %v8386_v5 = vld [vmem:[%s12993_s1 + $0xa94] sm:$0xf]  ;;  %v6471_v12 = vor.u32 %v8322_v2, %v6468_v3  ;;  %2810 = vmatpush.bf16.msra.mxu1 %v6215_v11  ;;  %v6346_v2 = vld [vmem:[%s12993_s1 + $0x798] sm:$0xf]  ;;  %v6091_v9 = vor.u32 %v8231_v1, %v6090_v45 }
 0x155   :  { %v6724_v6 = vld [vmem:[%s12993_s1 + $0xab0] sm:$0xf0]  ;;  %v8295_v3 = vld [vmem:[%s12993_s1 + $0x7b4] sm:$0xf0] }
 0x156   :  { %v8186_v13 = vld [vmem:[%s12993_s1 + $0x454] sm:$0xf]  ;;  %v6727_v16 = vor.u32 %v8386_v5, %v6724_v6  ;;  %2823 = vmatpush.bf16.msra.mxu2 %v6471_v12  ;;  %v5579_v5 = vor.u32 %v8103_v62, %v5578_v61  ;;  %v2568_v6 = vadd.f32 %v10521_v4, %v2555_v58  ;;  %v8095_v11 = vld [vmem:[%s12993_s1 + $0x174] sm:$0xf0] }
 0x157   :  { %v5924_v14 = vld [vmem:[%s12993_s1 + $0x470] sm:$0xf0]  ;;  %v5802_v12 = vld [vmem:[%s12993_s1 + $0x358] sm:$0xf]  ;;  %v10732_v45 = vpop.f32.mrf.mxu2 }
 0x158   :  { %v8250_v15 = vld [vmem:[%s12993_s1 + $0x654] sm:$0xf]  ;;  %v5927_v28 = vor.u32 %v8186_v13, %v5924_v14  ;;  %2836 = vmatpush.bf16.msra.mxu3 %v6727_v16  ;;  %v6347_v13 = vor.u32 %v8295_v3, %v6346_v2  ;;  %v8159_v4 = vld [vmem:[%s12993_s1 + $0x374] sm:$0xf0] }
 0x159   :  { %v6180_v21 = vld [vmem:[%s12993_s1 + $0x670] sm:$0xf0]  ;;  %v6058_v14 = vld [vmem:[%s12993_s1 + $0x558] sm:$0xf]  ;;  %v10740_v3 = vpop.f32.mrf.mxu3 }
 0x15a   :  { %v8314_v23 = vld [vmem:[%s12993_s1 + $0x854] sm:$0xf]  ;;  %v6183_v31 = vor.u32 %v8250_v15, %v6180_v21  ;;  %2798 = vmatpush.bf16.msra.mxu0 %v5927_v28  ;;  %v8223_v15 = vld [vmem:[%s12993_s1 + $0x574] sm:$0xf0] }
 0x15b   :  { %v6436_v25 = vld [vmem:[%s12993_s1 + $0x870] sm:$0xf0]  ;;  %v6314_v16 = vld [vmem:[%s12993_s1 + $0x758] sm:$0xf] }
 0x15c   :  { %v8378_v26 = vld [vmem:[%s12993_s1 + $0xa54] sm:$0xf]  ;;  %v6439_v32 = vor.u32 %v8314_v23, %v6436_v25  ;;  %2811 = vmatpush.bf16.msra.mxu1 %v6183_v31  ;;  %v8287_v21 = vld [vmem:[%s12993_s1 + $0x774] sm:$0xf0]  ;;  %v5547_v23 = vor.u32 %v8095_v11, %v5546_v10  ;;  %v2581_v25 = vadd.f32 %v10529_v8, %v2568_v6 }
 0x15d   :  { %v6692_v27 = vld [vmem:[%s12993_s1 + $0xa70] sm:$0xf0]  ;;  %v5514_v28 = vld [vmem:[%s12993_s1 + $0x118] sm:$0xf]  ;;  %v6315_v8 = vor.u32 %v8287_v21, %v6314_v16 }
 0x15e   :  { %v8178_v29 = vld [vmem:[%s12993_s1 + $0x414] sm:$0xf]  ;;  %v6695_v37 = vor.u32 %v8378_v26, %v6692_v27  ;;  %2824 = vmatpush.bf16.msra.mxu2 %v6439_v32  ;;  %v5803_v26 = vor.u32 %v8159_v4, %v5802_v12  ;;  %v6059_v27 = vor.u32 %v8223_v15, %v6058_v14  ;;  %v8151_v31 = vld [vmem:[%s12993_s1 + $0x334] sm:$0xf0] }
 0x15f   :  { %v5892_v30 = vld [vmem:[%s12993_s1 + $0x430] sm:$0xf0]  ;;  %v6026_v32 = vld [vmem:[%s12993_s1 + $0x518] sm:$0xf] }
 0x160   :  { %v8242_v33 = vld [vmem:[%s12993_s1 + $0x614] sm:$0xf]  ;;  %v5895_v48 = vor.u32 %v8178_v29, %v5892_v30  ;;  %2837 = vmatpush.bf16.msra.mxu3 %v6695_v37  ;;  %v8087_v29 = vld [vmem:[%s12993_s1 + $0x134] sm:$0xf0]  ;;  %v2593_v37 = vpop.f32.mrf.mxu0 }
 0x161   :  { %v6148_v34 = vld [vmem:[%s12993_s1 + $0x630] sm:$0xf0]  ;;  %v5770_v30 = vld [vmem:[%s12993_s1 + $0x318] sm:$0xf] }
 0x162   :  { %v8306_v36 = vld [vmem:[%s12993_s1 + $0x814] sm:$0xf]  ;;  %v6151_v52 = vor.u32 %v8242_v33, %v6148_v34  ;;  %2799 = vmatpush.bf16.msra.mxu0 %v5895_v48  ;;  %v8215_v33 = vld [vmem:[%s12993_s1 + $0x534] sm:$0xf0]  ;;  %v5771_v43 = vor.u32 %v8151_v31, %v5770_v30 }
 0x163   :  { %v6404_v39 = vld [vmem:[%s12993_s1 + $0x830] sm:$0xf0]  ;;  %v6282_v34 = vld [vmem:[%s12993_s1 + $0x718] sm:$0xf]  ;;  %v6027_v17 = vor.u32 %v8215_v33, %v6026_v32 }
 0x164   :  { %v8370_v40 = vld [vmem:[%s12993_s1 + $0xa14] sm:$0xf]  ;;  %v6407_v53 = vor.u32 %v8306_v36, %v6404_v39  ;;  %2812 = vmatpush.bf16.msra.mxu1 %v6151_v52  ;;  %v8279_v36 = vld [vmem:[%s12993_s1 + $0x734] sm:$0xf0]  ;;  %v5515_v39 = vor.u32 %v8087_v29, %v5514_v28 }
 0x165   :  { %v6660_v41 = vld [vmem:[%s12993_s1 + $0xa30] sm:$0xf0]  ;;  %2800 = vmatmul.bf16.vlgmr.msra.gmra.mxu0 %v9067_v19  ;;  %v5482_v44 = vld [vmem:[%s12993_s1 + $0xd8] sm:$0xf]  ;;  %v6283_v49 = vor.u32 %v8279_v36, %v6282_v34 }
 0x166   :  { %v6663_v56 = vor.u32 %v8370_v40, %v6660_v41  ;;  %2825 = vmatpush.bf16.msra.mxu2 %v6407_v53  ;;  %2844 = vmatpush.bf16.msrb.mxu0 %v5611_v57  ;;  %v2594_v40 = vadd.f32 %v2593_v37, %v2581_v25  ;;  %v2606_v41 = vpop.f32.mrf.mxu1  ;;  %v8079_v47 = vld [vmem:[%s12993_s1 + $0xf4] sm:$0xf0]  ;;  %v2621_v37 = vpop.f32.mrf.mxu2 }
 0x167   :  { %2813 = vmatmul.bf16.vlgmr.msra.gmra.mxu1 %v9071_v22  ;;  %v5738_v48 = vld [vmem:[%s12993_s1 + $0x2d8] sm:$0xf]  ;;  %v5483_v55 = vor.u32 %v8079_v47, %v5482_v44  ;;  %v8107_v44 = vld [vmem:[%s12993_s1 + $0x1dc] sm:$0xf] }
 0x168   :  { %2838 = vmatpush.bf16.msra.mxu3 %v6663_v56  ;;  %2857 = vmatpush.bf16.msrb.mxu1 %v5867_v59  ;;  %v5994_v50 = vld [vmem:[%s12993_s1 + $0x4d8] sm:$0xf]  ;;  %v2607_v52 = vadd.f32 %v2606_v41, %v2594_v40  ;;  %v5739_v58 = vor.u32 %v8143_v46, %v5738_v48  ;;  %v5612_v47 = vld [vmem:[%s12993_s1 + $0x1f8] sm:$0xf0] }
 0x169   :  { %2826 = vmatmul.bf16.vlgmr.msra.gmra.mxu2 %v9218_v35  ;;  %v8207_v51 = vld [vmem:[%s12993_s1 + $0x4f4] sm:$0xf0]  ;;  %v8171_v46 = vld [vmem:[%s12993_s1 + $0x3dc] sm:$0xf] }
 0x16a   :  { %2870 = vmatpush.bf16.msrb.mxu2 %v6123_v60  ;;  %2845 = vmatpush.bf16.msrb.mxu0 %v5579_v5  ;;  %v6250_v53 = vld [vmem:[%s12993_s1 + $0x6d8] sm:$0xf]  ;;  %v10708_v56 = vadd.f32 %v3031_v42, %v2607_v52  ;;  %v5995_v59 = vor.u32 %v8207_v51, %v5994_v50  ;;  %v2595_v5 = vpop.f32.mrf.mxu0  ;;  %v2634_v42 = vpop.f32.mrf.mxu3  ;;  %v5868_v50 = vld [vmem:[%s12993_s1 + $0x3f8] sm:$0xf0] }
 0x16b   :  { %2839 = vmatmul.bf16.vlgmr.msra.gmra.mxu3 %v9226_v38  ;;  %v8271_v54 = vld [vmem:[%s12993_s1 + $0x6f4] sm:$0xf0] }
 0x16c   :  { %2883 = vmatpush.bf16.msrb.mxu3 %v6379_v0  ;;  %2858 = vmatpush.bf16.msrb.mxu1 %v5835_v7  ;;  %v5450_v57 = vld [vmem:[%s12993_s1 + $0x98] sm:$0xf]  ;;  %v6251_v63 = vor.u32 %v8271_v54, %v6250_v53  ;;  %3055 = vst [vmem:[%s12996_s7 + $0x10] sm:$0xff] %v10708_v56  ;;  %v5615_v54 = vor.u32 %v8107_v44, %v5612_v47  ;;  %v8139_v44 = vld [vmem:[%s12993_s1 + $0x2dc] sm:$0xf] }
 0x16d   :  { %v8071_v60 = vld [vmem:[%s12993_s1 + $0xb4] sm:$0xf0]  ;;  %v5740_v47 = vld [vmem:[%s12993_s1 + $0x2f8] sm:$0xf0] }
 0x16e   :  { %2871 = vmatpush.bf16.msrb.mxu2 %v6091_v9  ;;  %2846 = vmatpush.bf16.msrb.mxu0 %v5547_v23  ;;  %v5706_v61 = vld [vmem:[%s12993_s1 + $0x298] sm:$0xf]  ;;  %v5451_v6 = vor.u32 %v8071_v60, %v5450_v57  ;;  %v2608_v7 = vpop.f32.mrf.mxu1 }
 0x16f   :  { %v8135_v62 = vld [vmem:[%s12993_s1 + $0x2b4] sm:$0xf0] }
 0x170   :  { %2884 = vmatpush.bf16.msrb.mxu3 %v6347_v13  ;;  %2859 = vmatpush.bf16.msrb.mxu1 %v5803_v26  ;;  %v5962_v0 = vld [vmem:[%s12993_s1 + $0x498] sm:$0xf]  ;;  %v5707_v9 = vor.u32 %v8135_v62, %v5706_v61  ;;  %v8099_v61 = vld [vmem:[%s12993_s1 + $0x19c] sm:$0xf] }
 0x171   :  { %v8199_v24 = vld [vmem:[%s12993_s1 + $0x4b4] sm:$0xf0]  ;;  %v5580_v62 = vld [vmem:[%s12993_s1 + $0x1b8] sm:$0xf0] }
 0x172   :  { %2872 = vmatpush.bf16.msrb.mxu2 %v6059_v27  ;;  %2847 = vmatpush.bf16.msrb.mxu0 %v5515_v39  ;;  %v6218_v1 = vld [vmem:[%s12993_s1 + $0x698] sm:$0xf]  ;;  %v5963_v10 = vor.u32 %v8199_v24, %v5962_v0  ;;  %v5836_v0 = vld [vmem:[%s12993_s1 + $0x3b8] sm:$0xf0] }
 0x173   :  { %v8263_v2 = vld [vmem:[%s12993_s1 + $0x6b4] sm:$0xf0] }
 0x174   :  { %2885 = vmatpush.bf16.msrb.mxu3 %v6315_v8  ;;  %2860 = vmatpush.bf16.msrb.mxu1 %v5771_v43  ;;  %v5418_v11 = vld [vmem:[%s12993_s1 + $0x58] sm:$0xf]  ;;  %v6219_v4 = vor.u32 %v8263_v2, %v6218_v1  ;;  %v5583_v2 = vor.u32 %v8099_v61, %v5580_v62  ;;  %v10937_v62 = vld [vmem:[%s12995_s2] sm:$0xff] }
 0x175   :  { %v8063_v12 = vld [vmem:[%s12993_s1 + $0x74] sm:$0xf0] }
 0x176   :  { %2873 = vmatpush.bf16.msrb.mxu2 %v6027_v17  ;;  %2848 = vmatpush.bf16.msrb.mxu0 %v5483_v55  ;;  %v5674_v13 = vld [vmem:[%s12993_s1 + $0x258] sm:$0xf]  ;;  %v5419_v25 = vor.u32 %v8063_v12, %v5418_v11  ;;  %v8091_v11 = vld [vmem:[%s12993_s1 + $0x15c] sm:$0xf] }
 0x177   :  { %v8127_v14 = vld [vmem:[%s12993_s1 + $0x274] sm:$0xf0]  ;;  %v5548_v12 = vld [vmem:[%s12993_s1 + $0x178] sm:$0xf0] }
 0x178   :  { %2886 = vmatpush.bf16.msrb.mxu3 %v6283_v49  ;;  %2861 = vmatpush.bf16.msrb.mxu1 %v5739_v58  ;;  %v5930_v15 = vld [vmem:[%s12993_s1 + $0x458] sm:$0xf]  ;;  %v5675_v28 = vor.u32 %v8127_v14, %v5674_v13  ;;  %v8155_v13 = vld [vmem:[%s12993_s1 + $0x35c] sm:$0xf] }
 0x179   :  { %v8191_v16 = vld [vmem:[%s12993_s1 + $0x474] sm:$0xf0] }
 0x17a   :  { %2874 = vmatpush.bf16.msrb.mxu2 %v5995_v59  ;;  %v6186_v21 = vld [vmem:[%s12993_s1 + $0x658] sm:$0xf]  ;;  %2849 = vmatpush.bf16.msrb.mxu0 %v5451_v6  ;;  %v5931_v29 = vor.u32 %v8191_v16, %v5930_v15  ;;  %v5871_v59 = vor.u32 %v8171_v46, %v5868_v50  ;;  %v2633_v15 = vadd.f32 %v10740_v3, %v10732_v45  ;;  %v8083_v3 = vld [vmem:[%s12993_s1 + $0x11c] sm:$0xf] }
 0x17b   :  { %v8255_v23 = vld [vmem:[%s12993_s1 + $0x674] sm:$0xf0] }
 0x17c   :  { %2887 = vmatpush.bf16.msrb.mxu3 %v6251_v63  ;;  %v5386_v26 = vld [vmem:[%s12993_s1 + $0x18] sm:$0xf]  ;;  %2862 = vmatpush.bf16.msrb.mxu1 %v5707_v9  ;;  %v6187_v32 = vor.u32 %v8255_v23, %v6186_v21  ;;  %v8163_v63 = vld [vmem:[%s12993_s1 + $0x39c] sm:$0xf]  ;;  %v5551_v21 = vor.u32 %v8091_v11, %v5548_v12 }
 0x17d   :  { %v8055_v27 = vld [vmem:[%s12993_s1 + $0x34] sm:$0xf0]  ;;  %v5839_v9 = vor.u32 %v8163_v63, %v5836_v0  ;;  %v3032_v63 = vperm.slane %v10937_v62, 3  ;;  %v8131_v0 = vld [vmem:[%s12993_s1 + $0x29c] sm:$0xf] }
 0x17e   :  { %2875 = vmatpush.bf16.msrb.mxu2 %v5963_v10  ;;  %v5642_v30 = vld [vmem:[%s12993_s1 + $0x218] sm:$0xf]  ;;  %2850 = vmatpush.bf16.msrb.mxu0 %v5419_v25  ;;  %v5387_v43 = vor.u32 %v8055_v27, %v5386_v26 }
 0x17f   :  { %v8119_v8 = vld [vmem:[%s12993_s1 + $0x234] sm:$0xf0] }
 0x180   :  { %v5898_v31 = vld [vmem:[%s12993_s1 + $0x418] sm:$0xf]  ;;  %2888 = vmatpush.bf16.msrb.mxu3 %v6219_v4  ;;  %2863 = vmatpush.bf16.msrb.mxu1 %v5675_v28  ;;  %v5643_v48 = vor.u32 %v8119_v8, %v5642_v30  ;;  %v5804_v4 = vld [vmem:[%s12993_s1 + $0x378] sm:$0xf0]  ;;  %v2684_v61 = vpop.f32.mrf.mxu3 }
 0x181   :  { %v8183_v33 = vld [vmem:[%s12993_s1 + $0x434] sm:$0xf0]  ;;  %v5807_v27 = vor.u32 %v8155_v13, %v5804_v4  ;;  %v5516_v28 = vld [vmem:[%s12993_s1 + $0x138] sm:$0xf0] }
 0x182   :  { %v6154_v34 = vld [vmem:[%s12993_s1 + $0x618] sm:$0xf]  ;;  %2876 = vmatpush.bf16.msrb.mxu2 %v5931_v29  ;;  %v5899_v49 = vor.u32 %v8183_v33, %v5898_v31  ;;  %2851 = vmatpush.bf16.msrb.mxu0 %v5387_v43  ;;  %v8147_v29 = vld [vmem:[%s12993_s1 + $0x31c] sm:$0xf]  ;;  %v2645_v31 = vpop.f32.mrf.mxu0  ;;  %v5519_v33 = vor.u32 %v8083_v3, %v5516_v28 }
 0x183   :  { %v8247_v36 = vld [vmem:[%s12993_s1 + $0x634] sm:$0xf0]  ;;  %v5772_v30 = vld [vmem:[%s12993_s1 + $0x338] sm:$0xf0] }
 0x184   :  { %v6634_v39 = vld [vmem:[%s12993_s1 + $0x9d8] sm:$0xf]  ;;  %2889 = vmatpush.bf16.msrb.mxu3 %v6187_v32  ;;  %v6155_v51 = vor.u32 %v8247_v36, %v6154_v34  ;;  %2864 = vmatpush.bf16.msrb.mxu1 %v5643_v48  ;;  %v8075_v43 = vld [vmem:[%s12993_s1 + $0xdc] sm:$0xf] }
 0x185   :  { %v8367_v40 = vld [vmem:[%s12993_s1 + $0x9f4] sm:$0xf0]  ;;  %2852 = vmatmul.bf16.vlgmr.msrb.gmra.mxu0 %v9065_v18 }
 0x186   :  { %v6890_v41 = vld [vmem:[%s12993_s1 + $0xbd8] sm:$0xf]  ;;  %v6635_v52 = vor.u32 %v8367_v40, %v6634_v39  ;;  %2877 = vmatpush.bf16.msrb.mxu2 %v5899_v49  ;;  %v2646_v39 = vadd.f32 %v2645_v31, %v2633_v15  ;;  %v2658_v40 = vpop.f32.mrf.mxu1  ;;  %v8059_v15 = vld [vmem:[%s12993_s1 + $0x5c] sm:$0xf] }
 0x187   :  { %v8431_v17 = vld [vmem:[%s12993_s1 + $0xbf4] sm:$0xf0]  ;;  %2865 = vmatmul.bf16.vlgmr.msrb.gmra.mxu1 %v9069_v20 }
 0x188   :  { %v6891_v53 = vor.u32 %v8431_v17, %v6890_v41  ;;  %v6602_v55 = vld [vmem:[%s12993_s1 + $0x998] sm:$0xf]  ;;  %2890 = vmatpush.bf16.msrb.mxu3 %v6155_v51  ;;  %2896 = vmatpush.bf16.msra.mxu0 %v6635_v52  ;;  %v5775_v41 = vor.u32 %v8147_v29, %v5772_v30  ;;  %v5484_v17 = vld [vmem:[%s12993_s1 + $0xf8] sm:$0xf0]  ;;  %v2659_v48 = vadd.f32 %v2658_v40, %v2646_v39 }
 0x189   :  { %v8359_v57 = vld [vmem:[%s12993_s1 + $0x9b4] sm:$0xf0]  ;;  %2878 = vmatmul.bf16.vlgmr.msrb.gmra.mxu2 %v9067_v19  ;;  %v5487_v51 = vor.u32 %v8075_v43, %v5484_v17  ;;  %v8051_v30 = vld [vmem:[%s12993_s1 + $0x1c] sm:$0xf] }
 0x18a   :  { %v6858_v58 = vld [vmem:[%s12993_s1 + $0xb98] sm:$0xf]  ;;  %v6603_v24 = vor.u32 %v8359_v57, %v6602_v55  ;;  %2909 = vmatpush.bf16.msra.mxu1 %v6891_v53  ;;  %2922 = vmatpush.bf16.msra.mxu2 %v5615_v54  ;;  %v2671_v55 = vpop.f32.mrf.mxu2  ;;  %v5743_v57 = vor.u32 %v8139_v44, %v5740_v47  ;;  %v6124_v39 = vld [vmem:[%s12993_s1 + $0x5f8] sm:$0xf0] }
 0x18b   :  { %v8423_v60 = vld [vmem:[%s12993_s1 + $0xbb4] sm:$0xf0]  ;;  %2891 = vmatmul.bf16.vlgmr.msrb.gmra.mxu3 %v9071_v22  ;;  %v8299_v40 = vld [vmem:[%s12993_s1 + $0x7dc] sm:$0xf] }
 0x18c   :  { %v6859_v1 = vor.u32 %v8423_v60, %v6858_v58  ;;  %v6570_v5 = vld [vmem:[%s12993_s1 + $0x958] sm:$0xf]  ;;  %2935 = vmatpush.bf16.msra.mxu3 %v5871_v59  ;;  %2897 = vmatpush.bf16.msra.mxu0 %v6603_v24  ;;  %v8067_v58 = vld [vmem:[%s12993_s1 + $0x9c] sm:$0xf]  ;;  %v2672_v60 = vadd.f32 %v2671_v55, %v2659_v48 }
 0x18d   :  { %v8351_v6 = vld [vmem:[%s12993_s1 + $0x974] sm:$0xf0]  ;;  %v5452_v59 = vld [vmem:[%s12993_s1 + $0xb8] sm:$0xf0] }
 0x18e   :  { %v6826_v7 = vld [vmem:[%s12993_s1 + $0xb58] sm:$0xf]  ;;  %v6571_v14 = vor.u32 %v8351_v6, %v6570_v5  ;;  %2910 = vmatpush.bf16.msra.mxu1 %v6859_v1  ;;  %2923 = vmatpush.bf16.msra.mxu2 %v5583_v2  ;;  %v5708_v24 = vld [vmem:[%s12993_s1 + $0x2b8] sm:$0xf0]  ;;  %v2685_v2 = vadd.f32 %v2684_v61, %v2672_v60  ;;  %v2647_v5 = vpop.f32.mrf.mxu0  ;;  %v2660_v12 = vpop.f32.mrf.mxu1 }
 0x18f   :  { %v8415_v10 = vld [vmem:[%s12993_s1 + $0xb74] sm:$0xf0]  ;;  %v5711_v13 = vor.u32 %v8131_v0, %v5708_v24  ;;  %v8363_v43 = vld [vmem:[%s12993_s1 + $0x9dc] sm:$0xf] }
 0x190   :  { %v6827_v16 = vor.u32 %v8415_v10, %v6826_v7  ;;  %v6538_v23 = vld [vmem:[%s12993_s1 + $0x918] sm:$0xf]  ;;  %2936 = vmatpush.bf16.msra.mxu3 %v5839_v9  ;;  %2898 = vmatpush.bf16.msra.mxu0 %v6571_v14  ;;  %v5455_v7 = vor.u32 %v8067_v58, %v5452_v59  ;;  %v10955_v4 = vadd.f32 %v3032_v63, %v2685_v2  ;;  %v6636_v17 = vld [vmem:[%s12993_s1 + $0x9f8] sm:$0xf0] }
 0x191   :  { %v8343_v25 = vld [vmem:[%s12993_s1 + $0x934] sm:$0xf0]  ;;  %v8427_v48 = vld [vmem:[%s12993_s1 + $0xbdc] sm:$0xf] }
 0x192   :  { %v6794_v26 = vld [vmem:[%s12993_s1 + $0xb18] sm:$0xf]  ;;  %v6539_v8 = vor.u32 %v8343_v25, %v6538_v23  ;;  %2911 = vmatpush.bf16.msra.mxu1 %v6827_v16  ;;  %2924 = vmatpush.bf16.msra.mxu2 %v5551_v21  ;;  %v5420_v16 = vld [vmem:[%s12993_s1 + $0x78] sm:$0xf0]  ;;  %3056 = vst [vmem:[%s12996_s7 + $0x18] sm:$0xff] %v10955_v4 }
 0x193   :  { %v8407_v45 = vld [vmem:[%s12993_s1 + $0xb34] sm:$0xf0]  ;;  %v8123_v21 = vld [vmem:[%s12993_s1 + $0x25c] sm:$0xf]  ;;  %v5423_v3 = vor.u32 %v8059_v15, %v5420_v16 }
 0x194   :  { %v6795_v32 = vor.u32 %v8407_v45, %v6794_v26  ;;  %v6506_v34 = vld [vmem:[%s12993_s1 + $0x8d8] sm:$0xf]  ;;  %2937 = vmatpush.bf16.msra.mxu3 %v5807_v27  ;;  %2899 = vmatpush.bf16.msra.mxu0 %v6539_v8  ;;  %v5676_v23 = vld [vmem:[%s12993_s1 + $0x278] sm:$0xf0]  ;;  %v2673_v8 = vpop.f32.mrf.mxu2 }
 0x195   :  { %v8335_v36 = vld [vmem:[%s12993_s1 + $0x8f4] sm:$0xf0]  ;;  %v5679_v31 = vor.u32 %v8123_v21, %v5676_v23  ;;  %v8291_v55 = vld [vmem:[%s12993_s1 + $0x79c] sm:$0xf] }
 0x196   :  { %v6762_v37 = vld [vmem:[%s12993_s1 + $0xad8] sm:$0xf]  ;;  %v6507_v49 = vor.u32 %v8335_v36, %v6506_v34  ;;  %2912 = vmatpush.bf16.msra.mxu1 %v6795_v32  ;;  %2925 = vmatpush.bf16.msra.mxu2 %v5519_v33  ;;  %v5388_v32 = vld [vmem:[%s12993_s1 + $0x38] sm:$0xf0]  ;;  %v2686_v36 = vpop.f32.mrf.mxu3 }
 0x197   :  { %v8399_v42 = vld [vmem:[%s12993_s1 + $0xaf4] sm:$0xf0]  ;;  %v8115_v33 = vld [vmem:[%s12993_s1 + $0x21c] sm:$0xf]  ;;  %v5391_v47 = vor.u32 %v8051_v30, %v5388_v32  ;;  %v11102_v30 = vpop.f32.mrf.mxu1 }
 0x198   :  { %v6474_v46 = vld [vmem:[%s12993_s1 + $0x898] sm:$0xf]  ;;  %v6763_v50 = vor.u32 %v8399_v42, %v6762_v37  ;;  %2938 = vmatpush.bf16.msra.mxu3 %v5775_v41  ;;  %2900 = vmatpush.bf16.msra.mxu0 %v6507_v49  ;;  %v5644_v34 = vld [vmem:[%s12993_s1 + $0x238] sm:$0xf0] }
 0x199   :  { %v8327_v52 = vld [vmem:[%s12993_s1 + $0x8b4] sm:$0xf0]  ;;  %v8235_v37 = vld [vmem:[%s12993_s1 + $0x5dc] sm:$0xf] }
 0x19a   :  { %v6730_v53 = vld [vmem:[%s12993_s1 + $0xa98] sm:$0xf]  ;;  %v6475_v1 = vor.u32 %v8327_v52, %v6474_v46  ;;  %2913 = vmatpush.bf16.msra.mxu1 %v6763_v50  ;;  %2926 = vmatpush.bf16.msra.mxu2 %v5487_v51  ;;  %v6380_v42 = vld [vmem:[%s12993_s1 + $0x7f8] sm:$0xf0]  ;;  %v5647_v46 = vor.u32 %v8115_v33, %v5644_v34  ;;  %v6127_v50 = vor.u32 %v8235_v37, %v6124_v39 }
 0x19b   :  { %v8391_v54 = vld [vmem:[%s12993_s1 + $0xab4] sm:$0xf0]  ;;  %v6892_v49 = vld [vmem:[%s12993_s1 + $0xbf8] sm:$0xf0]  ;;  %v6383_v51 = vor.u32 %v8299_v40, %v6380_v42  ;;  %v6639_v52 = vor.u32 %v8363_v43, %v6636_v17 }
 0x19c   :  { %v6731_v6 = vor.u32 %v8391_v54, %v6730_v53  ;;  %v6442_v9 = vld [vmem:[%s12993_s1 + $0x858] sm:$0xf]  ;;  %2939 = vmatpush.bf16.msra.mxu3 %v5743_v57  ;;  %2901 = vmatpush.bf16.msra.mxu0 %v6475_v1  ;;  %v8227_v53 = vld [vmem:[%s12993_s1 + $0x59c] sm:$0xf]  ;;  %v6895_v57 = vor.u32 %v8427_v48, %v6892_v49 }
 0x19d   :  { %v8319_v10 = vld [vmem:[%s12993_s1 + $0x874] sm:$0xf0]  ;;  %v6092_v54 = vld [vmem:[%s12993_s1 + $0x5b8] sm:$0xf0] }
 0x19e   :  { %v6698_v11 = vld [vmem:[%s12993_s1 + $0xa58] sm:$0xf]  ;;  %v6443_v25 = vor.u32 %v8319_v10, %v6442_v9  ;;  %2914 = vmatpush.bf16.msra.mxu1 %v6731_v6  ;;  %2927 = vmatpush.bf16.msra.mxu2 %v5455_v7  ;;  %v6348_v58 = vld [vmem:[%s12993_s1 + $0x7b8] sm:$0xf0]  ;;  %v6095_v0 = vor.u32 %v8227_v53, %v6092_v54 }
 0x19f   :  { %v8383_v14 = vld [vmem:[%s12993_s1 + $0xa74] sm:$0xf0]  ;;  %v8355_v59 = vld [vmem:[%s12993_s1 + $0x99c] sm:$0xf]  ;;  %v6351_v24 = vor.u32 %v8291_v55, %v6348_v58  ;;  %v11146_v53 = vpop.f32.mrf.mxu2 }
 0x1a0   :  { %v6410_v26 = vld [vmem:[%s12993_s1 + $0x818] sm:$0xf]  ;;  %v6699_v45 = vor.u32 %v8383_v14, %v6698_v11  ;;  %2940 = vmatpush.bf16.msra.mxu3 %v5711_v13  ;;  %2902 = vmatpush.bf16.msra.mxu0 %v6443_v25  ;;  %v6604_v60 = vld [vmem:[%s12993_s1 + $0x9b8] sm:$0xf0] }
 0x1a1   :  { %v8311_v27 = vld [vmem:[%s12993_s1 + $0x834] sm:$0xf0]  ;;  %v8419_v61 = vld [vmem:[%s12993_s1 + $0xb9c] sm:$0xf]  ;;  %v6607_v1 = vor.u32 %v8355_v59, %v6604_v60  ;;  %v11154_v58 = vpop.f32.mrf.mxu3  ;;  %v2712_v60 = vpop.f32.mrf.mxu1 }
 0x1a2   :  { %v6666_v28 = vld [vmem:[%s12993_s1 + $0xa18] sm:$0xf]  ;;  %v6411_v41 = vor.u32 %v8311_v27, %v6410_v26  ;;  %2915 = vmatpush.bf16.msra.mxu1 %v6699_v45  ;;  %2928 = vmatpush.bf16.msra.mxu2 %v5423_v3  ;;  %v6860_v63 = vld [vmem:[%s12993_s1 + $0xbb8] sm:$0xf0]  ;;  %v6978_v60 = vld [vmem:[%s12997_s3 + $0xa0] sm:$0xf] }
 0x1a3   :  { %v8375_v29 = vld [vmem:[%s12993_s1 + $0xa34] sm:$0xf0]  ;;  %v8219_v2 = vld [vmem:[%s12993_s1 + $0x55c] sm:$0xf]  ;;  %v6863_v7 = vor.u32 %v8419_v61, %v6860_v63 }
 0x1a4   :  { %v6667_v44 = vor.u32 %v8375_v29, %v6666_v28  ;;  %2941 = vmatpush.bf16.msra.mxu3 %v5679_v31  ;;  %2903 = vmatpush.bf16.msra.mxu0 %v6411_v41  ;;  %v6060_v5 = vld [vmem:[%s12993_s1 + $0x578] sm:$0xf0]  ;;  %v11100_v28 = vpop.f32.mrf.mxu0 }
 0x1a5   :  { %v8283_v6 = vld [vmem:[%s12993_s1 + $0x75c] sm:$0xf]  ;;  %v6063_v14 = vor.u32 %v8219_v2, %v6060_v5 }
 0x1a6   :  { %2916 = vmatpush.bf16.msra.mxu1 %v6667_v44  ;;  %2929 = vmatpush.bf16.msra.mxu2 %v5391_v47  ;;  %v6316_v9 = vld [vmem:[%s12993_s1 + $0x778] sm:$0xf0] }
 0x1a7   :  { %2904 = vmatmul.bf16.vlgmr.msra.gmra.mxu0 %v9218_v35  ;;  %v8347_v10 = vld [vmem:[%s12993_s1 + $0x95c] sm:$0xf]  ;;  %v6319_v15 = vor.u32 %v8283_v6, %v6316_v9 }
 0x1a8   :  { %2942 = vmatpush.bf16.msra.mxu3 %v5647_v46  ;;  %2948 = vmatpush.bf16.msrb.mxu0 %v6127_v50  ;;  %v6572_v11 = vld [vmem:[%s12993_s1 + $0x978] sm:$0xf0] }
 0x1a9   :  { %2917 = vmatmul.bf16.vlgmr.msra.gmra.mxu1 %v9226_v38  ;;  %2930 = vmatmul.bf16.vlgmr.msra.gmra.mxu2 %v9065_v18  ;;  %v8411_v12 = vld [vmem:[%s12993_s1 + $0xb5c] sm:$0xf]  ;;  %v6575_v16 = vor.u32 %v8347_v10, %v6572_v11 }
 0x1aa   :  { %2961 = vmatpush.bf16.msrb.mxu1 %v6383_v51  ;;  %2974 = vmatpush.bf16.msrb.mxu2 %v6639_v52  ;;  %v6828_v13 = vld [vmem:[%s12993_s1 + $0xb78] sm:$0xf0] }
 0x1ab   :  { %2943 = vmatmul.bf16.vlgmr.msra.gmra.mxu3 %v9069_v20  ;;  %v8211_v18 = vld [vmem:[%s12993_s1 + $0x51c] sm:$0xf]  ;;  %v6831_v25 = vor.u32 %v8411_v12, %v6828_v13 }
 0x1ac   :  { %2987 = vmatpush.bf16.msrb.mxu3 %v6895_v57  ;;  %2949 = vmatpush.bf16.msrb.mxu0 %v6095_v0  ;;  %v6028_v21 = vld [vmem:[%s12993_s1 + $0x538] sm:$0xf0]  ;;  %v2699_v57 = vpop.f32.mrf.mxu0 }
 0x1ad   :  { %v8275_v23 = vld [vmem:[%s12993_s1 + $0x71c] sm:$0xf]  ;;  %v6031_v29 = vor.u32 %v8211_v18, %v6028_v21 }
 0x1ae   :  { %2962 = vmatpush.bf16.msrb.mxu1 %v6351_v24  ;;  %2975 = vmatpush.bf16.msrb.mxu2 %v6607_v1  ;;  %v6284_v20 = vld [vmem:[%s12993_s1 + $0x738] sm:$0xf0] }
 0x1af   :  { %v8339_v26 = vld [vmem:[%s12993_s1 + $0x91c] sm:$0xf]  ;;  %v6287_v8 = vor.u32 %v8275_v23, %v6284_v20 }
 0x1b0   :  { %2988 = vmatpush.bf16.msrb.mxu3 %v6863_v7  ;;  %v6540_v27 = vld [vmem:[%s12993_s1 + $0x938] sm:$0xf0]  ;;  %2950 = vmatpush.bf16.msrb.mxu0 %v6063_v14 }
 0x1b1   :  { %v8403_v45 = vld [vmem:[%s12993_s1 + $0xb1c] sm:$0xf]  ;;  %v6543_v31 = vor.u32 %v8339_v26, %v6540_v27  ;;  %v2725_v27 = vpop.f32.mrf.mxu2 }
 0x1b2   :  { %v6796_v3 = vld [vmem:[%s12993_s1 + $0xb38] sm:$0xf0]  ;;  %2963 = vmatpush.bf16.msrb.mxu1 %v6319_v15  ;;  %2976 = vmatpush.bf16.msrb.mxu2 %v6575_v16  ;;  %v8446_v27 = vld [vmem:[%s12997_s3 + $0x6c] sm:$0xf0] }
 0x1b3   :  { %v8203_v32 = vld [vmem:[%s12993_s1 + $0x4dc] sm:$0xf]  ;;  %v6799_v36 = vor.u32 %v8403_v45, %v6796_v3  ;;  %v7010_v45 = vld [vmem:[%s12997_s3 + $0xe0] sm:$0xf]  ;;  %v8462_v3 = vld [vmem:[%s12997_s3 + $0xec] sm:$0xf0] }
 0x1b4   :  { %v5996_v33 = vld [vmem:[%s12993_s1 + $0x4f8] sm:$0xf0]  ;;  %2989 = vmatpush.bf16.msrb.mxu3 %v6831_v25  ;;  %2951 = vmatpush.bf16.msrb.mxu0 %v6031_v29  ;;  %v7138_v29 = vld [vmem:[%s12997_s3 + $0x1e0] sm:$0xf] }
 0x1b5   :  { %v8267_v34 = vld [vmem:[%s12993_s1 + $0x6dc] sm:$0xf]  ;;  %v5999_v43 = vor.u32 %v8203_v32, %v5996_v33  ;;  %v8494_v32 = vld [vmem:[%s12997_s3 + $0x1ec] sm:$0xf0]  ;;  %v7266_v33 = vld [vmem:[%s12997_s3 + $0x2e0] sm:$0xf] }
 0x1b6   :  { %v6252_v37 = vld [vmem:[%s12993_s1 + $0x6f8] sm:$0xf0]  ;;  %2964 = vmatpush.bf16.msrb.mxu1 %v6287_v8  ;;  %2977 = vmatpush.bf16.msrb.mxu2 %v6543_v31  ;;  %v2738_v8 = vpop.f32.mrf.mxu3 }
 0x1b7   :  { %v8331_v39 = vld [vmem:[%s12993_s1 + $0x8dc] sm:$0xf]  ;;  %v6255_v17 = vor.u32 %v8267_v34, %v6252_v37  ;;  %v8526_v34 = vld [vmem:[%s12997_s3 + $0x2ec] sm:$0xf0]  ;;  %v7202_v8 = vld [vmem:[%s12997_s3 + $0x260] sm:$0xf] }
 0x1b8   :  { %v6508_v40 = vld [vmem:[%s12993_s1 + $0x8f8] sm:$0xf0]  ;;  %2990 = vmatpush.bf16.msrb.mxu3 %v6799_v36  ;;  %2952 = vmatpush.bf16.msrb.mxu0 %v5999_v43  ;;  %v2711_v43 = vadd.f32 %v11102_v30, %v11100_v28  ;;  %v8490_v28 = vld [vmem:[%s12997_s3 + $0x1cc] sm:$0xf0]  ;;  %v7250_v30 = vld [vmem:[%s12997_s3 + $0x2c0] sm:$0xf] }
 0x1b9   :  { %v8395_v41 = vld [vmem:[%s12993_s1 + $0xadc] sm:$0xf]  ;;  %v6511_v44 = vor.u32 %v8331_v39, %v6508_v40  ;;  %v7394_v39 = vld [vmem:[%s12997_s3 + $0x3e0] sm:$0xf]  ;;  %v8558_v40 = vld [vmem:[%s12997_s3 + $0x3ec] sm:$0xf0] }
 0x1ba   :  { %v6764_v42 = vld [vmem:[%s12993_s1 + $0xaf8] sm:$0xf0]  ;;  %2965 = vmatpush.bf16.msrb.mxu1 %v6255_v17  ;;  %v7139_v17 = vor.u32 %v8494_v32, %v7138_v29  ;;  %v8478_v29 = vld [vmem:[%s12997_s3 + $0x16c] sm:$0xf0] }
 0x1bb   :  { %v8195_v47 = vld [vmem:[%s12993_s1 + $0x49c] sm:$0xf]  ;;  %v6767_v46 = vor.u32 %v8395_v41, %v6764_v42  ;;  %2978 = vmatpush.bf16.msrb.mxu2 %v6511_v44  ;;  %v7011_v42 = vor.u32 %v8462_v3, %v7010_v45  ;;  %v7267_v44 = vor.u32 %v8526_v34, %v7266_v33  ;;  %v7074_v45 = vld [vmem:[%s12997_s3 + $0x160] sm:$0xf]  ;;  %v8542_v34 = vld [vmem:[%s12997_s3 + $0x36c] sm:$0xf0] }
 0x1bc   :  { %v5964_v48 = vld [vmem:[%s12993_s1 + $0x4b8] sm:$0xf0]  ;;  %v7330_v33 = vld [vmem:[%s12997_s3 + $0x360] sm:$0xf] }
 0x1bd   :  { %v8259_v49 = vld [vmem:[%s12993_s1 + $0x69c] sm:$0xf]  ;;  %v5967_v59 = vor.u32 %v8195_v47, %v5964_v48  ;;  %2991 = vmatpush.bf16.msrb.mxu3 %v6767_v46  ;;  %v6994_v47 = vld [vmem:[%s12997_s3 + $0xc0] sm:$0xf]  ;;  %v8458_v48 = vld [vmem:[%s12997_s3 + $0xcc] sm:$0xf0]  ;;  %v7395_v46 = vor.u32 %v8558_v40, %v7394_v39  ;;  %v7075_v40 = vor.u32 %v8478_v29, %v7074_v45 }
 0x1be   :  { %v6220_v50 = vld [vmem:[%s12993_s1 + $0x6b8] sm:$0xf0]  ;;  %v6930_v39 = vld [vmem:[%s12997_s3 + $0x40] sm:$0xf]  ;;  %v8654_v45 = vld [vmem:[%s12997_s3 + $0x6ec] sm:$0xf0] }
 0x1bf   :  { %v8323_v51 = vld [vmem:[%s12993_s1 + $0x89c] sm:$0xf]  ;;  %v6223_v61 = vor.u32 %v8259_v49, %v6220_v50  ;;  %2953 = vmatpush.bf16.msrb.mxu0 %v5967_v59  ;;  %v7122_v49 = vld [vmem:[%s12997_s3 + $0x1c0] sm:$0xf]  ;;  %v8522_v50 = vld [vmem:[%s12997_s3 + $0x2cc] sm:$0xf0] }
 0x1c0   :  { %v6476_v52 = vld [vmem:[%s12993_s1 + $0x8b8] sm:$0xf0]  ;;  %v7123_v57 = vor.u32 %v8490_v28, %v7122_v49  ;;  %v7251_v59 = vor.u32 %v8522_v50, %v7250_v30  ;;  %v11357_v49 = vpop.f32.mrf.mxu2  ;;  %v8538_v28 = vld [vmem:[%s12997_s3 + $0x34c] sm:$0xf0]  ;;  %v7506_v29 = vld [vmem:[%s12997_s3 + $0x4c0] sm:$0xf] }
 0x1c1   :  { %v8387_v54 = vld [vmem:[%s12993_s1 + $0xa9c] sm:$0xf]  ;;  %v6479_v63 = vor.u32 %v8323_v51, %v6476_v52  ;;  %2966 = vmatpush.bf16.msrb.mxu1 %v6223_v61  ;;  %v7378_v51 = vld [vmem:[%s12997_s3 + $0x3c0] sm:$0xf]  ;;  %v8554_v52 = vld [vmem:[%s12997_s3 + $0x3cc] sm:$0xf0]  ;;  %v11365_v30 = vpop.f32.mrf.mxu3 }
 0x1c2   :  { %v6732_v55 = vld [vmem:[%s12993_s1 + $0xab8] sm:$0xf0]  ;;  %v8454_v61 = vld [vmem:[%s12997_s3 + $0xac] sm:$0xf0] }
 0x1c3   :  { %v8187_v0 = vld [vmem:[%s12993_s1 + $0x45c] sm:$0xf]  ;;  %v6735_v2 = vor.u32 %v8387_v54, %v6732_v55  ;;  %2979 = vmatpush.bf16.msrb.mxu2 %v6479_v63  ;;  %v6995_v54 = vor.u32 %v8458_v48, %v6994_v47  ;;  %v2724_v55 = vadd.f32 %v11146_v53, %v2711_v43  ;;  %v7106_v63 = vld [vmem:[%s12997_s3 + $0x1a0] sm:$0xf]  ;;  %v7379_v53 = vor.u32 %v8554_v52, %v7378_v51  ;;  %v8506_v48 = vld [vmem:[%s12997_s3 + $0x24c] sm:$0xf0] }
 0x1c4   :  { %v5932_v24 = vld [vmem:[%s12993_s1 + $0x478] sm:$0xf0]  ;;  %v7058_v43 = vld [vmem:[%s12997_s3 + $0x140] sm:$0xf] }
 0x1c5   :  { %v8251_v1 = vld [vmem:[%s12993_s1 + $0x65c] sm:$0xf]  ;;  %v5935_v11 = vor.u32 %v8187_v0, %v5932_v24  ;;  %2992 = vmatpush.bf16.msrb.mxu3 %v6735_v2  ;;  %v8486_v0 = vld [vmem:[%s12997_s3 + $0x1ac] sm:$0xf0]  ;;  %v7234_v24 = vld [vmem:[%s12997_s3 + $0x2a0] sm:$0xf] }
 0x1c6   :  { %v6188_v5 = vld [vmem:[%s12993_s1 + $0x678] sm:$0xf0]  ;;  %v8550_v2 = vld [vmem:[%s12997_s3 + $0x3ac] sm:$0xf0]  ;;  %v7186_v47 = vld [vmem:[%s12997_s3 + $0x240] sm:$0xf] }
 0x1c7   :  { %v8315_v6 = vld [vmem:[%s12993_s1 + $0x85c] sm:$0xf]  ;;  %v6191_v14 = vor.u32 %v8251_v1, %v6188_v5  ;;  %2954 = vmatpush.bf16.msrb.mxu0 %v5935_v11  ;;  %v8518_v1 = vld [vmem:[%s12997_s3 + $0x2ac] sm:$0xf0]  ;;  %v6979_v5 = vor.u32 %v8454_v61, %v6978_v60  ;;  %v7218_v11 = vld [vmem:[%s12997_s3 + $0x280] sm:$0xf] }
 0x1c8   :  { %v6444_v7 = vld [vmem:[%s12993_s1 + $0x878] sm:$0xf0]  ;;  %v7042_v60 = vld [vmem:[%s12997_s3 + $0x120] sm:$0xf] }
 0x1c9   :  { %v8379_v9 = vld [vmem:[%s12993_s1 + $0xa5c] sm:$0xf]  ;;  %v6447_v15 = vor.u32 %v8315_v6, %v6444_v7  ;;  %2967 = vmatpush.bf16.msrb.mxu1 %v6191_v14  ;;  %v2737_v6 = vadd.f32 %v11154_v58, %v2724_v55  ;;  %v7107_v7 = vor.u32 %v8486_v0, %v7106_v63  ;;  %v8482_v58 = vld [vmem:[%s12997_s3 + $0x18c] sm:$0xf0]  ;;  %v7187_v55 = vor.u32 %v8506_v48, %v7186_v47  ;;  %v7490_v47 = vld [vmem:[%s12997_s3 + $0x4a0] sm:$0xf] }
 0x1ca   :  { %v6700_v10 = vld [vmem:[%s12993_s1 + $0xa78] sm:$0xf0]  ;;  %v8546_v14 = vld [vmem:[%s12997_s3 + $0x38c] sm:$0xf0] }
 0x1cb   :  { %v8179_v12 = vld [vmem:[%s12993_s1 + $0x41c] sm:$0xf]  ;;  %v6703_v23 = vor.u32 %v8379_v9, %v6700_v10  ;;  %2980 = vmatpush.bf16.msrb.mxu2 %v6447_v15  ;;  %v8450_v9 = vld [vmem:[%s12997_s3 + $0x8c] sm:$0xf0]  ;;  %v2749_v15 = vpop.f32.mrf.mxu0 }
 0x1cc   :  { %v5900_v13 = vld [vmem:[%s12993_s1 + $0x438] sm:$0xf0]  ;;  %v8470_v63 = vld [vmem:[%s12997_s3 + $0x12c] sm:$0xf0] }
 0x1cd   :  { %v8243_v16 = vld [vmem:[%s12993_s1 + $0x61c] sm:$0xf]  ;;  %v5903_v31 = vor.u32 %v8179_v12, %v5900_v13  ;;  %2993 = vmatpush.bf16.msrb.mxu3 %v6703_v23  ;;  %v8514_v12 = vld [vmem:[%s12997_s3 + $0x28c] sm:$0xf0]  ;;  %v7346_v13 = vld [vmem:[%s12997_s3 + $0x380] sm:$0xf] }
 0x1ce   :  { %v6156_v18 = vld [vmem:[%s12993_s1 + $0x638] sm:$0xf0]  ;;  %v3033_v23 = vperm.slane %v10937_v62, 4  ;;  %v7347_v3 = vor.u32 %v8546_v14, %v7346_v13  ;;  %v8502_v0 = vld [vmem:[%s12997_s3 + $0x22c] sm:$0xf0] }
 0x1cf   :  { %v8307_v21 = vld [vmem:[%s12993_s1 + $0x81c] sm:$0xf]  ;;  %v6159_v36 = vor.u32 %v8243_v16, %v6156_v18  ;;  %2955 = vmatpush.bf16.msrb.mxu0 %v5903_v31  ;;  %v2750_v18 = vadd.f32 %v2749_v15, %v2737_v6  ;;  %v8510_v31 = vld [vmem:[%s12997_s3 + $0x26c] sm:$0xf0]  ;;  %v7522_v13 = vld [vmem:[%s12997_s3 + $0x4e0] sm:$0xf]  ;;  %v2790_v15 = vpop.f32.mrf.mxu3 }
 0x1d0   :  { %v6412_v25 = vld [vmem:[%s12993_s1 + $0x838] sm:$0xf0]  ;;  %v8590_v14 = vld [vmem:[%s12997_s3 + $0x4ec] sm:$0xf0] }
 0x1d1   :  { %v8371_v20 = vld [vmem:[%s12993_s1 + $0xa1c] sm:$0xf]  ;;  %v6415_v37 = vor.u32 %v8307_v21, %v6412_v25  ;;  %2968 = vmatpush.bf16.msrb.mxu1 %v6159_v36  ;;  %v2762_v21 = vpop.f32.mrf.mxu1  ;;  %v8582_v48 = vld [vmem:[%s12997_s3 + $0x4ac] sm:$0xf0] }
 0x1d2   :  { %v6668_v26 = vld [vmem:[%s12993_s1 + $0xa38] sm:$0xf0]  ;;  %2956 = vmatmul.bf16.vlgmr.msrb.gmra.mxu0 %v9067_v19  ;;  %v7362_v19 = vld [vmem:[%s12997_s3 + $0x3a0] sm:$0xf]  ;;  %v2763_v32 = vadd.f32 %v2762_v21, %v2750_v18  ;;  %v8622_v21 = vld [vmem:[%s12997_s3 + $0x5ec] sm:$0xf0] }
 0x1d3   :  { %v6671_v41 = vor.u32 %v8371_v20, %v6668_v26  ;;  %2981 = vmatpush.bf16.msrb.mxu2 %v6415_v37  ;;  %4615 = vmatpush.bf16.msra.mxu0 %v7011_v42  ;;  %v7363_v10 = vor.u32 %v8550_v2, %v7362_v19  ;;  %v7219_v20 = vor.u32 %v8514_v12, %v7218_v11  ;;  %v6946_v26 = vld [vmem:[%s12997_s3 + $0x60] sm:$0xf]  ;;  %v8442_v42 = vld [vmem:[%s12997_s3 + $0x4c] sm:$0xf0]  ;;  %v2751_v50 = vpop.f32.mrf.mxu0  ;;  %v2777_v11 = vpop.f32.mrf.mxu2 }
 0x1d4   :  { %2969 = vmatmul.bf16.vlgmr.msrb.gmra.mxu1 %v9071_v22  ;;  %v7235_v22 = vor.u32 %v8518_v1, %v7234_v24  ;;  %v6947_v36 = vor.u32 %v8446_v27, %v6946_v26  ;;  %v11333_v37 = vadd.f32 %v3033_v23, %v2763_v32  ;;  %v6931_v51 = vor.u32 %v8442_v42, %v6930_v39  ;;  %v7298_v24 = vld [vmem:[%s12997_s3 + $0x320] sm:$0xf]  ;;  %v8534_v1 = vld [vmem:[%s12997_s3 + $0x32c] sm:$0xf0]  ;;  %v8723_v39 = vld [vmem:[%s12996_s7 + $0x8] sm:$0xff] }
 0x1d5   :  { %2994 = vmatpush.bf16.msrb.mxu3 %v6671_v41  ;;  %4628 = vmatpush.bf16.msra.mxu1 %v7139_v17  ;;  %v7203_v41 = vor.u32 %v8510_v31, %v7202_v8  ;;  %v8474_v17 = vld [vmem:[%s12997_s3 + $0x14c] sm:$0xf0]  ;;  %v6898_v2 = vld [vmem:[%s12997_s3] sm:$0xf]  ;;  %v7523_v26 = vor.u32 %v8590_v14, %v7522_v13  ;;  %v7491_v50 = vor.u32 %v8582_v48, %v7490_v47 }
 0x1d6   :  { %2982 = vmatmul.bf16.vlgmr.msrb.gmra.mxu2 %v9218_v35  ;;  %v6962_v35 = vld [vmem:[%s12997_s3 + $0x80] sm:$0xf]  ;;  %3057 = vst [vmem:[%s12996_s7 + $0x20] sm:$0xff] %v11333_v37  ;;  %v8530_v12 = vld [vmem:[%s12997_s3 + $0x30c] sm:$0xf0] }
 0x1d7   :  { %4641 = vmatpush.bf16.msra.mxu2 %v7267_v44  ;;  %4616 = vmatpush.bf16.msra.mxu0 %v6995_v54  ;;  %v6963_v16 = vor.u32 %v8450_v9, %v6962_v35  ;;  %v7331_v44 = vor.u32 %v8542_v34, %v7330_v33  ;;  %v7059_v54 = vor.u32 %v8474_v17, %v7058_v43  ;;  %v8466_v35 = vld [vmem:[%s12997_s3 + $0x10c] sm:$0xf0]  ;;  %v7650_v18 = vld [vmem:[%s12997_s3 + $0x5e0] sm:$0xf] }
 0x1d8   :  { %2995 = vmatmul.bf16.vlgmr.msrb.gmra.mxu3 %v9226_v38  ;;  %v7090_v38 = vld [vmem:[%s12997_s3 + $0x180] sm:$0xf]  ;;  %v7299_v9 = vor.u32 %v8534_v1, %v7298_v24  ;;  %v8586_v8 = vld [vmem:[%s12997_s3 + $0x4cc] sm:$0xf0] }
 0x1d9   :  { %4654 = vmatpush.bf16.msra.mxu3 %v7395_v46  ;;  %4629 = vmatpush.bf16.msra.mxu1 %v7123_v57  ;;  %v7091_v25 = vor.u32 %v8482_v58, %v7090_v38  ;;  %v7314_v46 = vld [vmem:[%s12997_s3 + $0x340] sm:$0xf]  ;;  %v2764_v52 = vpop.f32.mrf.mxu1  ;;  %v8618_v32 = vld [vmem:[%s12997_s3 + $0x5cc] sm:$0xf0]  ;;  %v7507_v42 = vor.u32 %v8586_v8, %v7506_v29 }
 0x1da   :  { %v6914_v57 = vld [vmem:[%s12997_s3 + $0x20] sm:$0xf]  ;;  %v7315_v61 = vor.u32 %v8538_v28, %v7314_v46  ;;  %v8650_v17 = vld [vmem:[%s12997_s3 + $0x6cc] sm:$0xf0] }
 0x1db   :  { %4642 = vmatpush.bf16.msra.mxu2 %v7251_v59  ;;  %4617 = vmatpush.bf16.msra.mxu0 %v6979_v5  ;;  %v8438_v59 = vld [vmem:[%s12997_s3 + $0x2c] sm:$0xf0]  ;;  %v7043_v5 = vor.u32 %v8470_v63, %v7042_v60  ;;  %v7154_v38 = vld [vmem:[%s12997_s3 + $0x200] sm:$0xf] }
 0x1dc   :  { %v6915_v19 = vor.u32 %v8438_v59, %v6914_v57  ;;  %v7282_v58 = vld [vmem:[%s12997_s3 + $0x300] sm:$0xf]  ;;  %v8614_v46 = vld [vmem:[%s12997_s3 + $0x5ac] sm:$0xf0] }
 0x1dd   :  { %4655 = vmatpush.bf16.msra.mxu3 %v7379_v53  ;;  %4630 = vmatpush.bf16.msra.mxu1 %v7107_v7  ;;  %v7170_v53 = vld [vmem:[%s12997_s3 + $0x220] sm:$0xf]  ;;  %v8434_v7 = vld [vmem:[%s12997_s3 + $0xc] sm:$0xf0] }
 0x1de   :  { %v7171_v6 = vor.u32 %v8502_v0, %v7170_v53  ;;  %v7778_v27 = vld [vmem:[%s12997_s3 + $0x6e0] sm:$0xf]  ;;  %v8646_v52 = vld [vmem:[%s12997_s3 + $0x6ac] sm:$0xf0] }
 0x1df   :  { %4643 = vmatpush.bf16.msra.mxu2 %v7235_v22  ;;  %4618 = vmatpush.bf16.msra.mxu0 %v6963_v16  ;;  %v7026_v22 = vld [vmem:[%s12997_s3 + $0x100] sm:$0xf]  ;;  %v6899_v16 = vor.u32 %v8434_v7, %v6898_v2  ;;  %v8578_v59 = vld [vmem:[%s12997_s3 + $0x48c] sm:$0xf0] }
 0x1e0   :  { %v7027_v23 = vor.u32 %v8466_v35, %v7026_v22  ;;  %v7634_v31 = vld [vmem:[%s12997_s3 + $0x5c0] sm:$0xf]  ;;  %v8642_v0 = vld [vmem:[%s12997_s3 + $0x68c] sm:$0xf0] }
 0x1e1   :  { %4656 = vmatpush.bf16.msra.mxu3 %v7363_v10  ;;  %4631 = vmatpush.bf16.msra.mxu1 %v7091_v25  ;;  %v8498_v10 = vld [vmem:[%s12997_s3 + $0x20c] sm:$0xf0]  ;;  %v8722_v33 = vld [vmem:[%s12996_s7] sm:$0xff] }
 0x1e2   :  { %v7155_v25 = vor.u32 %v8498_v10, %v7154_v38  ;;  %v11448_v34 = vpack.c.bf16 %v8722_v33, %v8722_v33  ;;  %v7762_v43 = vld [vmem:[%s12997_s3 + $0x6c0] sm:$0xf]  ;;  %v8606_v7 = vld [vmem:[%s12997_s3 + $0x56c] sm:$0xf0] }
 0x1e3   :  { %4644 = vmatpush.bf16.msra.mxu2 %v7219_v20  ;;  %4619 = vmatpush.bf16.msra.mxu0 %v6947_v36  ;;  %v7283_v20 = vor.u32 %v8530_v12, %v7282_v58  ;;  %v7779_v36 = vor.u32 %v8654_v45, %v7778_v27  ;;  %v7763_v28 = vor.u32 %v8650_v17, %v7762_v43  ;;  %v7474_v57 = vld [vmem:[%s12997_s3 + $0x480] sm:$0xf]  ;;  %v8638_v10 = vld [vmem:[%s12997_s3 + $0x66c] sm:$0xf0] }
 0x1e4   :  { %v7602_v60 = vld [vmem:[%s12997_s3 + $0x580] sm:$0xf]  ;;  %v8570_v12 = vld [vmem:[%s12997_s3 + $0x44c] sm:$0xf0] }
 0x1e5   :  { %4657 = vmatpush.bf16.msra.mxu3 %v7347_v3  ;;  %4632 = vmatpush.bf16.msra.mxu1 %v7075_v40  ;;  %v7651_v3 = vor.u32 %v8622_v21, %v7650_v18  ;;  %v11453_v40 = vpack.c.bf16 %v8723_v39, %v8723_v39  ;;  %v7730_v53 = vld [vmem:[%s12997_s3 + $0x680] sm:$0xf]  ;;  %v8602_v15 = vld [vmem:[%s12997_s3 + $0x54c] sm:$0xf0]  ;;  %v3034_v21 = vperm.slane %v10937_v62, 5 }
 0x1e6   :  { %v7458_v1 = vld [vmem:[%s12997_s3 + $0x460] sm:$0xf]  ;;  %v7731_v35 = vor.u32 %v8642_v0, %v7730_v53  ;;  %v8634_v45 = vld [vmem:[%s12997_s3 + $0x64c] sm:$0xf0]  ;;  %v8524_v0 = vld [vmem:[%s12997_s3 + $0x2e4] sm:$0xf] }
 0x1e7   :  { %4645 = vmatpush.bf16.msra.mxu2 %v7203_v41  ;;  %4620 = vmatpush.bf16.msra.mxu0 %v6931_v51  ;;  %v11457_v41 = vpack.c.bf16 %v10708_v56, %v10708_v56  ;;  %v7635_v56 = vor.u32 %v8618_v32, %v7634_v31  ;;  %v7746_v51 = vld [vmem:[%s12997_s3 + $0x6a0] sm:$0xf]  ;;  %v8566_v29 = vld [vmem:[%s12997_s3 + $0x42c] sm:$0xf0] }
 0x1e8   :  { %v7747_v63 = vor.u32 %v8646_v52, %v7746_v51  ;;  %v7714_v38 = vld [vmem:[%s12997_s3 + $0x660] sm:$0xf]  ;;  %v8598_v33 = vld [vmem:[%s12997_s3 + $0x52c] sm:$0xf0]  ;;  %v8460_v51 = vld [vmem:[%s12997_s3 + $0xe4] sm:$0xf] }
 0x1e9   :  { %4658 = vmatpush.bf16.msra.mxu3 %v7331_v44  ;;  %4633 = vmatpush.bf16.msra.mxu1 %v7059_v54  ;;  %v11467_v44 = vpack.c.bf16 %v10955_v4, %v10955_v4  ;;  %v7618_v4 = vld [vmem:[%s12997_s3 + $0x5a0] sm:$0xf]  ;;  %v2789_v54 = vadd.f32 %v11365_v30, %v11357_v49  ;;  %v7475_v49 = vor.u32 %v8578_v59, %v7474_v57  ;;  %v2801_v30 = vpop.f32.mrf.mxu0  ;;  %v8562_v39 = vld [vmem:[%s12997_s3 + $0x40c] sm:$0xf0]  ;;  %v7012_v52 = vld [vmem:[%s12997_s3 + $0xf0] sm:$0xf0] }
 0x1ea   :  { %v7442_v11 = vld [vmem:[%s12997_s3 + $0x440] sm:$0xf]  ;;  %v8492_v57 = vld [vmem:[%s12997_s3 + $0x1e4] sm:$0xf]  ;;  %v7140_v59 = vld [vmem:[%s12997_s3 + $0x1f0] sm:$0xf0]  ;;  %v7015_v53 = vor.u32 %v8460_v51, %v7012_v52 }
 0x1eb   :  { %4646 = vmatpush.bf16.msra.mxu2 %v7187_v55  ;;  %4621 = vmatpush.bf16.msra.mxu0 %v6915_v19  ;;  %v7619_v55 = vor.u32 %v8614_v46, %v7618_v4  ;;  %v8574_v19 = vld [vmem:[%s12997_s3 + $0x46c] sm:$0xf0]  ;;  %v2802_v2 = vadd.f32 %v2801_v30, %v2789_v54  ;;  %v7570_v14 = vld [vmem:[%s12997_s3 + $0x540] sm:$0xf]  ;;  %v8476_v52 = vld [vmem:[%s12997_s3 + $0x164] sm:$0xf] }
 0x1ec   :  { %v2827_v13 = vpop.f32.mrf.mxu2  ;;  %v7698_v27 = vld [vmem:[%s12997_s3 + $0x640] sm:$0xf] }
 0x1ed   :  { %4659 = vmatpush.bf16.msra.mxu3 %v7315_v61  ;;  %4634 = vmatpush.bf16.msra.mxu1 %v7043_v5  ;;  %v8610_v61 = vld [vmem:[%s12997_s3 + $0x58c] sm:$0xf0]  ;;  %v2814_v5 = vpop.f32.mrf.mxu1  ;;  %v7426_v62 = vld [vmem:[%s12997_s3 + $0x420] sm:$0xf] }
 0x1ee   :  { %v7603_v24 = vor.u32 %v8610_v61, %v7602_v60  ;;  %v2815_v22 = vadd.f32 %v2814_v5, %v2802_v2  ;;  %v2840_v18 = vpop.f32.mrf.mxu3  ;;  %v7554_v32 = vld [vmem:[%s12997_s3 + $0x520] sm:$0xf]  ;;  %v7427_v43 = vor.u32 %v8566_v29, %v7426_v62  ;;  %v8456_v2 = vld [vmem:[%s12997_s3 + $0xc4] sm:$0xf]  ;;  %v6996_v5 = vld [vmem:[%s12997_s3 + $0xd0] sm:$0xf0] }
 0x1ef   :  { %4647 = vmatpush.bf16.msra.mxu2 %v7171_v6  ;;  %4622 = vmatpush.bf16.msra.mxu0 %v6899_v16  ;;  %v7586_v6 = vld [vmem:[%s12997_s3 + $0x560] sm:$0xf]  ;;  %v7555_v47 = vor.u32 %v8598_v33, %v7554_v32  ;;  %v8674_v62 = vld [vmem:[%s12997_s3 + $0x78c] sm:$0xf0]  ;;  %v8480_v33 = vld [vmem:[%s12997_s3 + $0x184] sm:$0xf] }
 0x1f0   :  { %v7587_v58 = vor.u32 %v8606_v7, %v7586_v6  ;;  %v2828_v16 = vadd.f32 %v2827_v13, %v2815_v22  ;;  %v7682_v17 = vld [vmem:[%s12997_s3 + $0x620] sm:$0xf]  ;;  %v8682_v6 = vld [vmem:[%s12997_s3 + $0x7cc] sm:$0xf0]  ;;  %v8488_v7 = vld [vmem:[%s12997_s3 + $0x1c4] sm:$0xf] }
 0x1f1   :  { %4660 = vmatpush.bf16.msra.mxu3 %v7299_v9  ;;  %4635 = vmatpush.bf16.msra.mxu1 %v7027_v23  ;;  %v7459_v9 = vor.u32 %v8574_v19, %v7458_v1  ;;  %v7715_v23 = vor.u32 %v8638_v10, %v7714_v38  ;;  %v7538_v48 = vld [vmem:[%s12997_s3 + $0x500] sm:$0xf]  ;;  %v7143_v19 = vor.u32 %v8492_v57, %v7140_v59  ;;  %v7124_v22 = vld [vmem:[%s12997_s3 + $0x1d0] sm:$0xf0]  ;;  %v8508_v57 = vld [vmem:[%s12997_s3 + $0x264] sm:$0xf] }
 0x1f2   :  { %4623 = vmatmul.bf16.vlgmr.msra.gmra.mxu0 %v11448_v34  ;;  %v7906_v46 = vld [vmem:[%s12997_s3 + $0x7e0] sm:$0xf]  ;;  %v7252_v13 = vld [vmem:[%s12997_s3 + $0x2d0] sm:$0xf0] }
 0x1f3   :  { %4648 = vmatpush.bf16.msra.mxu2 %v7155_v25  ;;  %4667 = vmatpush.bf16.msrb.mxu0 %v7523_v26  ;;  %v7443_v25 = vor.u32 %v8570_v12, %v7442_v11  ;;  %v2803_v26 = vpop.f32.mrf.mxu0  ;;  %v7890_v1 = vld [vmem:[%s12997_s3 + $0x7c0] sm:$0xf]  ;;  %v11636_v11 = vpack.c.bf16 %v11333_v37, %v11333_v37  ;;  %v6999_v12 = vor.u32 %v8456_v2, %v6996_v5  ;;  %v8452_v37 = vld [vmem:[%s12997_s3 + $0xa4] sm:$0xf] }
 0x1f4   :  { %4636 = vmatmul.bf16.vlgmr.msra.gmra.mxu1 %v11453_v40  ;;  %v2829_v4 = vpop.f32.mrf.mxu2  ;;  %v8516_v26 = vld [vmem:[%s12997_s3 + $0x2a4] sm:$0xf] }
 0x1f5   :  { %4661 = vmatpush.bf16.msra.mxu3 %v7283_v20  ;;  %4680 = vmatpush.bf16.msrb.mxu1 %v7651_v3  ;;  %v2841_v20 = vadd.f32 %v2840_v18, %v2828_v16  ;;  %v7571_v3 = vor.u32 %v8602_v15, %v7570_v14  ;;  %v2816_v8 = vpop.f32.mrf.mxu1  ;;  %v7874_v14 = vld [vmem:[%s12997_s3 + $0x7a0] sm:$0xf]  ;;  %v8678_v15 = vld [vmem:[%s12997_s3 + $0x7ac] sm:$0xf0]  ;;  %v7127_v16 = vor.u32 %v8488_v7, %v7124_v22  ;;  %v6980_v18 = vld [vmem:[%s12997_s3 + $0xb0] sm:$0xf0] }
 0x1f6   :  { %4649 = vmatmul.bf16.vlgmr.msra.gmra.mxu2 %v11457_v41  ;;  %v2842_v54 = vpop.f32.mrf.mxu3  ;;  %v8448_v8 = vld [vmem:[%s12997_s3 + $0x84] sm:$0xf] }
 0x1f7   :  { %4693 = vmatpush.bf16.msrb.mxu2 %v7779_v36  ;;  %4668 = vmatpush.bf16.msrb.mxu0 %v7507_v42  ;;  %v3050_v31 = vadd.f32 %v3034_v21, %v2841_v20  ;;  %v7410_v36 = vld [vmem:[%s12997_s3 + $0x400] sm:$0xf]  ;;  %v7699_v42 = vor.u32 %v8634_v45, %v7698_v27  ;;  %v7875_v21 = vor.u32 %v8678_v15, %v7874_v14  ;;  %v7236_v45 = vld [vmem:[%s12997_s3 + $0x2b0] sm:$0xf0]  ;;  %v8662_v14 = vld [vmem:[%s12997_s3 + $0x72c] sm:$0xf0] }
 0x1f8   :  { %4662 = vmatmul.bf16.vlgmr.msra.gmra.mxu3 %v11467_v44  ;;  %v7411_v61 = vor.u32 %v8562_v39, %v7410_v36  ;;  %v6983_v27 = vor.u32 %v8452_v37, %v6980_v18  ;;  %v7092_v36 = vld [vmem:[%s12997_s3 + $0x190] sm:$0xf0]  ;;  %v7239_v39 = vor.u32 %v8516_v26, %v7236_v45  ;;  %v8468_v15 = vld [vmem:[%s12997_s3 + $0x124] sm:$0xf]  ;;  %v8658_v45 = vld [vmem:[%s12997_s3 + $0x70c] sm:$0xf0] }
 0x1f9   :  { %4681 = vmatpush.bf16.msrb.mxu1 %v7635_v56  ;;  %3058 = vst [vmem:[%s12996_s7 + $0x28] sm:$0xff] %v3050_v31  ;;  %v8630_v56 = vld [vmem:[%s12997_s3 + $0x62c] sm:$0xf0]  ;;  %v11629_v38 = vpack.c.bf16 %v3050_v31, %v3050_v31  ;;  %v6964_v31 = vld [vmem:[%s12997_s3 + $0x90] sm:$0xf0]  ;;  %v7095_v4 = vor.u32 %v8480_v33, %v7092_v36 }
 0x1fa   :  { %v7683_v60 = vor.u32 %v8630_v56, %v7682_v17  ;;  %v7220_v56 = vld [vmem:[%s12997_s3 + $0x290] sm:$0xf0]  ;;  %v8432_v18 = vld [vmem:[%s12997_s3 + $0x4] sm:$0xf] }
 0x1fb   :  { %4694 = vmatpush.bf16.msrb.mxu2 %v7763_v28  ;;  %4669 = vmatpush.bf16.msrb.mxu0 %v7491_v50  ;;  %v8686_v28 = vld [vmem:[%s12997_s3 + $0x7ec] sm:$0xf0]  ;;  %v7076_v54 = vld [vmem:[%s12997_s3 + $0x170] sm:$0xf0]  ;;  %v8588_v33 = vld [vmem:[%s12997_s3 + $0x4e4] sm:$0xf] }
 0x1fc   :  { %v8594_v50 = vld [vmem:[%s12997_s3 + $0x50c] sm:$0xf0]  ;;  %v7172_v26 = vld [vmem:[%s12997_s3 + $0x230] sm:$0xf0] }
 0x1fd   :  { %4682 = vmatpush.bf16.msrb.mxu1 %v7619_v55  ;;  %v7907_v55 = vor.u32 %v8686_v28, %v7906_v46  ;;  %v7539_v30 = vor.u32 %v8594_v50, %v7538_v48  ;;  %v8670_v48 = vld [vmem:[%s12997_s3 + $0x76c] sm:$0xf0]  ;;  %v8444_v46 = vld [vmem:[%s12997_s3 + $0x64] sm:$0xf]  ;;  %v6948_v28 = vld [vmem:[%s12997_s3 + $0x70] sm:$0xf0] }
 0x1fe   :  { %v6951_v59 = vor.u32 %v8444_v46, %v6948_v28  ;;  %v7524_v36 = vld [vmem:[%s12997_s3 + $0x4f0] sm:$0xf0]  ;;  %v8496_v46 = vld [vmem:[%s12997_s3 + $0x204] sm:$0xf] }
 0x1ff   :  { %4695 = vmatpush.bf16.msrb.mxu2 %v7747_v63  ;;  %4670 = vmatpush.bf16.msrb.mxu0 %v7475_v49  ;;  %v7666_v63 = vld [vmem:[%s12997_s3 + $0x600] sm:$0xf]  ;;  %v8626_v49 = vld [vmem:[%s12997_s3 + $0x60c] sm:$0xf0]  ;;  %v7156_v28 = vld [vmem:[%s12997_s3 + $0x210] sm:$0xf0] }
 0x200   :  { %4706 = vmatpush.bf16.msrb.mxu3 %v7907_v55 }
 0x201   :  { %4683 = vmatpush.bf16.msrb.mxu1 %v7603_v24  ;;  %v7268_v24 = vld [vmem:[%s12997_s3 + $0x2f0] sm:$0xf0] }
 0x202   :  { %v7271_v10 = vor.u32 %v8524_v0, %v7268_v24  ;;  %v11688_v17 = vpop.f32.mrf.mxu0  ;;  %v8472_v24 = vld [vmem:[%s12997_s3 + $0x144] sm:$0xf] }
 0x203   :  { %4696 = vmatpush.bf16.msrb.mxu2 %v7731_v35  ;;  %4671 = vmatpush.bf16.msrb.mxu0 %v7459_v9  ;;  %v7667_v35 = vor.u32 %v8626_v49, %v7666_v63  ;;  %v7891_v9 = vor.u32 %v8682_v6, %v7890_v1  ;;  %v8666_v63 = vld [vmem:[%s12997_s3 + $0x74c] sm:$0xf0]  ;;  %v7079_v49 = vor.u32 %v8476_v52, %v7076_v54  ;;  %v7060_v1 = vld [vmem:[%s12997_s3 + $0x150] sm:$0xf0]  ;;  %v8436_v6 = vld [vmem:[%s12997_s3 + $0x24] sm:$0xf] }
 0x204   :  { %v11705_v50 = vpop.f32.mrf.mxu1  ;;  %v7527_v52 = vor.u32 %v8588_v33, %v7524_v36  ;;  %v8552_v54 = vld [vmem:[%s12997_s3 + $0x3c4] sm:$0xf] }
 0x205   :  { %4684 = vmatpush.bf16.msrb.mxu1 %v7587_v58  ;;  %v8520_v58 = vld [vmem:[%s12997_s3 + $0x2c4] sm:$0xf]  ;;  %4707 = vmatpush.bf16.msrb.mxu3 %v7891_v9  ;;  %v7188_v9 = vld [vmem:[%s12997_s3 + $0x250] sm:$0xf0] }
 0x206   :  { %v7255_v20 = vor.u32 %v8520_v58, %v7252_v13  ;;  %v6916_v58 = vld [vmem:[%s12997_s3 + $0x30] sm:$0xf0]  ;;  %v7810_v13 = vld [vmem:[%s12997_s3 + $0x720] sm:$0xf] }
 0x207   :  { %4697 = vmatpush.bf16.msrb.mxu2 %v7715_v23  ;;  %4672 = vmatpush.bf16.msrb.mxu0 %v7443_v25  ;;  %v8484_v23 = vld [vmem:[%s12997_s3 + $0x1a4] sm:$0xf]  ;;  %v7108_v25 = vld [vmem:[%s12997_s3 + $0x1b0] sm:$0xf0]  ;;  %v7811_v37 = vor.u32 %v8662_v14, %v7810_v13 }
 0x208   :  { %v7111_v29 = vor.u32 %v8484_v23, %v7108_v25  ;;  %v8500_v25 = vld [vmem:[%s12997_s3 + $0x224] sm:$0xf]  ;;  %v7476_v13 = vld [vmem:[%s12997_s3 + $0x490] sm:$0xf0] }
 0x209   :  { %4685 = vmatpush.bf16.msrb.mxu1 %v7571_v3  ;;  %v7858_v3 = vld [vmem:[%s12997_s3 + $0x780] sm:$0xf]  ;;  %4708 = vmatpush.bf16.msrb.mxu3 %v7875_v21  ;;  %v6900_v21 = vld [vmem:[%s12997_s3 + $0x10] sm:$0xf0] }
 0x20a   :  { %v7859_v32 = vor.u32 %v8674_v62, %v7858_v3  ;;  %v2855_v7 = vpop.f32.mrf.mxu0  ;;  %v8464_v62 = vld [vmem:[%s12997_s3 + $0x104] sm:$0xf] }
 0x20b   :  { %4698 = vmatpush.bf16.msrb.mxu2 %v7699_v42  ;;  %4673 = vmatpush.bf16.msrb.mxu0 %v7427_v43  ;;  %v8512_v42 = vld [vmem:[%s12997_s3 + $0x284] sm:$0xf]  ;;  %v6967_v43 = vor.u32 %v8448_v8, %v6964_v31  ;;  %v7396_v31 = vld [vmem:[%s12997_s3 + $0x3f0] sm:$0xf0] }
 0x20c   :  { %v7223_v55 = vor.u32 %v8512_v42, %v7220_v56  ;;  %v8556_v8 = vld [vmem:[%s12997_s3 + $0x3e4] sm:$0xf] }
 0x20d   :  { %4686 = vmatpush.bf16.msrb.mxu1 %v7555_v47  ;;  %v7842_v47 = vld [vmem:[%s12997_s3 + $0x760] sm:$0xf]  ;;  %4709 = vmatpush.bf16.msrb.mxu3 %v7859_v32  ;;  %v7028_v32 = vld [vmem:[%s12997_s3 + $0x110] sm:$0xf0]  ;;  %v8620_v42 = vld [vmem:[%s12997_s3 + $0x5e4] sm:$0xf] }
 0x20e   :  { %v7843_v51 = vor.u32 %v8670_v48, %v7842_v47  ;;  %v11742_v22 = vpop.f32.mrf.mxu3  ;;  %v7175_v47 = vor.u32 %v8500_v25, %v7172_v26  ;;  %v6903_v48 = vor.u32 %v8432_v18, %v6900_v21  ;;  %v8612_v7 = vld [vmem:[%s12997_s3 + $0x5a4] sm:$0xf]  ;;  %v7460_v26 = vld [vmem:[%s12997_s3 + $0x470] sm:$0xf0] }
 0x20f   :  { %4699 = vmatpush.bf16.msrb.mxu2 %v7683_v60  ;;  %4674 = vmatpush.bf16.msrb.mxu0 %v7411_v61  ;;  %v7204_v60 = vld [vmem:[%s12997_s3 + $0x270] sm:$0xf0]  ;;  %v7826_v61 = vld [vmem:[%s12997_s3 + $0x740] sm:$0xf]  ;;  %v8540_v21 = vld [vmem:[%s12997_s3 + $0x364] sm:$0xf] }
 0x210   :  { %v7827_v0 = vor.u32 %v8666_v63, %v7826_v61  ;;  %v7207_v2 = vor.u32 %v8508_v57, %v7204_v60  ;;  %v8584_v57 = vld [vmem:[%s12997_s3 + $0x4c4] sm:$0xf]  ;;  %v7380_v60 = vld [vmem:[%s12997_s3 + $0x3d0] sm:$0xf0]  ;;  %v2867_v61 = vadd.f32 %v11705_v50, %v11688_v17 }
 0x211   :  { %4687 = vmatpush.bf16.msrb.mxu1 %v7539_v30  ;;  %v8440_v30 = vld [vmem:[%s12997_s3 + $0x44] sm:$0xf]  ;;  %4710 = vmatpush.bf16.msrb.mxu3 %v7843_v51  ;;  %v7031_v51 = vor.u32 %v8464_v62, %v7028_v32  ;;  %v7364_v17 = vld [vmem:[%s12997_s3 + $0x3b0] sm:$0xf0] }
 0x212   :  { %4675 = vmatmul.bf16.vlgmr.msrb.gmra.mxu0 %v11636_v11  ;;  %v8616_v63 = vld [vmem:[%s12997_s3 + $0x5c4] sm:$0xf] }
 0x213   :  { %4719 = vmatpush.bf16.msra.mxu0 %v7015_v53  ;;  %4700 = vmatpush.bf16.msrb.mxu2 %v7667_v35  ;;  %v6932_v53 = vld [vmem:[%s12997_s3 + $0x50] sm:$0xf0]  ;;  %v8504_v35 = vld [vmem:[%s12997_s3 + $0x244] sm:$0xf] }
 0x214   :  { %4688 = vmatmul.bf16.vlgmr.msrb.gmra.mxu1 %v11629_v38  ;;  %v6935_v5 = vor.u32 %v8440_v30, %v6932_v53  ;;  %v7191_v23 = vor.u32 %v8504_v35, %v7188_v9  ;;  %v7159_v30 = vor.u32 %v8496_v46, %v7156_v28  ;;  %v7383_v53 = vor.u32 %v8552_v54, %v7380_v60  ;;  %v7620_v35 = vld [vmem:[%s12997_s3 + $0x5b0] sm:$0xf0]  ;;  %v11888_v62 = vld [vmem:[%s12995_s2] sm:$0xff] }
 0x215   :  { %4732 = vmatpush.bf16.msra.mxu1 %v7143_v19  ;;  %v11737_v19 = vpop.f32.mrf.mxu2  ;;  %4711 = vmatpush.bf16.msrb.mxu3 %v7827_v0  ;;  %v8652_v32 = vld [vmem:[%s12997_s3 + $0x6e4] sm:$0xf]  ;;  %v7764_v60 = vld [vmem:[%s12997_s3 + $0x6d0] sm:$0xf0] }
 0x216   :  { %v8600_v28 = vld [vmem:[%s12997_s3 + $0x544] sm:$0xf] }
 0x217   :  { %4745 = vmatpush.bf16.msra.mxu2 %v7271_v10  ;;  %4720 = vmatpush.bf16.msra.mxu0 %v6999_v12  ;;  %v7063_v10 = vor.u32 %v8472_v24, %v7060_v1  ;;  %v2868_v12 = vpop.f32.mrf.mxu1  ;;  %v8548_v24 = vld [vmem:[%s12997_s3 + $0x3a4] sm:$0xf] }
 0x218   :  { %v8580_v1 = vld [vmem:[%s12997_s3 + $0x4a4] sm:$0xf] }
 0x219   :  { %4733 = vmatpush.bf16.msra.mxu1 %v7127_v16  ;;  %v7044_v16 = vld [vmem:[%s12997_s3 + $0x130] sm:$0xf0]  ;;  %4712 = vmatpush.bf16.msrb.mxu3 %v7811_v37  ;;  %v8576_v12 = vld [vmem:[%s12997_s3 + $0x484] sm:$0xf] }
 0x21a   :  { %v7047_v3 = vor.u32 %v8468_v15, %v7044_v16  ;;  %v8608_v16 = vld [vmem:[%s12997_s3 + $0x584] sm:$0xf]  ;;  %v7604_v37 = vld [vmem:[%s12997_s3 + $0x590] sm:$0xf0]  ;;  %v7479_v18 = vor.u32 %v8576_v12, %v7476_v13 }
 0x21b   :  { %4746 = vmatpush.bf16.msra.mxu2 %v7255_v20  ;;  %4721 = vmatpush.bf16.msra.mxu0 %v6983_v27  ;;  %v6919_v20 = vor.u32 %v8436_v6, %v6916_v58  ;;  %v7794_v27 = vld [vmem:[%s12997_s3 + $0x700] sm:$0xf]  ;;  %v2880_v6 = vadd.f32 %v11737_v19, %v2867_v61  ;;  %v7348_v19 = vld [vmem:[%s12997_s3 + $0x390] sm:$0xf0]  ;;  %v7623_v58 = vor.u32 %v8612_v7, %v7620_v35  ;;  %v8528_v12 = vld [vmem:[%s12997_s3 + $0x304] sm:$0xf] }
 0x21c   :  { %v7607_v25 = vor.u32 %v8608_v16, %v7604_v37  ;;  %v7412_v35 = vld [vmem:[%s12997_s3 + $0x410] sm:$0xf0]  ;;  %v8463_v16 = vld [vmem:[%s12997_s3 + $0xf4] sm:$0xf0] }
 0x21d   :  { %4734 = vmatpush.bf16.msra.mxu1 %v7111_v29  ;;  %v7795_v29 = vor.u32 %v8658_v45, %v7794_v27  ;;  %v2881_v56 = vpop.f32.mrf.mxu2  ;;  %v2893_v15 = vadd.f32 %v11742_v22, %v2880_v6  ;;  %v7284_v13 = vld [vmem:[%s12997_s3 + $0x310] sm:$0xf0] }
 0x21e   :  { %v7287_v37 = vor.u32 %v8528_v12, %v7284_v13  ;;  %v7274_v12 = vld [vmem:[%s12997_s3 + $0x2e8] sm:$0xf]  ;;  %v8527_v13 = vld [vmem:[%s12997_s3 + $0x2f4] sm:$0xf0] }
 0x21f   :  { %4747 = vmatpush.bf16.msra.mxu2 %v7239_v39  ;;  %4722 = vmatpush.bf16.msra.mxu0 %v6967_v43  ;;  %v7399_v39 = vor.u32 %v8556_v8, %v7396_v31  ;;  %v7652_v43 = vld [vmem:[%s12997_s3 + $0x5f0] sm:$0xf0]  ;;  %v8604_v8 = vld [vmem:[%s12997_s3 + $0x564] sm:$0xf] }
 0x220   :  { %4713 = vmatpush.bf16.msrb.mxu3 %v7795_v29  ;;  %v3035_v29 = vperm.slane %v11888_v62, 6  ;;  %v7588_v31 = vld [vmem:[%s12997_s3 + $0x570] sm:$0xf0] }
 0x221   :  { %4735 = vmatpush.bf16.msra.mxu1 %v7095_v4  ;;  %v2894_v4 = vpop.f32.mrf.mxu3  ;;  %v7591_v56 = vor.u32 %v8604_v8, %v7588_v31  ;;  %v7002_v8 = vld [vmem:[%s12997_s3 + $0xc8] sm:$0xf]  ;;  %v8459_v31 = vld [vmem:[%s12997_s3 + $0xd4] sm:$0xf0] }
 0x223   :  { %4748 = vmatpush.bf16.msra.mxu2 %v7223_v55  ;;  %4723 = vmatpush.bf16.msra.mxu0 %v6951_v59  ;;  %v7655_v55 = vor.u32 %v8620_v42, %v7652_v43  ;;  %v7508_v59 = vld [vmem:[%s12997_s3 + $0x4d0] sm:$0xf0]  ;;  %v8536_v42 = vld [vmem:[%s12997_s3 + $0x344] sm:$0xf] }
 0x224   :  { %4758 = vmatpush.bf16.msra.mxu3 %v7399_v39  ;;  %v7511_v0 = vor.u32 %v8584_v57, %v7508_v59  ;;  %v2905_v22 = vpop.f32.mrf.mxu0  ;;  %v7780_v39 = vld [vmem:[%s12997_s3 + $0x6f0] sm:$0xf0]  ;;  %v8648_v59 = vld [vmem:[%s12997_s3 + $0x6c4] sm:$0xf] }
 0x225   :  { %4736 = vmatpush.bf16.msra.mxu1 %v7079_v49  ;;  %v7636_v49 = vld [vmem:[%s12997_s3 + $0x5d0] sm:$0xf0]  ;;  %v2906_v45 = vadd.f32 %v2905_v22, %v2893_v15  ;;  %v7018_v15 = vld [vmem:[%s12997_s3 + $0xe8] sm:$0xf] }
 0x226   :  { %v7639_v50 = vor.u32 %v8616_v63, %v7636_v49  ;;  %v7316_v43 = vld [vmem:[%s12997_s3 + $0x350] sm:$0xf0]  ;;  %v8564_v49 = vld [vmem:[%s12997_s3 + $0x424] sm:$0xf] }
 0x227   :  { %4749 = vmatpush.bf16.msra.mxu2 %v7207_v2  ;;  %4724 = vmatpush.bf16.msra.mxu0 %v6935_v5  ;;  %v7492_v2 = vld [vmem:[%s12997_s3 + $0x4b0] sm:$0xf0]  ;;  %v7367_v5 = vor.u32 %v8548_v24, %v7364_v17  ;;  %v7319_v4 = vor.u32 %v8536_v42, %v7316_v43  ;;  %v8596_v24 = vld [vmem:[%s12997_s3 + $0x524] sm:$0xf]  ;;  %v7003_v43 = vor.u32 %v8459_v31, %v7002_v8 }
 0x228   :  { %4759 = vmatpush.bf16.msra.mxu3 %v7383_v53  ;;  %v7495_v9 = vor.u32 %v8580_v1, %v7492_v2  ;;  %v7556_v17 = vld [vmem:[%s12997_s3 + $0x530] sm:$0xf0]  ;;  %v7767_v2 = vor.u32 %v8648_v59, %v7764_v60  ;;  %v6970_v60 = vld [vmem:[%s12997_s3 + $0x88] sm:$0xf] }
 0x229   :  { %4737 = vmatpush.bf16.msra.mxu1 %v7063_v10  ;;  %v8544_v10 = vld [vmem:[%s12997_s3 + $0x384] sm:$0xf]  ;;  %v7300_v1 = vld [vmem:[%s12997_s3 + $0x330] sm:$0xf0] }
 0x22a   :  { %v7351_v14 = vor.u32 %v8544_v10, %v7348_v19  ;;  %v7748_v10 = vld [vmem:[%s12997_s3 + $0x6b0] sm:$0xf0]  ;;  %v7559_v19 = vor.u32 %v8596_v24, %v7556_v17 }
 0x22b   :  { %4750 = vmatpush.bf16.msra.mxu2 %v7191_v23  ;;  %4725 = vmatpush.bf16.msra.mxu0 %v6919_v20  ;;  %v7332_v23 = vld [vmem:[%s12997_s3 + $0x370] sm:$0xf0]  ;;  %v8572_v20 = vld [vmem:[%s12997_s3 + $0x464] sm:$0xf] }
 0x22c   :  { %4760 = vmatpush.bf16.msra.mxu3 %v7367_v5  ;;  %v7335_v27 = vor.u32 %v8540_v21, %v7332_v23  ;;  %v7463_v36 = vor.u32 %v8572_v20, %v7460_v26  ;;  %v11926_v57 = vpop.f32.mrf.mxu2  ;;  %v2907_v53 = vpop.f32.mrf.mxu0  ;;  %v8560_v5 = vld [vmem:[%s12997_s3 + $0x404] sm:$0xf]  ;;  %v7146_v21 = vld [vmem:[%s12997_s3 + $0x1e8] sm:$0xf]  ;;  %v8495_v23 = vld [vmem:[%s12997_s3 + $0x1f4] sm:$0xf0] }
 0x22d   :  { %4738 = vmatpush.bf16.msra.mxu1 %v7047_v3  ;;  %v2918_v3 = vpop.f32.mrf.mxu1  ;;  %v7415_v22 = vor.u32 %v8560_v5, %v7412_v35  ;;  %v8640_v20 = vld [vmem:[%s12997_s3 + $0x684] sm:$0xf]  ;;  %v7732_v26 = vld [vmem:[%s12997_s3 + $0x690] sm:$0xf0]  ;;  %v8483_v53 = vld [vmem:[%s12997_s3 + $0x194] sm:$0xf0] }
 0x22e   :  { %v2919_v33 = vadd.f32 %v2918_v3, %v2906_v45  ;;  %v11934_v63 = vpop.f32.mrf.mxu3  ;;  %v7019_v45 = vor.u32 %v8463_v16, %v7018_v15  ;;  %v7716_v42 = vld [vmem:[%s12997_s3 + $0x670] sm:$0xf0]  ;;  %v7082_v35 = vld [vmem:[%s12997_s3 + $0x168] sm:$0xf]  ;;  %v8443_v16 = vld [vmem:[%s12997_s3 + $0x54] sm:$0xf0] }
 0x22f   :  { %4751 = vmatpush.bf16.msra.mxu2 %v7175_v47  ;;  %4726 = vmatpush.bf16.msra.mxu0 %v6903_v48  ;;  %v8568_v47 = vld [vmem:[%s12997_s3 + $0x444] sm:$0xf]  ;;  %v7444_v48 = vld [vmem:[%s12997_s3 + $0x450] sm:$0xf0]  ;;  %v2945_v5 = vadd.f32 %v11934_v63, %v11926_v57  ;;  %v6938_v15 = vld [vmem:[%s12997_s3 + $0x48] sm:$0xf] }
 0x230   :  { %4761 = vmatpush.bf16.msra.mxu3 %v7351_v14  ;;  %v3051_v46 = vadd.f32 %v3035_v29, %v2919_v33  ;;  %v7540_v14 = vld [vmem:[%s12997_s3 + $0x510] sm:$0xf0]  ;;  %v7147_v29 = vor.u32 %v8495_v23, %v7146_v21  ;;  %v7130_v33 = vld [vmem:[%s12997_s3 + $0x1c8] sm:$0xf]  ;;  %v8475_v21 = vld [vmem:[%s12997_s3 + $0x154] sm:$0xf0]  ;;  %v7275_v23 = vor.u32 %v8527_v13, %v7274_v12 }
 0x231   :  { %4739 = vmatpush.bf16.msra.mxu1 %v7031_v51  ;;  %v7572_v51 = vld [vmem:[%s12997_s3 + $0x550] sm:$0xf0]  ;;  %v7642_v12 = vld [vmem:[%s12997_s3 + $0x5c8] sm:$0xf]  ;;  %v8619_v13 = vld [vmem:[%s12997_s3 + $0x5d4] sm:$0xf0] }
 0x232   :  { %4727 = vmatmul.bf16.vlgmr.msra.gmra.mxu0 %v11448_v34  ;;  %3059 = vst [vmem:[%s12996_s7 + $0x30] sm:$0xff] %v3051_v46  ;;  %v11924_v54 = vpack.c.bf16 %v3051_v46, %v3051_v46  ;;  %v7575_v61 = vor.u32 %v8600_v28, %v7572_v51  ;;  %v7114_v46 = vld [vmem:[%s12997_s3 + $0x1a8] sm:$0xf]  ;;  %v8487_v28 = vld [vmem:[%s12997_s3 + $0x1b4] sm:$0xf0] }
 0x233   :  { %4771 = vmatpush.bf16.msrb.mxu0 %v7527_v52  ;;  %4752 = vmatpush.bf16.msra.mxu2 %v7159_v30  ;;  %v7783_v52 = vor.u32 %v8652_v32, %v7780_v39  ;;  %v7428_v30 = vld [vmem:[%s12997_s3 + $0x430] sm:$0xf0]  ;;  %v7735_v32 = vor.u32 %v8640_v20, %v7732_v26  ;;  %v8636_v39 = vld [vmem:[%s12997_s3 + $0x664] sm:$0xf]  ;;  %v7115_v59 = vor.u32 %v8487_v28, %v7114_v46  ;;  %v7258_v20 = vld [vmem:[%s12997_s3 + $0x2c8] sm:$0xf] }
 0x234   :  { %4740 = vmatmul.bf16.vlgmr.msra.gmra.mxu1 %v11453_v40  ;;  %4762 = vmatpush.bf16.msra.mxu3 %v7335_v27  ;;  %v7431_v7 = vor.u32 %v8564_v49, %v7428_v30  ;;  %v8632_v51 = vld [vmem:[%s12997_s3 + $0x644] sm:$0xf]  ;;  %v7098_v30 = vld [vmem:[%s12997_s3 + $0x188] sm:$0xf]  ;;  %v7684_v24 = vld [vmem:[%s12997_s3 + $0x630] sm:$0xf0] }
 0x235   :  { %4784 = vmatpush.bf16.msrb.mxu1 %v7655_v55  ;;  %v7447_v55 = vor.u32 %v8568_v47, %v7444_v48  ;;  %4701 = vmatmul.bf16.vlgmr.msrb.gmra.mxu2 %v11924_v54  ;;  %v6986_v47 = vld [vmem:[%s12997_s3 + $0xa8] sm:$0xf]  ;;  %v8455_v48 = vld [vmem:[%s12997_s3 + $0xb4] sm:$0xf0]  ;;  %v7668_v57 = vld [vmem:[%s12997_s3 + $0x610] sm:$0xf0] }
 0x236   :  { %v2946_v3 = vpop.f32.mrf.mxu3  ;;  %v8523_v26 = vld [vmem:[%s12997_s3 + $0x2d4] sm:$0xf0] }
 0x237   :  { %4772 = vmatpush.bf16.msrb.mxu0 %v7511_v0  ;;  %v8532_v0 = vld [vmem:[%s12997_s3 + $0x324] sm:$0xf]  ;;  %4797 = vmatpush.bf16.msrb.mxu2 %v7783_v52  ;;  %v7700_v52 = vld [vmem:[%s12997_s3 + $0x650] sm:$0xf0]  ;;  %v6922_v3 = vld [vmem:[%s12997_s3 + $0x28] sm:$0xf] }
 0x238   :  { %4763 = vmatpush.bf16.msra.mxu3 %v7319_v4  ;;  %v7303_v6 = vor.u32 %v8532_v0, %v7300_v1  ;;  %v7719_v4 = vor.u32 %v8636_v39, %v7716_v42  ;;  %v7703_v49 = vor.u32 %v8632_v51, %v7700_v52  ;;  %v8628_v0 = vld [vmem:[%s12997_s3 + $0x624] sm:$0xf]  ;;  %v6954_v1 = vld [vmem:[%s12997_s3 + $0x68] sm:$0xf]  ;;  %v8471_v39 = vld [vmem:[%s12997_s3 + $0x134] sm:$0xf0] }
 0x239   :  { %4785 = vmatpush.bf16.msrb.mxu1 %v7639_v50  ;;  %v2920_v50 = vpop.f32.mrf.mxu1  ;;  %v8519_v46 = vld [vmem:[%s12997_s3 + $0x2b4] sm:$0xf0]  ;;  %v6906_v51 = vld [vmem:[%s12997_s3 + $0x8] sm:$0xf] }
 0x23a   :  { %v7099_v50 = vor.u32 %v8483_v53, %v7098_v30  ;;  %v8435_v52 = vld [vmem:[%s12997_s3 + $0x14] sm:$0xf0] }
 0x23b   :  { %4773 = vmatpush.bf16.msrb.mxu0 %v7495_v9  ;;  %v8644_v9 = vld [vmem:[%s12997_s3 + $0x6a4] sm:$0xf]  ;;  %4798 = vmatpush.bf16.msrb.mxu2 %v7767_v2  ;;  %v8447_v2 = vld [vmem:[%s12997_s3 + $0x74] sm:$0xf0] }
 0x23c   :  { %4764 = vmatpush.bf16.msra.mxu3 %v7303_v6 }
 0x23d   :  { %4786 = vmatpush.bf16.msrb.mxu1 %v7623_v58  ;;  %v8592_v58 = vld [vmem:[%s12997_s3 + $0x504] sm:$0xf] }
 0x23e   :  { %v7543_v27 = vor.u32 %v8592_v58, %v7540_v14  ;;  %v6955_v58 = vor.u32 %v8447_v2, %v6954_v1  ;;  %v8680_v1 = vld [vmem:[%s12997_s3 + $0x7c4] sm:$0xf]  ;;  %v7892_v2 = vld [vmem:[%s12997_s3 + $0x7d0] sm:$0xf0] }
 0x23f   :  { %4774 = vmatpush.bf16.msrb.mxu0 %v7479_v18  ;;  %v7751_v18 = vor.u32 %v8644_v9, %v7748_v10  ;;  %v8479_v9 = vld [vmem:[%s12997_s3 + $0x174] sm:$0xf0] }
 0x240   :  { %4765 = vmatpush.bf16.msra.mxu3 %v7287_v37  ;;  %v7083_v14 = vor.u32 %v8479_v9, %v7082_v35  ;;  %v7226_v35 = vld [vmem:[%s12997_s3 + $0x288] sm:$0xf]  ;;  %v8515_v9 = vld [vmem:[%s12997_s3 + $0x294] sm:$0xf0] }
 0x241   :  { %4787 = vmatpush.bf16.msrb.mxu1 %v7607_v25  ;;  %v2933_v25 = vpop.f32.mrf.mxu2  ;;  %4799 = vmatpush.bf16.msrb.mxu2 %v7751_v18  ;;  %v7066_v18 = vld [vmem:[%s12997_s3 + $0x148] sm:$0xf] }
 0x242   :  { %v6939_v25 = vor.u32 %v8443_v16, %v6938_v15  ;;  %v8676_v15 = vld [vmem:[%s12997_s3 + $0x7a4] sm:$0xf]  ;;  %v7876_v16 = vld [vmem:[%s12997_s3 + $0x7b0] sm:$0xf0] }
 0x243   :  { %4775 = vmatpush.bf16.msrb.mxu0 %v7463_v36  ;;  %v8491_v36 = vld [vmem:[%s12997_s3 + $0x1d4] sm:$0xf0] }
 0x245   :  { %4788 = vmatpush.bf16.msrb.mxu1 %v7591_v56  ;;  %v7131_v56 = vor.u32 %v8491_v36, %v7130_v33  ;;  %4800 = vmatpush.bf16.msrb.mxu2 %v7735_v32  ;;  %v3036_v32 = vperm.slane %v11888_v62, 7  ;;  %v7050_v36 = vld [vmem:[%s12997_s3 + $0x128] sm:$0xf] }
 0x246   :  { %4753 = vmatmul.bf16.vlgmr.msra.gmra.mxu2 %v11457_v41  ;;  %v7051_v28 = vor.u32 %v8471_v39, %v7050_v36  ;;  %v7482_v39 = vld [vmem:[%s12997_s3 + $0x488] sm:$0xf] }
 0x247   :  { %4776 = vmatpush.bf16.msrb.mxu0 %v7447_v55  ;;  %v6987_v55 = vor.u32 %v8455_v48, %v6986_v47  ;;  %v7908_v48 = vld [vmem:[%s12997_s3 + $0x7f0] sm:$0xf0] }
 0x249   :  { %4789 = vmatpush.bf16.msrb.mxu1 %v7575_v61  ;;  %v8451_v61 = vld [vmem:[%s12997_s3 + $0x94] sm:$0xf0]  ;;  %4801 = vmatpush.bf16.msrb.mxu2 %v7719_v4  ;;  %v7242_v4 = vld [vmem:[%s12997_s3 + $0x2a8] sm:$0xf] }
 0x24a   :  { %v6971_v17 = vor.u32 %v8451_v61, %v6970_v60  ;;  %v8467_v60 = vld [vmem:[%s12997_s3 + $0x114] sm:$0xf0]  ;;  %v7530_v61 = vld [vmem:[%s12997_s3 + $0x4e8] sm:$0xf]  ;;  %v7243_v53 = vor.u32 %v8519_v46, %v7242_v4  ;;  %v8668_v4 = vld [vmem:[%s12997_s3 + $0x764] sm:$0xf] }
 0x24b   :  { %4777 = vmatpush.bf16.msrb.mxu0 %v7431_v7  ;;  %v7687_v7 = vor.u32 %v8628_v0, %v7684_v24  ;;  %v7658_v0 = vld [vmem:[%s12997_s3 + $0x5e8] sm:$0xf]  ;;  %v8623_v24 = vld [vmem:[%s12997_s3 + $0x5f4] sm:$0xf0]  ;;  %v7844_v46 = vld [vmem:[%s12997_s3 + $0x770] sm:$0xf0] }
 0x24d   :  { %4790 = vmatpush.bf16.msrb.mxu1 %v7559_v19  ;;  %4802 = vmatpush.bf16.msrb.mxu2 %v7703_v49  ;;  %v8624_v19 = vld [vmem:[%s12997_s3 + $0x604] sm:$0xf]  ;;  %v8591_v49 = vld [vmem:[%s12997_s3 + $0x4f4] sm:$0xf0] }
 0x24e   :  { %v7671_v37 = vor.u32 %v8624_v19, %v7668_v57  ;;  %v7659_v19 = vor.u32 %v8623_v24, %v7658_v0  ;;  %v7514_v57 = vld [vmem:[%s12997_s3 + $0x4c8] sm:$0xf] }
 0x24f   :  { %4778 = vmatpush.bf16.msrb.mxu0 %v7415_v22  ;;  %v2957_v6 = vpop.f32.mrf.mxu0 }
 0x250   :  { %v2958_v63 = vadd.f32 %v2957_v6, %v2945_v5 }
 0x251   :  { %4791 = vmatpush.bf16.msrb.mxu1 %v7543_v27  ;;  %v2970_v10 = vpop.f32.mrf.mxu1  ;;  %4803 = vmatpush.bf16.msrb.mxu2 %v7687_v7  ;;  %v7531_v7 = vor.u32 %v8591_v49, %v7530_v61  ;;  %v7847_v49 = vor.u32 %v8668_v4, %v7844_v46  ;;  %v8563_v46 = vld [vmem:[%s12997_s3 + $0x414] sm:$0xf0] }
 0x252   :  { %4779 = vmatmul.bf16.vlgmr.msrb.gmra.mxu0 %v11636_v11  ;;  %v2971_v22 = vadd.f32 %v2970_v10, %v2958_v63  ;;  %v8587_v63 = vld [vmem:[%s12997_s3 + $0x4d4] sm:$0xf0] }
 0x253   :  { %4823 = vmatpush.bf16.msra.mxu0 %v7019_v45  ;;  %v7067_v45 = vor.u32 %v8475_v21, %v7066_v18  ;;  %v7210_v18 = vld [vmem:[%s12997_s3 + $0x268] sm:$0xf]  ;;  %v8511_v21 = vld [vmem:[%s12997_s3 + $0x274] sm:$0xf0] }
 0x254   :  { %4792 = vmatmul.bf16.vlgmr.msrb.gmra.mxu1 %v11629_v38 }
 0x255   :  { %4836 = vmatpush.bf16.msra.mxu1 %v7147_v29  ;;  %v8439_v29 = vld [vmem:[%s12997_s3 + $0x34] sm:$0xf0]  ;;  %4804 = vmatpush.bf16.msrb.mxu2 %v7671_v37  ;;  %v7515_v37 = vor.u32 %v8587_v63, %v7514_v57  ;;  %v7786_v57 = vld [vmem:[%s12997_s3 + $0x6e8] sm:$0xf] }
 0x256   :  { %v6923_v62 = vor.u32 %v8439_v29, %v6922_v3  ;;  %v8672_v3 = vld [vmem:[%s12997_s3 + $0x784] sm:$0xf]  ;;  %v7860_v29 = vld [vmem:[%s12997_s3 + $0x790] sm:$0xf0]  ;;  %v8655_v63 = vld [vmem:[%s12997_s3 + $0x6f4] sm:$0xf0] }
 0x257   :  { %4824 = vmatpush.bf16.msra.mxu0 %v7003_v43  ;;  %v2959_v33 = vpop.f32.mrf.mxu0  ;;  %v7259_v43 = vor.u32 %v8523_v26, %v7258_v20  ;;  %v7879_v20 = vor.u32 %v8676_v15, %v7876_v16  ;;  %v7626_v26 = vld [vmem:[%s12997_s3 + $0x5a8] sm:$0xf]  ;;  %v8660_v15 = vld [vmem:[%s12997_s3 + $0x724] sm:$0xf]  ;;  %v7812_v16 = vld [vmem:[%s12997_s3 + $0x730] sm:$0xf0] }
 0x258   :  { %4805 = vmatmul.bf16.vlgmr.msrb.gmra.mxu2 %v11924_v54  ;;  %v8507_v33 = vld [vmem:[%s12997_s3 + $0x254] sm:$0xf0] }
 0x259   :  { %4837 = vmatpush.bf16.msra.mxu1 %v7131_v56  ;;  %v2983_v27 = vpop.f32.mrf.mxu2  ;;  %v2972_v42 = vpop.f32.mrf.mxu1  ;;  %4849 = vmatpush.bf16.msra.mxu2 %v7275_v23  ;;  %v8684_v56 = vld [vmem:[%s12997_s3 + $0x7e4] sm:$0xf]  ;;  %v7643_v23 = vor.u32 %v8619_v13, %v7642_v12  ;;  %v7578_v12 = vld [vmem:[%s12997_s3 + $0x548] sm:$0xf]  ;;  %v8603_v13 = vld [vmem:[%s12997_s3 + $0x554] sm:$0xf0] }
 0x25a   :  { %v2984_v8 = vadd.f32 %v2983_v27, %v2971_v22  ;;  %v7911_v30 = vor.u32 %v8684_v56, %v7908_v48  ;;  %v7498_v22 = vld [vmem:[%s12997_s3 + $0x4a8] sm:$0xf]  ;;  %v8615_v27 = vld [vmem:[%s12997_s3 + $0x5b4] sm:$0xf0] }
 0x25b   :  { %4825 = vmatpush.bf16.msra.mxu0 %v6987_v55  ;;  %v2996_v31 = vpop.f32.mrf.mxu3  ;;  %v7034_v55 = vld [vmem:[%s12997_s3 + $0x108] sm:$0xf]  ;;  %v7627_v36 = vor.u32 %v8615_v27, %v7626_v26  ;;  %v8579_v42 = vld [vmem:[%s12997_s3 + $0x494] sm:$0xf0] }
 0x25c   :  { %v2997_v47 = vadd.f32 %v2996_v31, %v2984_v8  ;;  %v7035_v6 = vor.u32 %v8467_v60, %v7034_v55  ;;  %v12213_v31 = vld [vmem:[%s12998_s4] sm:$0xf]  ;;  %v7610_v56 = vld [vmem:[%s12997_s3 + $0x588] sm:$0xf]  ;;  %v8575_v60 = vld [vmem:[%s12997_s3 + $0x474] sm:$0xf0] }
 0x25d   :  { %4838 = vmatpush.bf16.msra.mxu1 %v7115_v59  ;;  %4850 = vmatpush.bf16.msra.mxu2 %v7259_v43  ;;  %v7863_v43 = vor.u32 %v8672_v3, %v7860_v29  ;;  %v8651_v26 = vld [vmem:[%s12997_s3 + $0x6d4] sm:$0xf0]  ;;  %v7815_v29 = vor.u32 %v8660_v15, %v7812_v16  ;;  %v7722_v16 = vld [vmem:[%s12997_s3 + $0x668] sm:$0xf] }
 0x25e   :  { %v3052_v59 = vadd.f32 %v3036_v32, %v2997_v47  ;;  %v7194_v32 = vld [vmem:[%s12997_s3 + $0x248] sm:$0xf]  ;;  %v8611_v47 = vld [vmem:[%s12997_s3 + $0x594] sm:$0xf0] }
 0x25f   :  { %4826 = vmatpush.bf16.msra.mxu0 %v6971_v17  ;;  %v7195_v48 = vor.u32 %v8507_v33, %v7194_v32  ;;  %v7611_v55 = vor.u32 %v8611_v47, %v7610_v56  ;;  %v8599_v32 = vld [vmem:[%s12997_s3 + $0x534] sm:$0xf0]  ;;  %v7402_v47 = vld [vmem:[%s12997_s3 + $0x3e8] sm:$0xf] }
 0x260   :  { %3060 = vst [vmem:[%s12996_s7 + $0x38] sm:$0xff] %v3052_v59  ;;  %v12151_v17 = vpack.c.bf16 %v3052_v59, %v3052_v59  ;;  %v7466_v59 = vld [vmem:[%s12997_s3 + $0x468] sm:$0xf]  ;;  %v8551_v15 = vld [vmem:[%s12997_s3 + $0x3b4] sm:$0xf0] }
 0x261   :  { %4839 = vmatpush.bf16.msra.mxu1 %v7099_v50  ;;  %v6907_v50 = vor.u32 %v8435_v52, %v6906_v51  ;;  %v2985_v5 = vpop.f32.mrf.mxu2  ;;  %4851 = vmatpush.bf16.msra.mxu2 %v7243_v53  ;;  %v7178_v51 = vld [vmem:[%s12997_s3 + $0x228] sm:$0xf]  ;;  %v8503_v52 = vld [vmem:[%s12997_s3 + $0x234] sm:$0xf0] }
 0x262   :  { %4714 = vmatmul.bf16.vlgmr.msrb.gmra.mxu3 %v12151_v17  ;;  %v8607_v53 = vld [vmem:[%s12997_s3 + $0x574] sm:$0xf0]  ;;  %v7467_v5 = vor.u32 %v8575_v60, %v7466_v59  ;;  %v8461_v60 = vld [vmem:[%s12997_s3 + $0xec] sm:$0xf] }
 0x263   :  { %4827 = vmatpush.bf16.msra.mxu0 %v6955_v58  ;;  %v2998_v10 = vpop.f32.mrf.mxu3  ;;  %4810 = vmatpush.bf16.msrb.mxu3 %v7911_v30  ;;  %v7895_v58 = vor.u32 %v8680_v1, %v7892_v2  ;;  %v7594_v30 = vld [vmem:[%s12997_s3 + $0x568] sm:$0xf]  ;;  %v8664_v1 = vld [vmem:[%s12997_s3 + $0x744] sm:$0xf]  ;;  %v7828_v2 = vld [vmem:[%s12997_s3 + $0x750] sm:$0xf0] }
 0x264   :  { %v7595_v10 = vor.u32 %v8607_v53, %v7594_v30  ;;  %v8595_v59 = vld [vmem:[%s12997_s3 + $0x514] sm:$0xf0]  ;;  %v8493_v30 = vld [vmem:[%s12997_s3 + $0x1ec] sm:$0xf]  ;;  %v7148_v53 = vld [vmem:[%s12997_s3 + $0x1f8] sm:$0xf0] }
 0x265   :  { %4840 = vmatpush.bf16.msra.mxu1 %v7083_v14  ;;  %v7227_v14 = vor.u32 %v8515_v9, %v7226_v35  ;;  %v7450_v35 = vld [vmem:[%s12997_s3 + $0x448] sm:$0xf] }
 0x267   :  { %4828 = vmatpush.bf16.msra.mxu0 %v6939_v25  ;;  %v8583_v25 = vld [vmem:[%s12997_s3 + $0x4b4] sm:$0xf0]  ;;  %4811 = vmatpush.bf16.msrb.mxu3 %v7895_v58  ;;  %v7831_v58 = vor.u32 %v8664_v1, %v7828_v2 }
 0x268   :  { %4852 = vmatpush.bf16.msra.mxu2 %v7227_v14  ;;  %v7499_v8 = vor.u32 %v8583_v25, %v7498_v22  ;;  %v7579_v22 = vor.u32 %v8603_v13, %v7578_v12  ;;  %v8567_v25 = vld [vmem:[%s12997_s3 + $0x434] sm:$0xf0]  ;;  %v7132_v12 = vld [vmem:[%s12997_s3 + $0x1d8] sm:$0xf0] }
 0x269   :  { %4841 = vmatpush.bf16.msra.mxu1 %v7067_v45  ;;  %v7211_v45 = vor.u32 %v8511_v21, %v7210_v18  ;;  %v7787_v18 = vor.u32 %v8655_v63, %v7786_v57  ;;  %v7434_v21 = vld [vmem:[%s12997_s3 + $0x428] sm:$0xf]  ;;  %v8555_v1 = vld [vmem:[%s12997_s3 + $0x3d4] sm:$0xf0]  ;;  %v7004_v63 = vld [vmem:[%s12997_s3 + $0xd8] sm:$0xf0] }
 0x26b   :  { %4829 = vmatpush.bf16.msra.mxu0 %v6923_v62  ;;  %4812 = vmatpush.bf16.msrb.mxu3 %v7879_v20  ;;  %v3327_v62 = vperm.slane %v12213_v31, 0  ;;  %v7770_v20 = vld [vmem:[%s12997_s3 + $0x6c8] sm:$0xf] }
 0x26c   :  { %4853 = vmatpush.bf16.msra.mxu2 %v7211_v45  ;;  %v7771_v56 = vor.u32 %v8651_v26, %v7770_v20  ;;  %v8485_v20 = vld [vmem:[%s12997_s3 + $0x1ac] sm:$0xf]  ;;  %v7116_v26 = vld [vmem:[%s12997_s3 + $0x1b8] sm:$0xf0] }
 0x26d   :  { %4842 = vmatpush.bf16.msra.mxu1 %v7051_v28  ;;  %v7483_v28 = vor.u32 %v8579_v42, %v7482_v39  ;;  %v7796_v39 = vld [vmem:[%s12997_s3 + $0x710] sm:$0xf0] }
 0x26f   :  { %4830 = vmatpush.bf16.msra.mxu0 %v6907_v50  ;;  %4813 = vmatpush.bf16.msrb.mxu3 %v7863_v43  ;;  %v4624_v61 = vpop.f32.mrf.mxu0  ;;  %v7179_v50 = vor.u32 %v8503_v52, %v7178_v51  ;;  %v7435_v43 = vor.u32 %v8567_v25, %v7434_v21  ;;  %v8647_v51 = vld [vmem:[%s12997_s3 + $0x6b4] sm:$0xf0]  ;;  %v6988_v25 = vld [vmem:[%s12997_s3 + $0xb8] sm:$0xf0] }
 0x270   :  { %v4625_v0 = vadd.f32 %v4624_v61, %v3327_v62  ;;  %4854 = vmatpush.bf16.msra.mxu2 %v7195_v48  ;;  %v8559_v62 = vld [vmem:[%s12997_s3 + $0x3f4] sm:$0xf0]  ;;  %v7418_v48 = vld [vmem:[%s12997_s3 + $0x408] sm:$0xf] }
 0x271   :  { %4843 = vmatpush.bf16.msra.mxu1 %v7035_v6  ;;  %v4637_v24 = vpop.f32.mrf.mxu1  ;;  %v7162_v6 = vld [vmem:[%s12997_s3 + $0x208] sm:$0xf]  ;;  %v7403_v61 = vor.u32 %v8559_v62, %v7402_v47  ;;  %v7100_v47 = vld [vmem:[%s12997_s3 + $0x198] sm:$0xf0] }
 0x272   :  { %4831 = vmatmul.bf16.vlgmr.msra.gmra.mxu0 %v11448_v34  ;;  %v4638_v9 = vadd.f32 %v4637_v24, %v4625_v0  ;;  %4766 = vmatmul.bf16.vlgmr.msra.gmra.mxu3 %v11467_v44  ;;  %v7419_v0 = vor.u32 %v8563_v46, %v7418_v48  ;;  %v7338_v48 = vld [vmem:[%s12997_s3 + $0x368] sm:$0xf] }
 0x273   :  { %4875 = vmatpush.bf16.msrb.mxu0 %v7531_v7  ;;  %v8499_v7 = vld [vmem:[%s12997_s3 + $0x214] sm:$0xf0]  ;;  %4814 = vmatpush.bf16.msrb.mxu3 %v7847_v49  ;;  %v7020_v49 = vld [vmem:[%s12997_s3 + $0xf8] sm:$0xf0]  ;;  %v7690_v46 = vld [vmem:[%s12997_s3 + $0x628] sm:$0xf] }
 0x274   :  { %4844 = vmatmul.bf16.vlgmr.msra.gmra.mxu1 %v11453_v40  ;;  %4855 = vmatpush.bf16.msra.mxu2 %v7179_v50  ;;  %v7163_v14 = vor.u32 %v8499_v7, %v7162_v6  ;;  %v7386_v50 = vld [vmem:[%s12997_s3 + $0x3c8] sm:$0xf]  ;;  %v8643_v7 = vld [vmem:[%s12997_s3 + $0x694] sm:$0xf0] }
 0x275   :  { %4888 = vmatpush.bf16.msrb.mxu1 %v7659_v19  ;;  %v8571_v19 = vld [vmem:[%s12997_s3 + $0x454] sm:$0xf0]  ;;  %v7738_v6 = vld [vmem:[%s12997_s3 + $0x688] sm:$0xf]  ;;  %v7387_v57 = vor.u32 %v8555_v1, %v7386_v50 }
 0x276   :  { %v7739_v13 = vor.u32 %v8643_v7, %v7738_v6 }
 0x277   :  { %4876 = vmatpush.bf16.msrb.mxu0 %v7515_v37  ;;  %v7451_v37 = vor.u32 %v8571_v19, %v7450_v35  ;;  %4815 = vmatpush.bf16.msrb.mxu3 %v7831_v58  ;;  %v4626_v3 = vpop.f32.mrf.mxu0  ;;  %v8457_v19 = vld [vmem:[%s12997_s3 + $0xcc] sm:$0xf] }
 0x278   :  { %4856 = vmatpush.bf16.msra.mxu2 %v7163_v14  ;;  %v8489_v58 = vld [vmem:[%s12997_s3 + $0x1cc] sm:$0xf]  ;;  %v7370_v14 = vld [vmem:[%s12997_s3 + $0x3a8] sm:$0xf]  ;;  %v8547_v3 = vld [vmem:[%s12997_s3 + $0x394] sm:$0xf0] }
 0x279   :  { %4889 = vmatpush.bf16.msrb.mxu1 %v7643_v23  ;;  %v4650_v23 = vpop.f32.mrf.mxu2  ;;  %v4639_v33 = vpop.f32.mrf.mxu1  ;;  %v7135_v21 = vor.u32 %v8489_v58, %v7132_v12  ;;  %v7068_v58 = vld [vmem:[%s12997_s3 + $0x158] sm:$0xf0] }
 0x27a   :  { %v4651_v27 = vadd.f32 %v4650_v23, %v4638_v9  ;;  %v7023_v9 = vor.u32 %v8461_v60, %v7020_v49  ;;  %v8453_v23 = vld [vmem:[%s12997_s3 + $0xac] sm:$0xf]  ;;  %v7119_v33 = vor.u32 %v8485_v20, %v7116_v26  ;;  %v6956_v60 = vld [vmem:[%s12997_s3 + $0x78] sm:$0xf0] }
 0x27b   :  { %4877 = vmatpush.bf16.msrb.mxu0 %v7499_v8  ;;  %v4663_v45 = vpop.f32.mrf.mxu3  ;;  %v7562_v8 = vld [vmem:[%s12997_s3 + $0x528] sm:$0xf]  ;;  %4816 = vmatpush.bf16.msrb.mxu3 %v7815_v29  ;;  %v7084_v49 = vld [vmem:[%s12997_s3 + $0x178] sm:$0xf0]  ;;  %v8469_v20 = vld [vmem:[%s12997_s3 + $0x12c] sm:$0xf] }
 0x27c   :  { %v12319_v42 = vadd.f32 %v4663_v45, %v4651_v27  ;;  %4901 = vmatpush.bf16.msrb.mxu2 %v7787_v18  ;;  %v7563_v4 = vor.u32 %v8599_v32, %v7562_v8  ;;  %v7007_v18 = vor.u32 %v8457_v19, %v7004_v63  ;;  %v7354_v45 = vld [vmem:[%s12997_s3 + $0x388] sm:$0xf]  ;;  %v8635_v8 = vld [vmem:[%s12997_s3 + $0x654] sm:$0xf0]  ;;  %v6991_v32 = vor.u32 %v8453_v23, %v6988_v25  ;;  %v8473_v63 = vld [vmem:[%s12997_s3 + $0x14c] sm:$0xf] }
 0x27d   :  { %4890 = vmatpush.bf16.msrb.mxu1 %v7627_v36  ;;  %v8656_v36 = vld [vmem:[%s12997_s3 + $0x704] sm:$0xf]  ;;  %4857 = vmatmul.bf16.vlgmr.msra.gmra.mxu2 %v11457_v41  ;;  %v7706_v29 = vld [vmem:[%s12997_s3 + $0x648] sm:$0xf]  ;;  %v7260_v23 = vld [vmem:[%s12997_s3 + $0x2d8] sm:$0xf0] }
 0x27e   :  { %v7799_v52 = vor.u32 %v8656_v36, %v7796_v39  ;;  %v8449_v36 = vld [vmem:[%s12997_s3 + $0x8c] sm:$0xf]  ;;  %v7355_v39 = vor.u32 %v8547_v3, %v7354_v45  ;;  %v7707_v62 = vor.u32 %v8635_v8, %v7706_v29  ;;  %v6924_v25 = vld [vmem:[%s12997_s3 + $0x38] sm:$0xf0]  ;;  %v7290_v45 = vld [vmem:[%s12997_s3 + $0x308] sm:$0xf] }
 0x27f   :  { %4878 = vmatpush.bf16.msrb.mxu0 %v7483_v28  ;;  %v7754_v28 = vld [vmem:[%s12997_s3 + $0x6a8] sm:$0xf]  ;;  %v7052_v26 = vld [vmem:[%s12997_s3 + $0x138] sm:$0xf0]  ;;  %v8531_v3 = vld [vmem:[%s12997_s3 + $0x314] sm:$0xf0] }
 0x280   :  { %4902 = vmatpush.bf16.msrb.mxu2 %v7771_v56  ;;  %v7755_v24 = vor.u32 %v8647_v51, %v7754_v28  ;;  %4817 = vmatpush.bf16.msrb.mxu3 %v7799_v52  ;;  %v8481_v56 = vld [vmem:[%s12997_s3 + $0x18c] sm:$0xf]  ;;  %v8631_v28 = vld [vmem:[%s12997_s3 + $0x634] sm:$0xf0] }
 0x281   :  { %4891 = vmatpush.bf16.msrb.mxu1 %v7611_v55  ;;  %v7546_v55 = vld [vmem:[%s12997_s3 + $0x508] sm:$0xf]  ;;  %v4652_v2 = vpop.f32.mrf.mxu2  ;;  %v7103_v52 = vor.u32 %v8481_v56, %v7100_v47  ;;  %v8517_v56 = vld [vmem:[%s12997_s3 + $0x2ac] sm:$0xf]  ;;  %v7244_v47 = vld [vmem:[%s12997_s3 + $0x2b8] sm:$0xf0] }
 0x282   :  { %v7674_v2 = vld [vmem:[%s12997_s3 + $0x608] sm:$0xf] }
 0x283   :  { %4879 = vmatpush.bf16.msrb.mxu0 %v7467_v5  ;;  %v7547_v5 = vor.u32 %v8595_v59, %v7546_v55  ;;  %v4665_v35 = vpop.f32.mrf.mxu3  ;;  %4818 = vmatmul.bf16.vlgmr.msrb.gmra.mxu3 %v12151_v17  ;;  %v8445_v55 = vld [vmem:[%s12997_s3 + $0x6c] sm:$0xf] }
 0x284   :  { %4862 = vmatpush.bf16.msra.mxu3 %v7403_v61  ;;  %4903 = vmatpush.bf16.msrb.mxu2 %v7755_v24  ;;  %v8477_v61 = vld [vmem:[%s12997_s3 + $0x16c] sm:$0xf]  ;;  %v8539_v24 = vld [vmem:[%s12997_s3 + $0x354] sm:$0xf0]  ;;  %v6959_v6 = vor.u32 %v8445_v55, %v6956_v60  ;;  %v7660_v60 = vld [vmem:[%s12997_s3 + $0x5f8] sm:$0xf0] }
 0x285   :  { %4892 = vmatpush.bf16.msrb.mxu1 %v7595_v10  ;;  %v7151_v10 = vor.u32 %v8493_v30, %v7148_v53  ;;  %v7691_v53 = vor.u32 %v8631_v28, %v7690_v46  ;;  %v7087_v7 = vor.u32 %v8477_v61, %v7084_v49  ;;  %v8441_v35 = vld [vmem:[%s12997_s3 + $0x4c] sm:$0xf]  ;;  %v7036_v46 = vld [vmem:[%s12997_s3 + $0x118] sm:$0xf0]  ;;  %v7898_v61 = vld [vmem:[%s12997_s3 + $0x7c8] sm:$0xf] }
 0x286   :  { %v8621_v55 = vld [vmem:[%s12997_s3 + $0x5ec] sm:$0xf]  ;;  %v8683_v49 = vld [vmem:[%s12997_s3 + $0x7d4] sm:$0xf0] }
 0x287   :  { %4880 = vmatpush.bf16.msrb.mxu0 %v7451_v37  ;;  %v8639_v37 = vld [vmem:[%s12997_s3 + $0x674] sm:$0xf0] }
 0x288   :  { %4863 = vmatpush.bf16.msra.mxu3 %v7387_v57  ;;  %4904 = vmatpush.bf16.msrb.mxu2 %v7739_v13  ;;  %v7723_v27 = vor.u32 %v8639_v37, %v7722_v16  ;;  %v6940_v57 = vld [vmem:[%s12997_s3 + $0x58] sm:$0xf0]  ;;  %v7306_v13 = vld [vmem:[%s12997_s3 + $0x328] sm:$0xf]  ;;  %v7071_v37 = vor.u32 %v8473_v63, %v7068_v58 }
 0x289   :  { %4893 = vmatpush.bf16.msrb.mxu1 %v7579_v22  ;;  %v7371_v22 = vor.u32 %v8551_v15, %v7370_v14  ;;  %v8535_v14 = vld [vmem:[%s12997_s3 + $0x334] sm:$0xf0]  ;;  %v6943_v16 = vor.u32 %v8441_v35, %v6940_v57  ;;  %v8509_v57 = vld [vmem:[%s12997_s3 + $0x26c] sm:$0xf]  ;;  %v7212_v63 = vld [vmem:[%s12997_s3 + $0x278] sm:$0xf0] }
 0x28b   :  { %4881 = vmatpush.bf16.msrb.mxu0 %v7435_v43  ;;  %v6972_v43 = vld [vmem:[%s12997_s3 + $0x98] sm:$0xf0] }
 0x28c   :  { %4864 = vmatpush.bf16.msra.mxu3 %v7371_v22  ;;  %4905 = vmatpush.bf16.msrb.mxu2 %v7723_v27  ;;  %v6975_v51 = vor.u32 %v8449_v36, %v6972_v43  ;;  %v7307_v22 = vor.u32 %v8535_v14, %v7306_v13  ;;  %v8433_v43 = vld [vmem:[%s12997_s3 + $0xc] sm:$0xf] }
 0x28d   :  { %4894 = vmatpush.bf16.msrb.mxu1 %v7563_v4  ;;  %v8543_v4 = vld [vmem:[%s12997_s3 + $0x374] sm:$0xf0]  ;;  %v8581_v14 = vld [vmem:[%s12997_s3 + $0x4ac] sm:$0xf] }
 0x28e   :  { %v7339_v59 = vor.u32 %v8543_v4, %v7338_v48  ;;  %v6908_v48 = vld [vmem:[%s12997_s3 + $0x18] sm:$0xf0]  ;;  %v8465_v4 = vld [vmem:[%s12997_s3 + $0x10c] sm:$0xf] }
 0x28f   :  { %4882 = vmatpush.bf16.msrb.mxu0 %v7419_v0  ;;  %v4676_v30 = vpop.f32.mrf.mxu0  ;;  %v7322_v0 = vld [vmem:[%s12997_s3 + $0x348] sm:$0xf] }
 0x290   :  { %4865 = vmatpush.bf16.msra.mxu3 %v7355_v39  ;;  %4906 = vmatpush.bf16.msrb.mxu2 %v7707_v62  ;;  %v4677_v50 = vadd.f32 %v4676_v30, %v12319_v42  ;;  %v8525_v42 = vld [vmem:[%s12997_s3 + $0x2ec] sm:$0xf]  ;;  %v7323_v19 = vor.u32 %v8539_v24, %v7322_v0  ;;  %v7055_v39 = vor.u32 %v8469_v20, %v7052_v26  ;;  %v7228_v0 = vld [vmem:[%s12997_s3 + $0x298] sm:$0xf0] }
 0x291   :  { %4895 = vmatpush.bf16.msrb.mxu1 %v7547_v5  ;;  %v4689_v1 = vpop.f32.mrf.mxu1  ;;  %v8627_v5 = vld [vmem:[%s12997_s3 + $0x614] sm:$0xf0]  ;;  %v7291_v62 = vor.u32 %v8531_v3, %v7290_v45  ;;  %v6911_v30 = vor.u32 %v8433_v43, %v6908_v48  ;;  %v7039_v24 = vor.u32 %v8465_v4, %v7036_v46  ;;  %v8609_v45 = vld [vmem:[%s12997_s3 + $0x58c] sm:$0xf]  ;;  %v7468_v48 = vld [vmem:[%s12997_s3 + $0x478] sm:$0xf0] }
 0x292   :  { %4883 = vmatmul.bf16.vlgmr.msrb.gmra.mxu0 %v11636_v11  ;;  %v7675_v12 = vor.u32 %v8627_v5, %v7674_v2  ;;  %v7899_v2 = vor.u32 %v8683_v49, %v7898_v61  ;;  %v8585_v5 = vld [vmem:[%s12997_s3 + $0x4cc] sm:$0xf]  ;;  %v7164_v49 = vld [vmem:[%s12997_s3 + $0x218] sm:$0xf0] }
 0x293   :  { %4927 = vmatpush.bf16.msra.mxu0 %v7023_v9  ;;  %v7276_v9 = vld [vmem:[%s12997_s3 + $0x2f8] sm:$0xf0]  ;;  %v8605_v4 = vld [vmem:[%s12997_s3 + $0x56c] sm:$0xf] }
 0x294   :  { %4896 = vmatmul.bf16.vlgmr.msrb.gmra.mxu1 %v11629_v38  ;;  %4866 = vmatpush.bf16.msra.mxu3 %v7339_v59  ;;  %v7279_v15 = vor.u32 %v8525_v42, %v7276_v9  ;;  %v7247_v59 = vor.u32 %v8517_v56, %v7244_v47  ;;  %v7644_v42 = vld [vmem:[%s12997_s3 + $0x5d8] sm:$0xf0]  ;;  %v7882_v9 = vld [vmem:[%s12997_s3 + $0x7a8] sm:$0xf]  ;;  %v8497_v61 = vld [vmem:[%s12997_s3 + $0x20c] sm:$0xf] }
 0x295   :  { %4940 = vmatpush.bf16.msra.mxu1 %v7151_v10  ;;  %v12479_v10 = vadd.f32 %v4689_v1, %v4677_v50  ;;  %4907 = vmatpush.bf16.msrb.mxu2 %v7691_v53  ;;  %v8513_v53 = vld [vmem:[%s12997_s3 + $0x28c] sm:$0xf]  ;;  %v7663_v1 = vor.u32 %v8621_v55, %v7660_v60  ;;  %v8667_v55 = vld [vmem:[%s12997_s3 + $0x754] sm:$0xf0] }
 0x296   :  { %v7231_v35 = vor.u32 %v8513_v53, %v7228_v0  ;;  %v8653_v53 = vld [vmem:[%s12997_s3 + $0x6ec] sm:$0xf]  ;;  %v7788_v0 = vld [vmem:[%s12997_s3 + $0x6f8] sm:$0xf0] }
 0x297   :  { %4928 = vmatpush.bf16.msra.mxu0 %v7007_v18  ;;  %v8437_v18 = vld [vmem:[%s12997_s3 + $0x2c] sm:$0xf]  ;;  %v4678_v27 = vpop.f32.mrf.mxu0 }
 0x298   :  { %4867 = vmatpush.bf16.msra.mxu3 %v7323_v19  ;;  %v6927_v36 = vor.u32 %v8437_v18, %v6924_v25  ;;  %v8679_v19 = vld [vmem:[%s12997_s3 + $0x7b4] sm:$0xf0]  ;;  %v7628_v18 = vld [vmem:[%s12997_s3 + $0x5b8] sm:$0xf0]  ;;  %v8577_v27 = vld [vmem:[%s12997_s3 + $0x48c] sm:$0xf] }
 0x299   :  { %4941 = vmatpush.bf16.msra.mxu1 %v7135_v21  ;;  %v8521_v21 = vld [vmem:[%s12997_s3 + $0x2cc] sm:$0xf]  ;;  %4908 = vmatpush.bf16.msrb.mxu2 %v7675_v12  ;;  %v4691_v29 = vpop.f32.mrf.mxu1  ;;  %v7883_v13 = vor.u32 %v8679_v19, %v7882_v9  ;;  %v8663_v9 = vld [vmem:[%s12997_s3 + $0x734] sm:$0xf0]  ;;  %v7791_v19 = vor.u32 %v8653_v53, %v7788_v0  ;;  %v7356_v53 = vld [vmem:[%s12997_s3 + $0x398] sm:$0xf0] }
 0x29a   :  { %v7263_v8 = vor.u32 %v8521_v21, %v7260_v23  ;;  %v7866_v21 = vld [vmem:[%s12997_s3 + $0x788] sm:$0xf]  ;;  %v8675_v23 = vld [vmem:[%s12997_s3 + $0x794] sm:$0xf0]  ;;  %v7612_v29 = vld [vmem:[%s12997_s3 + $0x598] sm:$0xf0] }
 0x29b   :  { %4929 = vmatpush.bf16.msra.mxu0 %v6991_v32  ;;  %v7914_v32 = vld [vmem:[%s12997_s3 + $0x7e8] sm:$0xf]  ;;  %v7867_v26 = vor.u32 %v8675_v23, %v7866_v21  ;;  %v7615_v56 = vor.u32 %v8609_v45, %v7612_v29  ;;  %v8659_v23 = vld [vmem:[%s12997_s3 + $0x714] sm:$0xf0]  ;;  %v8561_v29 = vld [vmem:[%s12997_s3 + $0x40c] sm:$0xf] }
 0x29c   :  { %4868 = vmatpush.bf16.msra.mxu3 %v7307_v22  ;;  %4909 = vmatmul.bf16.vlgmr.msrb.gmra.mxu2 %v11924_v54  ;;  %v7196_v22 = vld [vmem:[%s12997_s3 + $0x258] sm:$0xf0]  ;;  %v7802_v21 = vld [vmem:[%s12997_s3 + $0x708] sm:$0xf] }
 0x29d   :  { %4942 = vmatpush.bf16.msra.mxu1 %v7119_v33  ;;  %4953 = vmatpush.bf16.msra.mxu2 %v7279_v15  ;;  %v8687_v33 = vld [vmem:[%s12997_s3 + $0x7f4] sm:$0xf0]  ;;  %v7500_v15 = vld [vmem:[%s12997_s3 + $0x4b8] sm:$0xf0] }
 0x29e   :  { %v7915_v28 = vor.u32 %v8687_v33, %v7914_v32  ;;  %v7503_v25 = vor.u32 %v8581_v14, %v7500_v15  ;;  %v8671_v32 = vld [vmem:[%s12997_s3 + $0x774] sm:$0xf0]  ;;  %v3328_v33 = vperm.slane %v12213_v31, 1  ;;  %v8565_v14 = vld [vmem:[%s12997_s3 + $0x42c] sm:$0xf] }
 0x29f   :  { %4930 = vmatpush.bf16.msra.mxu0 %v6975_v51  ;;  %v8589_v51 = vld [vmem:[%s12997_s3 + $0x4ec] sm:$0xf]  ;;  %v7436_v15 = vld [vmem:[%s12997_s3 + $0x438] sm:$0xf0] }
 0x2a0   :  { %4869 = vmatpush.bf16.msra.mxu3 %v7291_v62  ;;  %v8573_v62 = vld [vmem:[%s12997_s3 + $0x46c] sm:$0xf] }
 0x2a1   :  { %4943 = vmatpush.bf16.msra.mxu1 %v7103_v52  ;;  %v7532_v52 = vld [vmem:[%s12997_s3 + $0x4f8] sm:$0xf0]  ;;  %4954 = vmatpush.bf16.msra.mxu2 %v7263_v8  ;;  %v7850_v8 = vld [vmem:[%s12997_s3 + $0x768] sm:$0xf] }
 0x2a2   :  { %v7535_v50 = vor.u32 %v8589_v51, %v7532_v52  ;;  %v7851_v47 = vor.u32 %v8671_v32, %v7850_v8  ;;  %v7596_v51 = vld [vmem:[%s12997_s3 + $0x578] sm:$0xf0]  ;;  %v7834_v52 = vld [vmem:[%s12997_s3 + $0x748] sm:$0xf] }
 0x2a3   :  { %4931 = vmatpush.bf16.msra.mxu0 %v6959_v6  ;;  %v7516_v6 = vld [vmem:[%s12997_s3 + $0x4d8] sm:$0xf0]  ;;  %4870 = vmatmul.bf16.vlgmr.msra.gmra.mxu3 %v11467_v44 }
 0x2a4   :  { %4914 = vmatpush.bf16.msrb.mxu3 %v7915_v28  ;;  %v7519_v58 = vor.u32 %v8585_v5, %v7516_v6  ;;  %v7452_v5 = vld [vmem:[%s12997_s3 + $0x458] sm:$0xf0]  ;;  %v8601_v6 = vld [vmem:[%s12997_s3 + $0x54c] sm:$0xf] }
 0x2a5   :  { %4944 = vmatpush.bf16.msra.mxu1 %v7087_v7  ;;  %v8617_v7 = vld [vmem:[%s12997_s3 + $0x5cc] sm:$0xf]  ;;  %4955 = vmatpush.bf16.msra.mxu2 %v7247_v59  ;;  %v7420_v8 = vld [vmem:[%s12997_s3 + $0x418] sm:$0xf0] }
 0x2a6   :  { %v7647_v12 = vor.u32 %v8617_v7, %v7644_v42  ;;  %v7167_v7 = vor.u32 %v8497_v61, %v7164_v49  ;;  %v7818_v42 = vld [vmem:[%s12997_s3 + $0x728] sm:$0xf] }
 0x2a7   :  { %4932 = vmatpush.bf16.msra.mxu0 %v6943_v16  ;;  %v8613_v16 = vld [vmem:[%s12997_s3 + $0x5ac] sm:$0xf] }
 0x2a8   :  { %4915 = vmatpush.bf16.msrb.mxu3 %v7899_v2  ;;  %v7631_v20 = vor.u32 %v8613_v16, %v7628_v18  ;;  %v8569_v2 = vld [vmem:[%s12997_s3 + $0x44c] sm:$0xf]  ;;  %v7564_v18 = vld [vmem:[%s12997_s3 + $0x538] sm:$0xf0] }
 0x2a9   :  { %4945 = vmatpush.bf16.msra.mxu1 %v7071_v37  ;;  %4956 = vmatpush.bf16.msra.mxu2 %v7231_v35  ;;  %v7215_v37 = vor.u32 %v8509_v57, %v7212_v63  ;;  %v7580_v35 = vld [vmem:[%s12997_s3 + $0x558] sm:$0xf0]  ;;  %v7455_v57 = vor.u32 %v8569_v2, %v7452_v5  ;;  %v8649_v63 = vld [vmem:[%s12997_s3 + $0x6cc] sm:$0xf] }
 0x2aa   :  { %v8597_v16 = vld [vmem:[%s12997_s3 + $0x52c] sm:$0xf] }
 0x2ab   :  { %4933 = vmatpush.bf16.msra.mxu0 %v6927_v36  ;;  %v8501_v36 = vld [vmem:[%s12997_s3 + $0x22c] sm:$0xf]  ;;  %v7567_v45 = vor.u32 %v8597_v16, %v7564_v18  ;;  %v8691_v16 = vld [vmem:[%s12999_s5 + $0x18] sm:$0xff] }
 0x2ac   :  { %4916 = vmatpush.bf16.msrb.mxu3 %v7883_v13  ;;  %v7819_v13 = vor.u32 %v8663_v9, %v7818_v42  ;;  %v8692_v42 = vld [vmem:[%s12999_s5 + $0x20] sm:$0xff] }
 0x2ad   :  { %4946 = vmatpush.bf16.msra.mxu1 %v7055_v39  ;;  %4957 = vmatpush.bf16.msra.mxu2 %v7215_v37  ;;  %v7180_v39 = vld [vmem:[%s12997_s3 + $0x238] sm:$0xf0] }
 0x2ae   :  { %v7183_v28 = vor.u32 %v8501_v36, %v7180_v39  ;;  %v7548_v36 = vld [vmem:[%s12997_s3 + $0x518] sm:$0xf0] }
 0x2af   :  { %4934 = vmatpush.bf16.msra.mxu0 %v6911_v30  ;;  %v4728_v46 = vpop.f32.mrf.mxu0  ;;  %v7471_v30 = vor.u32 %v8573_v62, %v7468_v48  ;;  %v7740_v62 = vld [vmem:[%s12997_s3 + $0x698] sm:$0xf0] }
 0x2b0   :  { %4917 = vmatpush.bf16.msrb.mxu3 %v7867_v26  ;;  %v4729_v59 = vadd.f32 %v4728_v46, %v3328_v33  ;;  %v7439_v26 = vor.u32 %v8565_v14, %v7436_v15  ;;  %v8593_v33 = vld [vmem:[%s12997_s3 + $0x50c] sm:$0xf]  ;;  %v7676_v15 = vld [vmem:[%s12997_s3 + $0x618] sm:$0xf0] }
 0x2b1   :  { %4947 = vmatpush.bf16.msra.mxu1 %v7039_v24  ;;  %v4741_v60 = vpop.f32.mrf.mxu1  ;;  %v7551_v48 = vor.u32 %v8593_v33, %v7548_v36  ;;  %v8625_v14 = vld [vmem:[%s12997_s3 + $0x60c] sm:$0xf] }
 0x2b2   :  { %4935 = vmatmul.bf16.vlgmr.msra.gmra.mxu0 %v11448_v34  ;;  %v8505_v34 = vld [vmem:[%s12997_s3 + $0x24c] sm:$0xf]  ;;  %v12675_v24 = vadd.f32 %v4741_v60, %v4729_v59  ;;  %v7724_v59 = vld [vmem:[%s12997_s3 + $0x678] sm:$0xf0]  ;;  %v8694_v60 = vld [vmem:[%s12999_s5 + $0x30] sm:$0xff]  ;;  %v7679_v18 = vor.u32 %v8625_v14, %v7676_v15 }
 0x2b3   :  { %4979 = vmatpush.bf16.msrb.mxu0 %v7535_v50  ;;  %v7199_v3 = vor.u32 %v8505_v34, %v7196_v22  ;;  %v7599_v50 = vor.u32 %v8605_v4, %v7596_v51  ;;  %v8695_v4 = vld [vmem:[%s12999_s5 + $0x38] sm:$0xff]  ;;  %v8549_v51 = vld [vmem:[%s12997_s3 + $0x3ac] sm:$0xf] }
 0x2b4   :  { %4948 = vmatmul.bf16.vlgmr.msra.gmra.mxu1 %v11453_v40  ;;  %v7484_v40 = vld [vmem:[%s12997_s3 + $0x498] sm:$0xf0]  ;;  %4918 = vmatpush.bf16.msrb.mxu3 %v7851_v47  ;;  %v8641_v47 = vld [vmem:[%s12997_s3 + $0x68c] sm:$0xf] }
 0x2b5   :  { %4992 = vmatpush.bf16.msrb.mxu1 %v7663_v1  ;;  %v7487_v43 = vor.u32 %v8577_v27, %v7484_v40  ;;  %4958 = vmatpush.bf16.msra.mxu2 %v7199_v3  ;;  %v7835_v1 = vor.u32 %v8667_v55, %v7834_v52  ;;  %v8645_v27 = vld [vmem:[%s12997_s3 + $0x6ac] sm:$0xf]  ;;  %v7756_v40 = vld [vmem:[%s12997_s3 + $0x6b8] sm:$0xf0]  ;;  %v7803_v3 = vor.u32 %v8659_v23, %v7802_v21 }
 0x2b6   :  { %v7759_v39 = vor.u32 %v8645_v27, %v7756_v40  ;;  %v7372_v52 = vld [vmem:[%s12997_s3 + $0x3b8] sm:$0xf0]  ;;  %v8637_v55 = vld [vmem:[%s12997_s3 + $0x66c] sm:$0xf]  ;;  %v8702_v40 = vld [vmem:[%s12999_s5 + $0x70] sm:$0xff] }
 0x2b7   :  { %4980 = vmatpush.bf16.msrb.mxu0 %v7519_v58  ;;  %v7772_v58 = vld [vmem:[%s12997_s3 + $0x6d8] sm:$0xf0]  ;;  %v4730_v37 = vpop.f32.mrf.mxu0  ;;  %v7375_v61 = vor.u32 %v8549_v51, %v7372_v52  ;;  %v7727_v49 = vor.u32 %v8637_v55, %v7724_v59  ;;  %v8533_v21 = vld [vmem:[%s12997_s3 + $0x32c] sm:$0xf] }
 0x2b8   :  { %4919 = vmatpush.bf16.msrb.mxu3 %v7835_v1  ;;  %v7775_v22 = vor.u32 %v8649_v63, %v7772_v58  ;;  %v12783_v0 = vpop.f32.mrf.mxu2  ;;  %v8693_v1 = vld [vmem:[%s12999_s5 + $0x28] sm:$0xff]  ;;  %v7324_v58 = vld [vmem:[%s12997_s3 + $0x358] sm:$0xf0] }
 0x2b9   :  { %4993 = vmatpush.bf16.msrb.mxu1 %v7647_v12  ;;  %4959 = vmatpush.bf16.msra.mxu2 %v7183_v28  ;;  %v7583_v12 = vor.u32 %v8601_v6, %v7580_v35  ;;  %v4743_v34 = vpop.f32.mrf.mxu1  ;;  %v7743_v28 = vor.u32 %v8641_v47, %v7740_v62  ;;  %v7340_v6 = vld [vmem:[%s12997_s3 + $0x378] sm:$0xf0]  ;;  %v8537_v63 = vld [vmem:[%s12997_s3 + $0x34c] sm:$0xf] }
 0x2ba   :  { %v7692_v35 = vld [vmem:[%s12997_s3 + $0x638] sm:$0xf0]  ;;  %v7327_v37 = vor.u32 %v8537_v63, %v7324_v58  ;;  %v8690_v34 = vld [vmem:[%s12999_s5 + $0x10] sm:$0xff]  ;;  %v8677_v62 = vld [vmem:[%s12997_s3 + $0x7ac] sm:$0xf] }
 0x2bb   :  { %4981 = vmatpush.bf16.msrb.mxu0 %v7503_v25  ;;  %v8557_v25 = vld [vmem:[%s12997_s3 + $0x3ec] sm:$0xf]  ;;  %v7308_v23 = vld [vmem:[%s12997_s3 + $0x338] sm:$0xf0] }
 0x2bc   :  { %4920 = vmatpush.bf16.msrb.mxu3 %v7819_v13  ;;  %v7292_v27 = vld [vmem:[%s12997_s3 + $0x318] sm:$0xf0]  ;;  %v8669_v59 = vld [vmem:[%s12997_s3 + $0x76c] sm:$0xf] }
 0x2bd   :  { %4994 = vmatpush.bf16.msrb.mxu1 %v7631_v20  ;;  %4960 = vmatpush.bf16.msra.mxu2 %v7167_v7  ;;  %v7404_v20 = vld [vmem:[%s12997_s3 + $0x3f8] sm:$0xf0]  ;;  %v8629_v7 = vld [vmem:[%s12997_s3 + $0x62c] sm:$0xf] }
 0x2be   :  { %v7407_v32 = vor.u32 %v8557_v25, %v7404_v20  ;;  %v7311_v25 = vor.u32 %v8533_v21, %v7308_v23  ;;  %v7868_v51 = vld [vmem:[%s12997_s3 + $0x798] sm:$0xf0]  ;;  %v8657_v14 = vld [vmem:[%s12997_s3 + $0x70c] sm:$0xf] }
 0x2bf   :  { %4982 = vmatpush.bf16.msrb.mxu0 %v7487_v43  ;;  %v8553_v43 = vld [vmem:[%s12997_s3 + $0x3cc] sm:$0xf]  ;;  %v8699_v52 = vld [vmem:[%s12999_s5 + $0x58] sm:$0xff] }
 0x2c0   :  { %4961 = vmatmul.bf16.vlgmr.msra.gmra.mxu2 %v11457_v41  ;;  %v7423_v41 = vor.u32 %v8561_v29, %v7420_v8  ;;  %4921 = vmatpush.bf16.msrb.mxu3 %v7803_v3  ;;  %v4704_v13 = vpop.f32.mrf.mxu2  ;;  %v8685_v29 = vld [vmem:[%s12997_s3 + $0x7ec] sm:$0xf]  ;;  %v7916_v8 = vld [vmem:[%s12997_s3 + $0x7f8] sm:$0xf0] }
 0x2c1   :  { %4995 = vmatpush.bf16.msrb.mxu1 %v7615_v56  ;;  %5005 = vmatpush.bf16.msrb.mxu2 %v7791_v19  ;;  %v7388_v56 = vld [vmem:[%s12997_s3 + $0x3d8] sm:$0xf0]  ;;  %v7919_v36 = vor.u32 %v8685_v29, %v7916_v8 }
 0x2c2   :  { %v7391_v46 = vor.u32 %v8553_v43, %v7388_v56  ;;  %v7900_v43 = vld [vmem:[%s12997_s3 + $0x7d8] sm:$0xf0]  ;;  %v8688_v56 = vld [vmem:[%s12999_s5] sm:$0xff] }
 0x2c3   :  { %4983 = vmatpush.bf16.msrb.mxu0 %v7471_v30  ;;  %4922 = vmatmul.bf16.vlgmr.msrb.gmra.mxu3 %v12151_v17  ;;  %v8545_v30 = vld [vmem:[%s12997_s3 + $0x38c] sm:$0xf]  ;;  %v7804_v15 = vld [vmem:[%s12997_s3 + $0x718] sm:$0xf0] }
 0x2c4   :  { %4966 = vmatpush.bf16.msra.mxu3 %v7407_v32  ;;  %v7359_v2 = vor.u32 %v8545_v30, %v7356_v53  ;;  %v8689_v32 = vld [vmem:[%s12999_s5 + $0x8] sm:$0xff]  ;;  %v4703_v53 = vadd.f32 %v12783_v0, %v12479_v10 }
 0x2c5   :  { %4996 = vmatpush.bf16.msrb.mxu1 %v7599_v50  ;;  %5006 = vmatpush.bf16.msrb.mxu2 %v7775_v22  ;;  %v8633_v50 = vld [vmem:[%s12997_s3 + $0x64c] sm:$0xf]  ;;  %v8703_v22 = vld [vmem:[%s12999_s5 + $0x78] sm:$0xff] }
 0x2c7   :  { %4984 = vmatpush.bf16.msrb.mxu0 %v7455_v57  ;;  %v7695_v57 = vor.u32 %v8629_v7, %v7692_v35 }
 0x2c8   :  { %4967 = vmatpush.bf16.msra.mxu3 %v7391_v46 }
 0x2c9   :  { %4997 = vmatpush.bf16.msrb.mxu1 %v7583_v12  ;;  %5007 = vmatpush.bf16.msrb.mxu2 %v7759_v39  ;;  %v12849_v3 = vpop.f32.mrf.mxu2  ;;  %v8681_v39 = vld [vmem:[%s12997_s3 + $0x7cc] sm:$0xf] }
 0x2ca   :  { %v4755_v23 = vadd.f32 %v12849_v3, %v12675_v24 }
 0x2cb   :  { %4985 = vmatpush.bf16.msrb.mxu0 %v7439_v26  ;;  %v8529_v26 = vld [vmem:[%s12997_s3 + $0x30c] sm:$0xf] }
 0x2cc   :  { %4968 = vmatpush.bf16.msra.mxu3 %v7375_v61  ;;  %v7295_v33 = vor.u32 %v8529_v26, %v7292_v27  ;;  %v3329_v61 = vperm.slane %v12213_v31, 2 }
 0x2cd   :  { %4998 = vmatpush.bf16.msrb.mxu1 %v7567_v45  ;;  %5008 = vmatpush.bf16.msrb.mxu2 %v7743_v28  ;;  %v8673_v28 = vld [vmem:[%s12997_s3 + $0x78c] sm:$0xf] }
 0x2ce   :  { %v7871_v55 = vor.u32 %v8673_v28, %v7868_v51 }
 0x2cf   :  { %4986 = vmatpush.bf16.msrb.mxu0 %v7423_v41  ;;  %v12809_v19 = vpop.f32.mrf.mxu0  ;;  %v7903_v41 = vor.u32 %v8681_v39, %v7900_v43  ;;  %v8708_v43 = vld [vmem:[%s12999_s5 + $0xa0] sm:$0xff] }
 0x2d0   :  { %4969 = vmatpush.bf16.msra.mxu3 %v7359_v2 }
 0x2d1   :  { %4999 = vmatpush.bf16.msrb.mxu1 %v7551_v48  ;;  %5009 = vmatpush.bf16.msrb.mxu2 %v7727_v49  ;;  %v12817_v12 = vpop.f32.mrf.mxu1  ;;  %v4756_v47 = vpop.f32.mrf.mxu2  ;;  %v7884_v48 = vld [vmem:[%s12997_s3 + $0x7b8] sm:$0xf0]  ;;  %v8698_v49 = vld [vmem:[%s12999_s5 + $0x50] sm:$0xff] }
 0x2d2   :  { %4987 = vmatmul.bf16.vlgmr.msrb.gmra.mxu0 %v11636_v11  ;;  %v7708_v11 = vld [vmem:[%s12997_s3 + $0x658] sm:$0xf0]  ;;  %v7887_v46 = vor.u32 %v8677_v62, %v7884_v48  ;;  %v8725_v47 = vld [vmem:[%s12998_s4] sm:$0xf]  ;;  %v8705_v48 = vld [vmem:[%s12999_s5 + $0x88] sm:$0xff] }
 0x2d3   :  { %5299 = vmatpush.bf16.msra.mxu0 %v8695_v4  ;;  %v7711_v5 = vor.u32 %v8633_v50, %v7708_v11  ;;  %v8700_v4 = vld [vmem:[%s12999_s5 + $0x60] sm:$0xff]  ;;  %v8665_v11 = vld [vmem:[%s12997_s3 + $0x74c] sm:$0xf]  ;;  %v3330_v62 = vperm.slane %v8725_v47, 3 }
 0x2d4   :  { %5000 = vmatmul.bf16.vlgmr.msrb.gmra.mxu1 %v11629_v38  ;;  %v8541_v38 = vld [vmem:[%s12997_s3 + $0x36c] sm:$0xf] }
 0x2d5   :  { %v7343_v9 = vor.u32 %v8541_v38, %v7340_v6  ;;  %5010 = vmatpush.bf16.msrb.mxu2 %v7711_v5  ;;  %5312 = vmatpush.bf16.msra.mxu1 %v8703_v22  ;;  %v8697_v38 = vld [vmem:[%s12999_s5 + $0x48] sm:$0xff] }
 0x2d7   :  { %5300 = vmatpush.bf16.msra.mxu0 %v8694_v60  ;;  %4970 = vmatpush.bf16.msra.mxu3 %v7343_v9  ;;  %v4782_v20 = vpop.f32.mrf.mxu0  ;;  %v7852_v60 = vld [vmem:[%s12997_s3 + $0x778] sm:$0xf0] }
 0x2d8   :  { %v7855_v30 = vor.u32 %v8669_v59, %v7852_v60  ;;  %v7820_v9 = vld [vmem:[%s12997_s3 + $0x738] sm:$0xf0] }
 0x2d9   :  { %5011 = vmatpush.bf16.msrb.mxu2 %v7695_v57  ;;  %v4795_v45 = vpop.f32.mrf.mxu1  ;;  %5313 = vmatpush.bf16.msra.mxu1 %v8702_v40  ;;  %v8696_v57 = vld [vmem:[%s12999_s5 + $0x40] sm:$0xff] }
 0x2db   :  { %5301 = vmatpush.bf16.msra.mxu0 %v8693_v1  ;;  %4971 = vmatpush.bf16.msra.mxu3 %v7327_v37  ;;  %v7836_v1 = vld [vmem:[%s12997_s3 + $0x758] sm:$0xf0] }
 0x2dc   :  { %v7839_v10 = vor.u32 %v8665_v11, %v7836_v1 }
 0x2dd   :  { %5012 = vmatpush.bf16.msrb.mxu2 %v7679_v18  ;;  %v7807_v18 = vor.u32 %v8657_v14, %v7804_v15  ;;  %v8714_v14 = vld [vmem:[%s12999_s5 + $0xd0] sm:$0xff] }
 0x2df   :  { %5302 = vmatpush.bf16.msra.mxu0 %v8692_v42  ;;  %4972 = vmatpush.bf16.msra.mxu3 %v7311_v25  ;;  %v8661_v42 = vld [vmem:[%s12997_s3 + $0x72c] sm:$0xf] }
 0x2e0   :  { %5013 = vmatmul.bf16.vlgmr.msrb.gmra.mxu2 %v11924_v54  ;;  %v8701_v54 = vld [vmem:[%s12999_s5 + $0x68] sm:$0xff]  ;;  %v7823_v58 = vor.u32 %v8661_v42, %v7820_v9 }
 0x2e1   :  { %5314 = vmatpush.bf16.msra.mxu1 %v8701_v54  ;;  %v8706_v54 = vld [vmem:[%s12999_s5 + $0x90] sm:$0xff] }
 0x2e3   :  { %5303 = vmatpush.bf16.msra.mxu0 %v8691_v16  ;;  %4973 = vmatpush.bf16.msra.mxu3 %v7295_v33  ;;  %v8711_v33 = vld [vmem:[%s12999_s5 + $0xb8] sm:$0xff] }
 0x2e4   :  { %5325 = vmatpush.bf16.msra.mxu2 %v8711_v33 }
 0x2e5   :  { %5315 = vmatpush.bf16.msra.mxu1 %v8700_v4  ;;  %v4715_v5 = vpop.f32.mrf.mxu3 }
 0x2e6   :  { %4974 = vmatmul.bf16.vlgmr.msra.gmra.mxu3 %v11467_v44  ;;  %v4806_v44 = vpop.f32.mrf.mxu2  ;;  %v4716_v6 = vadd.f32 %v4715_v5, %v4703_v53 }
 0x2e7   :  { %5304 = vmatpush.bf16.msra.mxu0 %v8690_v34  ;;  %5018 = vmatpush.bf16.msrb.mxu3 %v7919_v36 }
 0x2e8   :  { %v5031_v0 = vmax.f32 %v4716_v6, 0.0 }
 0x2e9   :  { %5316 = vmatpush.bf16.msra.mxu1 %v8699_v52 }
 0x2ea   :  { %v5035_v63 = vpack.c.bf16 %v5031_v0, %v5031_v0 }
 0x2eb   :  { %5305 = vmatpush.bf16.msra.mxu0 %v8689_v32  ;;  %5019 = vmatpush.bf16.msrb.mxu3 %v7903_v41 }
 0x2ed   :  { %5317 = vmatpush.bf16.msra.mxu1 %v8698_v49  ;;  %v4717_v37 = vpop.f32.mrf.mxu3 }
 0x2ee   :  { %v4808_v35 = vpop.f32.mrf.mxu2 }
 0x2ef   :  { %5306 = vmatpush.bf16.msra.mxu0 %v8688_v56  ;;  %5020 = vmatpush.bf16.msrb.mxu3 %v7887_v46  ;;  %v4832_v50 = vpop.f32.mrf.mxu0  ;;  %v8707_v56 = vld [vmem:[%s12999_s5 + $0x98] sm:$0xff] }
 0x2f0   :  { %v4833_v31 = vadd.f32 %v4832_v50, %v3329_v61 }
 0x2f1   :  { %v4845_v2 = vpop.f32.mrf.mxu1  ;;  %5318 = vmatpush.bf16.msra.mxu1 %v8697_v38  ;;  %v8719_v38 = vld [vmem:[%s12999_s5 + $0xf8] sm:$0xff] }
 0x2f2   :  { %v12913_v7 = vadd.f32 %v4845_v2, %v4833_v31  ;;  %5307 = vmatmul.bf16.vlgmr.msra.gmra.mxu0 %v5035_v63 }
 0x2f3   :  { %5021 = vmatpush.bf16.msrb.mxu3 %v7871_v55  ;;  %v8704_v55 = vld [vmem:[%s12999_s5 + $0x80] sm:$0xff] }
 0x2f5   :  { %5319 = vmatpush.bf16.msra.mxu1 %v8696_v57  ;;  %v4767_v21 = vpop.f32.mrf.mxu3  ;;  %v8717_v57 = vld [vmem:[%s12999_s5 + $0xe8] sm:$0xff] }
 0x2f6   :  { %v4768_v34 = vadd.f32 %v4767_v21, %v4755_v23 }
 0x2f7   :  { %5022 = vmatpush.bf16.msrb.mxu3 %v7855_v30  ;;  %v4834_v13 = vpop.f32.mrf.mxu0 }
 0x2f8   :  { %v4781_v22 = vadd.f32 %v12809_v19, %v4768_v34  ;;  %v8710_v19 = vld [vmem:[%s12999_s5 + $0xb0] sm:$0xff]  ;;  %v8715_v13 = vld [vmem:[%s12999_s5 + $0xd8] sm:$0xff] }
 0x2f9   :  { %v4847_v16 = vpop.f32.mrf.mxu1  ;;  %5326 = vmatpush.bf16.msra.mxu2 %v8710_v19 }
 0x2fa   :  { %v4794_v26 = vadd.f32 %v12817_v12, %v4781_v22  ;;  %v8709_v12 = vld [vmem:[%s12999_s5 + $0xa8] sm:$0xff] }
 0x2fb   :  { %5023 = vmatpush.bf16.msrb.mxu3 %v7839_v10  ;;  %v8713_v16 = vld [vmem:[%s12999_s5 + $0xc8] sm:$0xff] }
 0x2fc   :  { %v4807_v45 = vadd.f32 %v4806_v44, %v4794_v26 }
 0x2fd   :  { %v4769_v25 = vpop.f32.mrf.mxu3  ;;  %5327 = vmatpush.bf16.msra.mxu2 %v8709_v12 }
 0x2ff   :  { %5024 = vmatpush.bf16.msrb.mxu3 %v7823_v58  ;;  %v8716_v58 = vld [vmem:[%s12999_s5 + $0xe0] sm:$0xff] }
 0x300   :  { %v4858_v20 = vpop.f32.mrf.mxu2 }
 0x301   :  { %5328 = vmatpush.bf16.msra.mxu2 %v8708_v43  ;;  %v4859_v49 = vadd.f32 %v4858_v20, %v12913_v7  ;;  %v8718_v7 = vld [vmem:[%s12999_s5 + $0xf0] sm:$0xff] }
 0x303   :  { %5025 = vmatpush.bf16.msrb.mxu3 %v7807_v18  ;;  %v8712_v18 = vld [vmem:[%s12999_s5 + $0xc0] sm:$0xff] }
 0x305   :  { %5329 = vmatpush.bf16.msra.mxu2 %v8707_v56 }
 0x306   :  { %5026 = vmatmul.bf16.vlgmr.msrb.gmra.mxu3 %v12151_v17  ;;  %v4819_v29 = vpop.f32.mrf.mxu3 }
 0x307   :  { %v4820_v8 = vadd.f32 %v4819_v29, %v4807_v45  ;;  %5338 = vmatpush.bf16.msra.mxu3 %v8719_v38 }
 0x308   :  { %v4860_v32 = vpop.f32.mrf.mxu2 }
 0x309   :  { %v5032_v24 = vmax.f32 %v4820_v8, 0.0  ;;  %5330 = vmatpush.bf16.msra.mxu2 %v8706_v54 }
 0x30b   :  { %v5036_v3 = vpack.c.bf16 %v5032_v24, %v5032_v24  ;;  %5339 = vmatpush.bf16.msra.mxu3 %v8718_v7  ;;  %v8720_v24 = vld [vmem:[%s13000_s6] ss:$0 sm:$0xff] }
 0x30d   :  { %5320 = vmatmul.bf16.vlgmr.msra.gmra.mxu1 %v5036_v3  ;;  %5331 = vmatpush.bf16.msra.mxu2 %v8705_v48 }
 0x30e   :  { %v4821_v39 = vpop.f32.mrf.mxu3 }
 0x30f   :  { %v4884_v27 = vpop.f32.mrf.mxu0  ;;  %5340 = vmatpush.bf16.msra.mxu3 %v8717_v57 }
 0x311   :  { %v4897_v40 = vpop.f32.mrf.mxu1  ;;  %5332 = vmatpush.bf16.msra.mxu2 %v8704_v55 }
 0x313   :  { %5341 = vmatpush.bf16.msra.mxu3 %v8716_v58 }
 0x317   :  { %v4886_v17 = vpop.f32.mrf.mxu0  ;;  %5342 = vmatpush.bf16.msra.mxu3 %v8715_v13 }
 0x319   :  { %v4899_v36 = vpop.f32.mrf.mxu1 }
 0x31b   :  { %5343 = vmatpush.bf16.msra.mxu3 %v8714_v14 }
 0x31f   :  { %v4910_v41 = vpop.f32.mrf.mxu2  ;;  %5344 = vmatpush.bf16.msra.mxu3 %v8713_v16 }
 0x323   :  { %5345 = vmatpush.bf16.msra.mxu3 %v8712_v18 }
 0x326   :  { %v4871_v52 = vpop.f32.mrf.mxu3 }
 0x327   :  { %v4912_v44 = vpop.f32.mrf.mxu2  ;;  %v4872_v30 = vadd.f32 %v4871_v52, %v4859_v49 }
 0x329   :  { %v4885_v53 = vadd.f32 %v4884_v27, %v4872_v30 }
 0x32b   :  { %v4898_v11 = vadd.f32 %v4897_v40, %v4885_v53 }
 0x32d   :  { %v4911_v2 = vadd.f32 %v4910_v41, %v4898_v11 }
 0x32e   :  { %v4873_v61 = vpop.f32.mrf.mxu3 }
 0x32f   :  { %v4936_v4 = vpop.f32.mrf.mxu0 }
 0x330   :  { %v4937_v46 = vadd.f32 %v4936_v4, %v3330_v62 }
 0x331   :  { %v4949_v28 = vpop.f32.mrf.mxu1 }
 0x332   :  { %v4950_v51 = vadd.f32 %v4949_v28, %v4937_v46 }
 0x337   :  { %v4938_v59 = vpop.f32.mrf.mxu0 }
 0x339   :  { %v4951_v60 = vpop.f32.mrf.mxu1 }
 0x343   :  { %v4962_v50 = vpop.f32.mrf.mxu2 }
 0x344   :  { %v4963_v22 = vadd.f32 %v4962_v50, %v4950_v51 }
 0x346   :  { %v4923_v5 = vpop.f32.mrf.mxu3 }
 0x347   :  { %v4924_v6 = vadd.f32 %v4923_v5, %v4911_v2 }
 0x349   :  { %v5033_v0 = vmax.f32 %v4924_v6, 0.0 }
 0x34b   :  { %v4964_v10 = vpop.f32.mrf.mxu2  ;;  %v5037_v35 = vpack.c.bf16 %v5033_v0, %v5033_v0 }
 0x34d   :  { %5333 = vmatmul.bf16.vlgmr.msra.gmra.mxu2 %v5037_v35 }
 0x34e   :  { %v4925_v63 = vpop.f32.mrf.mxu3 }
 0x34f   :  { %v4988_v1 = vpop.f32.mrf.mxu0 }
 0x351   :  { %v5001_v31 = vpop.f32.mrf.mxu1 }
 0x357   :  { %v4990_v42 = vpop.f32.mrf.mxu0 }
 0x359   :  { %v5003_v9 = vpop.f32.mrf.mxu1 }
 0x363   :  { %v5014_v15 = vpop.f32.mrf.mxu2 }
 0x369   :  { %v4975_v37 = vpop.f32.mrf.mxu3 }
 0x36a   :  { %v4976_v25 = vadd.f32 %v4975_v37, %v4963_v22 }
 0x36b   :  { %v5016_v21 = vpop.f32.mrf.mxu2 }
 0x36c   :  { %v4989_v20 = vadd.f32 %v4988_v1, %v4976_v25 }
 0x36e   :  { %v5002_v27 = vadd.f32 %v5001_v31, %v4989_v20 }
 0x36f   :  { %v5308_v34 = vpop.f32.mrf.mxu0 }
 0x370   :  { %v5015_v40 = vadd.f32 %v5014_v15, %v5002_v27  ;;  %v5309_v17 = vadd.f32 %v8720_v24, %v5308_v34 }
 0x371   :  { %v4977_v23 = vpop.f32.mrf.mxu3 }
 0x377   :  { %v5310_v26 = vpop.f32.mrf.mxu0 }
 0x389   :  { %v5027_v45 = vpop.f32.mrf.mxu3 }
 0x38a   :  { %v5028_v29 = vadd.f32 %v5027_v45, %v5015_v40  ;;  %v5321_v3 = vpop.f32.mrf.mxu1 }
 0x38b   :  { %v5322_v36 = vadd.f32 %v5321_v3, %v5309_v17 }
 0x38c   :  { %v5034_v8 = vmax.f32 %v5028_v29, 0.0 }
 0x38e   :  { %v5038_v32 = vpack.c.bf16 %v5034_v8, %v5034_v8 }
 0x390   :  { %5346 = vmatmul.bf16.vlgmr.msra.gmra.mxu3 %v5038_v32 }
 0x391   :  { %v5029_v33 = vpop.f32.mrf.mxu3 }
 0x392   :  { %v5323_v19 = vpop.f32.mrf.mxu1 }
 0x3d0   :  { %v5334_v12 = vpop.f32.mrf.mxu2 }
 0x3d1   :  { %v5335_v43 = vadd.f32 %v5334_v12, %v5322_v36 }
 0x3d8   :  { %v5336_v39 = vpop.f32.mrf.mxu2 }
 0x413   :  { %v5347_v56 = vpop.f32.mrf.mxu3 }
 0x414   :  { %v5348_v54 = vadd.f32 %v5347_v56, %v5335_v43 }
 0x416   :  { %5351 = vst [vmem:[%s13001_s8] sm:$0xff] %v5348_v54 }
 0x41b   :  { %v5349_v41 = vpop.f32.mrf.mxu3 }

</bundles_post_ra>
